<compile_context>
chip_gen: v6e
topology: v6e:2x2x1
jax: 0.10.0
libtpu: 0.0.40
codegen_flags: <defaults>
</compile_context>

<pallas_src>
import functools

import numpy as np
import jax
import jax.numpy as jnp
from jax import lax
from jax.experimental import pallas as pl
from jax.experimental.pallas import tpu as pltpu


def _magic_divider(divisor: int, n_max: int):
    """Exact (m, s): (n * m) >> s == n // divisor for all 0 <= n <= n_max (int32-safe)."""
    ns = np.arange(n_max + 1, dtype=np.int64)
    want = ns // divisor
    for s in range(8, 31):
        m = -((-(1 << s)) // divisor)          # ceil(2**s / divisor)
        if m * n_max < 2**31 and bool(np.all(((ns * m) >> s) == want)):
            return int(m), int(s)
    raise ValueError("no exact magic divider found")


@functools.partial(jax.jit, static_argnames=("tile_rows",))
def flow_head_pallas(x_nchw, w1, b1, w2, b2, *, tile_rows=8):
    """x_nchw: (B, Cin, H, W). w1: (Hid, Cin, 3, 3), w2: (Cout, Hid, 3, 3).

    tile_rows: output rows per grid step.  Tune per generation: generous on
    v5e/v6e (128 MiB VMEM), ~16-32 on v7x (64 MiB VMEM, 2 TensorCores).
    """
    B, Cin, H, W = x_nchw.shape
    Hid = w1.shape[0]
    Cout = w2.shape[0]
    Cp = 8                                   # out-channels padded to one sublane tile
    assert Cout <= Cp, "flow head kernel assumes <= 8 output channels"
    assert w1.shape == (Hid, Cin, 3, 3) and w2.shape == (Cout, Hid, 3, 3)

    Th = min(tile_rows, H)                   # output rows per tile
    nT = (H + Th - 1) // Th
    Hpad = nT * Th                           # output rows padded to whole tiles
    Wp = W + 2                               # padded width (conv padding=1)
    NZ_t = (Th + 2) * Wp + 2                 # hidden rows computed per tile (flat)
    Nx_t = (Th + 4) * Wp + 4                 # x rows read per tile (flat, incl. halo)
    Nw_t = Th * Wp                           # output rows stored per tile (flat)

    # exact integer "mod Wp" for the in-kernel column mask (verified at trace time)
    MAGIC, SHIFT = _magic_divider(Wp, NZ_t - 1)

    # ---- wrapper-side layout prep (fused by XLA under jit) -----------------
    # NCHW -> bf16 -> NHWC -> zero-pad (1 top, Hpad-H+1 bottom, 1 left/right)
    # -> flatten spatial -> extend with zero rows so every 3x3 tap is a
    # contiguous row-shifted slice -> overlapping per-tile slabs (halo dup).
    x_bf = x_nchw.astype(jnp.bfloat16)
    x_nhwc = jnp.transpose(x_bf, (0, 2, 3, 1))                       # (B,H,W,Cin)
    x_pad = jnp.pad(x_nhwc, ((0, 0), (1, Hpad - H + 1), (1, 1), (0, 0)))
    Np = (Hpad + 2) * Wp
    x_flat = x_pad.reshape(B, Np, Cin)
    x_ext = jnp.pad(x_flat, ((0, 0), (Wp + 1, Wp + 3), (0, 0)))      # (B, Np+2Wp+4, Cin)
    x_tiles = jnp.stack(
        [x_ext[:, r * Th * Wp: r * Th * Wp + Nx_t, :] for r in range(nT)],
        axis=1)                                                      # (B, nT, Nx_t, Cin) bf16

    # conv1 weights: (Hid, Cin, 3, 3) -> (9, Cin, Hid), tap index = ky*3 + kx
    w1_t = jnp.transpose(w1, (2, 3, 1, 0)).reshape(9, Cin, Hid).astype(jnp.bfloat16)
    b1_r = b1.reshape(1, Hid).astype(jnp.float32)

    # conv2 weights: pad Cout -> Cp, concat the 9 taps along the output dim.
    # column index = (ky*3 + kx)*Cp + c
    w2_t = jnp.transpose(w2, (2, 3, 1, 0))                           # (3,3,Hid,Cout)
    w2_p = jnp.pad(w2_t, ((0, 0), (0, 0), (0, 0), (0, Cp - Cout)))
    w2_cat = jnp.transpose(w2_p, (2, 0, 1, 3)).reshape(Hid, 9 * Cp).astype(jnp.bfloat16)
    b2_p = jnp.pad(b2, (0, Cp - Cout)).reshape(1, Cp).astype(jnp.float32)

    def kernel(x_ref, w1_ref, b1_ref, w2_ref, b2_ref, out_ref):
        # x_ref : (1,1,Nx_t,Cin) bf16   w1_ref : (9,Cin,Hid) bf16   b1_ref : (1,Hid) f32
        # w2_ref: (Hid,9*Cp)  bf16      b2_ref : (1,Cp)       f32
        # out_ref: (1,1,Cp,Nw_t) f32
        r = pl.program_id(1)
        X = x_ref[0, 0]                                    # (Nx_t, Cin) bf16

        # conv1: 9 contiguous row-shifted slices -> bf16 MXU matmuls, f32 accumulate
        # TODO(synk): fold the 3 kx taps into K (=3*Cin) to fill the 256-deep MXU.
        acc = jnp.zeros((NZ_t, Hid), jnp.float32)
        for t in range(9):
            ky, kx = divmod(t, 3)
            off = ky * Wp + kx
            acc = acc + jnp.dot(X[off:off + NZ_t, :], w1_ref[t],
                                preferred_element_type=jnp.float32)

        hval = jnp.maximum(acc + b1_ref[...], 0.0)         # bias + ReLU (f32)

        # interior mask generated in-kernel (== conv2's zero padding, true-H bounds)
        lidx = lax.broadcasted_iota(jnp.int32, (NZ_t, 1), 0)     # tile-local flat index
        gidx = lidx + r * (Th * Wp)                              # global flat index
        row_ok = (gidx >= Wp) & (gidx < (H + 1) * Wp)            # padded row in [1, H]
        q = jnp.right_shift(lidx * MAGIC, SHIFT)                 # exact lidx // Wp
        col = lidx - q * Wp                                      # lidx mod Wp
        col_ok = (col >= 1) & (col <= W)                         # padded col in [1, W]
        h = jnp.where(row_ok & col_ok, hval, 0.0).astype(jnp.bfloat16)

        # conv2: ONE wide MXU matmul over all 9 taps (N = 9*Cp) ...
        z = jnp.dot(h, w2_ref[...],
                    preferred_element_type=jnp.float32)     # (NZ_t, 9*Cp)

        # ... then combine taps with 9 cheap row-shifted adds (VPU only).
        acc2 = jnp.zeros((Nw_t, Cp), jnp.float32)
        for t in range(9):
            ky, kx = divmod(t, 3)
            off = ky * Wp + kx
            acc2 = acc2 + z[off:off + Nw_t, t * Cp:(t + 1) * Cp]

        y = acc2 + b2_ref[...]                               # (Nw_t, Cp)
        # lane-dense store: channels on sublanes, flat spatial (>=128) on lanes.
        out_ref[0, 0] = jnp.transpose(y, (1, 0)).astype(out_ref.dtype)

    out = pl.pallas_call(
        kernel,
        out_shape=jax.ShapeDtypeStruct((B, nT, Cp, Nw_t), jnp.float32),
        grid_spec=pltpu.PrefetchScalarGridSpec(
            num_scalar_prefetch=0,
            grid=(B, nT),
            in_specs=[
                pl.BlockSpec((1, 1, Nx_t, Cin), lambda b, r: (b, r, 0, 0)),
                pl.BlockSpec((9, Cin, Hid), lambda b, r: (0, 0, 0)),
                pl.BlockSpec((1, Hid), lambda b, r: (0, 0)),
                pl.BlockSpec((Hid, 9 * Cp), lambda b, r: (0, 0)),
                pl.BlockSpec((1, Cp), lambda b, r: (0, 0)),
            ],
            out_specs=pl.BlockSpec((1, 1, Cp, Nw_t), lambda b, r: (b, r, 0, 0)),
        ),
        compiler_params=pltpu.CompilerParams(
            dimension_semantics=("parallel", "parallel"),
            vmem_limit_bytes=48 * 1024 * 1024,
        ),
    )(x_tiles, w1_t, b1_r, w2_cat, b2_p)

    # (B, nT, Cp, Th*Wp) -> (B, Cout, H, W): cheap reshape/transpose on the
    # small output, then slice away channel / width / row padding.
    out = out.reshape(B, nT, Cp, Th, Wp)
    out = jnp.transpose(out, (0, 2, 1, 3, 4)).reshape(B, Cp, Hpad, Wp)
    return out[:, :Cout, :H, :W]


def flow_head_reference(x_nchw, w1, b1, w2, b2):
    """Pure-JAX reference (lax conv), same NCHW in/out as PyTorch."""
    dn = lax.conv_dimension_numbers(x_nchw.shape, w1.shape, ("NCHW", "OIHW", "NCHW"))
    h = lax.conv_general_dilated(x_nchw, w1, (1, 1), ((1, 1), (1, 1)),
                                 dimension_numbers=dn)
    h = jnp.maximum(h + b1[None, :, None, None], 0.0)
    dn2 = lax.conv_dimension_numbers(h.shape, w2.shape, ("NCHW", "OIHW", "NCHW"))
    y = lax.conv_general_dilated(h, w2, (1, 1), ((1, 1), (1, 1)),
                                 dimension_numbers=dn2)
    return y + b2[None, :, None, None]


if __name__ == "__main__":
    # Small shapes consistent with the module (input_dim, hidden_dim scaled down).
    B, Cin, Hid, Cout, H, W = 2, 8, 16, 2, 16, 16

    key = jax.random.PRNGKey(0)
    k_x, k_w1, k_b1, k_w2, k_b2 = jax.random.split(key, 5)
    x = jax.random.normal(k_x, (B, Cin, H, W), jnp.float32)
    w1 = jax.random.normal(k_w1, (Hid, Cin, 3, 3), jnp.float32) * 0.1
    b1 = jax.random.normal(k_b1, (Hid,), jnp.float32) * 0.1
    w2 = jax.random.normal(k_w2, (Cout, Hid, 3, 3), jnp.float32) * 0.1
    b2 = jax.random.normal(k_b2, (Cout,), jnp.float32) * 0.1

    # tile_rows=8 -> nT=2 so the test exercises the row-tiled grid.
    y = jax.block_until_ready(flow_head_pallas(x, w1, b1, w2, b2, tile_rows=8))
    y_ref = jax.block_until_ready(flow_head_reference(x, w1, b1, w2, b2))

    assert y.shape == (B, Cout, H, W), y.shape
    # conv1 + conv2 run in bf16 on the MXU (f32 accumulation) -> loosened tolerance.
    assert jnp.allclose(y, y_ref, atol=5e-2, rtol=5e-2), \
        float(jnp.max(jnp.abs(y - y_ref)))
    print("KERNEL_OK")
</pallas_src>

<mosaic_0001>
module attributes {stable_mosaic.version = 11 : i64} {
  func.func @kernel(%arg0: i32, %arg1: i32, %arg2: memref<1x1x220x8xbf16, #tpu.memory_space<vmem>>, %arg3: memref<9x8x16xbf16, #tpu.memory_space<vmem>>, %arg4: memref<1x16xf32, #tpu.memory_space<vmem>>, %arg5: memref<16x72xbf16, #tpu.memory_space<vmem>>, %arg6: memref<1x8xf32, #tpu.memory_space<vmem>>, %arg7: memref<1x1x8x144xf32, #tpu.memory_space<vmem>>) attributes {dimension_semantics = [#tpu.dimension_semantics<parallel>, #tpu.dimension_semantics<parallel>], iteration_bounds = array<i64: 2, 2>, scalar_prefetch = 0 : i64, scratch_operands = 0 : i64, tpu.core_type = #tpu.core_type<tc>, window_params = [{transform_indices = @transform_0, window_bounds = array<i64: 1, 1, 220, 8>}, {pipeline_mode = #tpu.pipeline_mode<synchronous>, transform_indices = @transform_1, window_bounds = array<i64: 9, 8, 16>}, {pipeline_mode = #tpu.pipeline_mode<synchronous>, transform_indices = @transform_2, window_bounds = array<i64: 1, 16>}, {pipeline_mode = #tpu.pipeline_mode<synchronous>, transform_indices = @transform_3, window_bounds = array<i64: 16, 72>}, {pipeline_mode = #tpu.pipeline_mode<synchronous>, transform_indices = @transform_4, window_bounds = array<i64: 1, 8>}, {transform_indices = @transform_5, window_bounds = array<i64: 1, 1, 8, 144>}]} {
    %c0 = arith.constant 0 : index
    %c0_0 = arith.constant 0 : index
    %c0_1 = arith.constant 0 : index
    %c0_2 = arith.constant 0 : index
    %0 = vector.load %arg2[%c0, %c0_0, %c0_1, %c0_2] : memref<1x1x220x8xbf16, #tpu.memory_space<vmem>>, vector<1x1x220x8xbf16>
    %1 = vector.shape_cast %0 : vector<1x1x220x8xbf16> to vector<220x8xbf16>
    %cst = arith.constant 0.000000e+00 : f32
    %2 = vector.broadcast %cst : f32 to vector<182x16xf32>
    %3 = vector.extract_strided_slice %1 {offsets = [0, 0], sizes = [182, 8], strides = [1, 1]} : vector<220x8xbf16> to vector<182x8xbf16>
    %c0_3 = arith.constant 0 : index
    %c0_4 = arith.constant 0 : index
    %c0_5 = arith.constant 0 : index
    %4 = vector.load %arg3[%c0_3, %c0_4, %c0_5] : memref<9x8x16xbf16, #tpu.memory_space<vmem>>, vector<1x8x16xbf16>
    %5 = vector.shape_cast %4 : vector<1x8x16xbf16> to vector<8x16xbf16>
    %cst_6 = arith.constant dense<0.000000e+00> : vector<182x16xf32>
    %6 = tpu.matmul %3, %5, %cst_6 {dimension_numbers = #tpu.dot_dimension_numbers<[1], [0], [0], [1], [0, 0, 1, 1], [], []>} : vector<182x8xbf16>, vector<8x16xbf16>, vector<182x16xf32> -> vector<182x16xf32>
    %7 = arith.addf %2, %6 : vector<182x16xf32>
    %8 = vector.extract_strided_slice %1 {offsets = [1, 0], sizes = [182, 8], strides = [1, 1]} : vector<220x8xbf16> to vector<182x8xbf16>
    %c1 = arith.constant 1 : index
    %c0_7 = arith.constant 0 : index
    %c0_8 = arith.constant 0 : index
    %9 = vector.load %arg3[%c1, %c0_7, %c0_8] : memref<9x8x16xbf16, #tpu.memory_space<vmem>>, vector<1x8x16xbf16>
    %10 = vector.shape_cast %9 : vector<1x8x16xbf16> to vector<8x16xbf16>
    %cst_9 = arith.constant dense<0.000000e+00> : vector<182x16xf32>
    %11 = tpu.matmul %8, %10, %cst_9 {dimension_numbers = #tpu.dot_dimension_numbers<[1], [0], [0], [1], [0, 0, 1, 1], [], []>} : vector<182x8xbf16>, vector<8x16xbf16>, vector<182x16xf32> -> vector<182x16xf32>
    %12 = arith.addf %7, %11 : vector<182x16xf32>
    %13 = vector.extract_strided_slice %1 {offsets = [2, 0], sizes = [182, 8], strides = [1, 1]} : vector<220x8xbf16> to vector<182x8xbf16>
    %c2 = arith.constant 2 : index
    %c0_10 = arith.constant 0 : index
    %c0_11 = arith.constant 0 : index
    %14 = vector.load %arg3[%c2, %c0_10, %c0_11] : memref<9x8x16xbf16, #tpu.memory_space<vmem>>, vector<1x8x16xbf16>
    %15 = vector.shape_cast %14 : vector<1x8x16xbf16> to vector<8x16xbf16>
    %cst_12 = arith.constant dense<0.000000e+00> : vector<182x16xf32>
    %16 = tpu.matmul %13, %15, %cst_12 {dimension_numbers = #tpu.dot_dimension_numbers<[1], [0], [0], [1], [0, 0, 1, 1], [], []>} : vector<182x8xbf16>, vector<8x16xbf16>, vector<182x16xf32> -> vector<182x16xf32>
    %17 = arith.addf %12, %16 : vector<182x16xf32>
    %18 = vector.extract_strided_slice %1 {offsets = [18, 0], sizes = [182, 8], strides = [1, 1]} : vector<220x8xbf16> to vector<182x8xbf16>
    %c3 = arith.constant 3 : index
    %c0_13 = arith.constant 0 : index
    %c0_14 = arith.constant 0 : index
    %19 = vector.load %arg3[%c3, %c0_13, %c0_14] : memref<9x8x16xbf16, #tpu.memory_space<vmem>>, vector<1x8x16xbf16>
    %20 = vector.shape_cast %19 : vector<1x8x16xbf16> to vector<8x16xbf16>
    %cst_15 = arith.constant dense<0.000000e+00> : vector<182x16xf32>
    %21 = tpu.matmul %18, %20, %cst_15 {dimension_numbers = #tpu.dot_dimension_numbers<[1], [0], [0], [1], [0, 0, 1, 1], [], []>} : vector<182x8xbf16>, vector<8x16xbf16>, vector<182x16xf32> -> vector<182x16xf32>
    %22 = arith.addf %17, %21 : vector<182x16xf32>
    %23 = vector.extract_strided_slice %1 {offsets = [19, 0], sizes = [182, 8], strides = [1, 1]} : vector<220x8xbf16> to vector<182x8xbf16>
    %c4 = arith.constant 4 : index
    %c0_16 = arith.constant 0 : index
    %c0_17 = arith.constant 0 : index
    %24 = vector.load %arg3[%c4, %c0_16, %c0_17] : memref<9x8x16xbf16, #tpu.memory_space<vmem>>, vector<1x8x16xbf16>
    %25 = vector.shape_cast %24 : vector<1x8x16xbf16> to vector<8x16xbf16>
    %cst_18 = arith.constant dense<0.000000e+00> : vector<182x16xf32>
    %26 = tpu.matmul %23, %25, %cst_18 {dimension_numbers = #tpu.dot_dimension_numbers<[1], [0], [0], [1], [0, 0, 1, 1], [], []>} : vector<182x8xbf16>, vector<8x16xbf16>, vector<182x16xf32> -> vector<182x16xf32>
    %27 = arith.addf %22, %26 : vector<182x16xf32>
    %28 = vector.extract_strided_slice %1 {offsets = [20, 0], sizes = [182, 8], strides = [1, 1]} : vector<220x8xbf16> to vector<182x8xbf16>
    %c5 = arith.constant 5 : index
    %c0_19 = arith.constant 0 : index
    %c0_20 = arith.constant 0 : index
    %29 = vector.load %arg3[%c5, %c0_19, %c0_20] : memref<9x8x16xbf16, #tpu.memory_space<vmem>>, vector<1x8x16xbf16>
    %30 = vector.shape_cast %29 : vector<1x8x16xbf16> to vector<8x16xbf16>
    %cst_21 = arith.constant dense<0.000000e+00> : vector<182x16xf32>
    %31 = tpu.matmul %28, %30, %cst_21 {dimension_numbers = #tpu.dot_dimension_numbers<[1], [0], [0], [1], [0, 0, 1, 1], [], []>} : vector<182x8xbf16>, vector<8x16xbf16>, vector<182x16xf32> -> vector<182x16xf32>
    %32 = arith.addf %27, %31 : vector<182x16xf32>
    %33 = vector.extract_strided_slice %1 {offsets = [36, 0], sizes = [182, 8], strides = [1, 1]} : vector<220x8xbf16> to vector<182x8xbf16>
    %c6 = arith.constant 6 : index
    %c0_22 = arith.constant 0 : index
    %c0_23 = arith.constant 0 : index
    %34 = vector.load %arg3[%c6, %c0_22, %c0_23] : memref<9x8x16xbf16, #tpu.memory_space<vmem>>, vector<1x8x16xbf16>
    %35 = vector.shape_cast %34 : vector<1x8x16xbf16> to vector<8x16xbf16>
    %cst_24 = arith.constant dense<0.000000e+00> : vector<182x16xf32>
    %36 = tpu.matmul %33, %35, %cst_24 {dimension_numbers = #tpu.dot_dimension_numbers<[1], [0], [0], [1], [0, 0, 1, 1], [], []>} : vector<182x8xbf16>, vector<8x16xbf16>, vector<182x16xf32> -> vector<182x16xf32>
    %37 = arith.addf %32, %36 : vector<182x16xf32>
    %38 = vector.extract_strided_slice %1 {offsets = [37, 0], sizes = [182, 8], strides = [1, 1]} : vector<220x8xbf16> to vector<182x8xbf16>
    %c7 = arith.constant 7 : index
    %c0_25 = arith.constant 0 : index
    %c0_26 = arith.constant 0 : index
    %39 = vector.load %arg3[%c7, %c0_25, %c0_26] : memref<9x8x16xbf16, #tpu.memory_space<vmem>>, vector<1x8x16xbf16>
    %40 = vector.shape_cast %39 : vector<1x8x16xbf16> to vector<8x16xbf16>
    %cst_27 = arith.constant dense<0.000000e+00> : vector<182x16xf32>
    %41 = tpu.matmul %38, %40, %cst_27 {dimension_numbers = #tpu.dot_dimension_numbers<[1], [0], [0], [1], [0, 0, 1, 1], [], []>} : vector<182x8xbf16>, vector<8x16xbf16>, vector<182x16xf32> -> vector<182x16xf32>
    %42 = arith.addf %37, %41 : vector<182x16xf32>
    %43 = vector.extract_strided_slice %1 {offsets = [38, 0], sizes = [182, 8], strides = [1, 1]} : vector<220x8xbf16> to vector<182x8xbf16>
    %c8 = arith.constant 8 : index
    %c0_28 = arith.constant 0 : index
    %c0_29 = arith.constant 0 : index
    %44 = vector.load %arg3[%c8, %c0_28, %c0_29] : memref<9x8x16xbf16, #tpu.memory_space<vmem>>, vector<1x8x16xbf16>
    %45 = vector.shape_cast %44 : vector<1x8x16xbf16> to vector<8x16xbf16>
    %cst_30 = arith.constant dense<0.000000e+00> : vector<182x16xf32>
    %46 = tpu.matmul %43, %45, %cst_30 {dimension_numbers = #tpu.dot_dimension_numbers<[1], [0], [0], [1], [0, 0, 1, 1], [], []>} : vector<182x8xbf16>, vector<8x16xbf16>, vector<182x16xf32> -> vector<182x16xf32>
    %47 = arith.addf %42, %46 : vector<182x16xf32>
    %c0_31 = arith.constant 0 : index
    %c0_32 = arith.constant 0 : index
    %48 = vector.load %arg4[%c0_31, %c0_32] : memref<1x16xf32, #tpu.memory_space<vmem>>, vector<1x16xf32>
    %49 = vector.broadcast %48 : vector<1x16xf32> to vector<182x16xf32>
    %50 = arith.addf %47, %49 : vector<182x16xf32>
    %cst_33 = arith.constant 0.000000e+00 : f32
    %51 = vector.broadcast %cst_33 : f32 to vector<182x16xf32>
    %52 = arith.maximumf %50, %51 : vector<182x16xf32>
    %53 = tpu.iota {dimensions = array<i32: 0>} : vector<182x1xi32>
    %c144_i32 = arith.constant 144 : i32
    %54 = arith.muli %arg1, %c144_i32 : i32
    %55 = vector.broadcast %54 : i32 to vector<182x1xi32>
    %56 = arith.addi %53, %55 : vector<182x1xi32>
    %c18_i32 = arith.constant 18 : i32
    %57 = vector.broadcast %c18_i32 : i32 to vector<182x1xi32>
    %58 = arith.cmpi sge, %56, %57 : vector<182x1xi32>
    %c306_i32 = arith.constant 306 : i32
    %59 = vector.broadcast %c306_i32 : i32 to vector<182x1xi32>
    %60 = arith.cmpi slt, %56, %59 : vector<182x1xi32>
    %61 = arith.andi %58, %60 : vector<182x1xi1>
    %c57_i32 = arith.constant 57 : i32
    %62 = vector.broadcast %c57_i32 : i32 to vector<182x1xi32>
    %63 = arith.muli %53, %62 : vector<182x1xi32>
    %c10_i32 = arith.constant 10 : i32
    %64 = vector.broadcast %c10_i32 : i32 to vector<182x1xi32>
    %65 = arith.shrsi %63, %64 : vector<182x1xi32>
    %c18_i32_34 = arith.constant 18 : i32
    %66 = vector.broadcast %c18_i32_34 : i32 to vector<182x1xi32>
    %67 = arith.muli %65, %66 : vector<182x1xi32>
    %68 = arith.subi %53, %67 : vector<182x1xi32>
    %c1_i32 = arith.constant 1 : i32
    %69 = vector.broadcast %c1_i32 : i32 to vector<182x1xi32>
    %70 = arith.cmpi sge, %68, %69 : vector<182x1xi32>
    %c16_i32 = arith.constant 16 : i32
    %71 = vector.broadcast %c16_i32 : i32 to vector<182x1xi32>
    %72 = arith.cmpi sle, %68, %71 : vector<182x1xi32>
    %73 = arith.andi %70, %72 : vector<182x1xi1>
    %74 = arith.andi %61, %73 : vector<182x1xi1>
    %cst_35 = arith.constant 0.000000e+00 : f32
    %75 = vector.shape_cast %74 : vector<182x1xi1> to vector<182x1xi1>
    %76 = vector.broadcast %75 : vector<182x1xi1> to vector<182x16xi1>
    %77 = vector.broadcast %cst_35 : f32 to vector<182x16xf32>
    %78 = arith.select %76, %52, %77 : vector<182x16xi1>, vector<182x16xf32>
    %79 = arith.truncf %78 : vector<182x16xf32> to vector<182x16xbf16>
    %c0_36 = arith.constant 0 : index
    %c0_37 = arith.constant 0 : index
    %80 = vector.load %arg5[%c0_36, %c0_37] : memref<16x72xbf16, #tpu.memory_space<vmem>>, vector<16x72xbf16>
    %cst_38 = arith.constant dense<0.000000e+00> : vector<182x72xf32>
    %81 = tpu.matmul %79, %80, %cst_38 {dimension_numbers = #tpu.dot_dimension_numbers<[1], [0], [0], [1], [0, 0, 1, 1], [], []>} : vector<182x16xbf16>, vector<16x72xbf16>, vector<182x72xf32> -> vector<182x72xf32>
    %cst_39 = arith.constant 0.000000e+00 : f32
    %82 = vector.broadcast %cst_39 : f32 to vector<144x8xf32>
    %83 = vector.extract_strided_slice %81 {offsets = [0, 0], sizes = [144, 8], strides = [1, 1]} : vector<182x72xf32> to vector<144x8xf32>
    %84 = arith.addf %82, %83 : vector<144x8xf32>
    %85 = vector.extract_strided_slice %81 {offsets = [1, 8], sizes = [144, 8], strides = [1, 1]} : vector<182x72xf32> to vector<144x8xf32>
    %86 = arith.addf %84, %85 : vector<144x8xf32>
    %87 = vector.extract_strided_slice %81 {offsets = [2, 16], sizes = [144, 8], strides = [1, 1]} : vector<182x72xf32> to vector<144x8xf32>
    %88 = arith.addf %86, %87 : vector<144x8xf32>
    %89 = vector.extract_strided_slice %81 {offsets = [18, 24], sizes = [144, 8], strides = [1, 1]} : vector<182x72xf32> to vector<144x8xf32>
    %90 = arith.addf %88, %89 : vector<144x8xf32>
    %91 = vector.extract_strided_slice %81 {offsets = [19, 32], sizes = [144, 8], strides = [1, 1]} : vector<182x72xf32> to vector<144x8xf32>
    %92 = arith.addf %90, %91 : vector<144x8xf32>
    %93 = vector.extract_strided_slice %81 {offsets = [20, 40], sizes = [144, 8], strides = [1, 1]} : vector<182x72xf32> to vector<144x8xf32>
    %94 = arith.addf %92, %93 : vector<144x8xf32>
    %95 = vector.extract_strided_slice %81 {offsets = [36, 48], sizes = [144, 8], strides = [1, 1]} : vector<182x72xf32> to vector<144x8xf32>
    %96 = arith.addf %94, %95 : vector<144x8xf32>
    %97 = vector.extract_strided_slice %81 {offsets = [37, 56], sizes = [144, 8], strides = [1, 1]} : vector<182x72xf32> to vector<144x8xf32>
    %98 = arith.addf %96, %97 : vector<144x8xf32>
    %99 = vector.extract_strided_slice %81 {offsets = [38, 64], sizes = [144, 8], strides = [1, 1]} : vector<182x72xf32> to vector<144x8xf32>
    %100 = arith.addf %98, %99 : vector<144x8xf32>
    %c0_40 = arith.constant 0 : index
    %c0_41 = arith.constant 0 : index
    %101 = vector.load %arg6[%c0_40, %c0_41] : memref<1x8xf32, #tpu.memory_space<vmem>>, vector<1x8xf32>
    %102 = vector.broadcast %101 : vector<1x8xf32> to vector<144x8xf32>
    %103 = arith.addf %100, %102 : vector<144x8xf32>
    %104 = tpu.transpose %103, [1, 0] : vector<144x8xf32> -> vector<8x144xf32>
    %c0_42 = arith.constant 0 : index
    %c0_43 = arith.constant 0 : index
    %c0_44 = arith.constant 0 : index
    %c0_45 = arith.constant 0 : index
    %105 = vector.load %arg7[%c0_42, %c0_43, %c0_44, %c0_45] : memref<1x1x8x144xf32, #tpu.memory_space<vmem>>, vector<1x1x8x144xf32>
    %106 = vector.shape_cast %105 : vector<1x1x8x144xf32> to vector<8x144xf32>
    %107 = vector.shape_cast %104 : vector<8x144xf32> to vector<1x1x8x144xf32>
    tpu.vector_store %arg7[%c0_42, %c0_43, %c0_44, %c0_45], %107 {strides = array<i32>} : memref<1x1x8x144xf32, #tpu.memory_space<vmem>>, vector<1x1x8x144xf32>,
    return
  }
  func.func @transform_0(%arg0: i32, %arg1: i32) -> (i32, i32, i32, i32) {
    %c0_i32 = arith.constant 0 : i32
    %c0_i32_0 = arith.constant 0 : i32
    %c0_i32_1 = arith.constant 0 : i32
    return %arg0, %arg1, %c0_i32, %c0_i32_0 : i32, i32, i32, i32
  }
  func.func @transform_1(%arg0: i32, %arg1: i32) -> (i32, i32, i32) {
    %c0_i32 = arith.constant 0 : i32
    %c0_i32_0 = arith.constant 0 : i32
    %c0_i32_1 = arith.constant 0 : i32
    %c0_i32_2 = arith.constant 0 : i32
    return %c0_i32, %c0_i32_0, %c0_i32_1 : i32, i32, i32
  }
  func.func @transform_2(%arg0: i32, %arg1: i32) -> (i32, i32) {
    %c0_i32 = arith.constant 0 : i32
    %c0_i32_0 = arith.constant 0 : i32
    %c0_i32_1 = arith.constant 0 : i32
    return %c0_i32, %c0_i32_0 : i32, i32
  }
  func.func @transform_3(%arg0: i32, %arg1: i32) -> (i32, i32) {
    %c0_i32 = arith.constant 0 : i32
    %c0_i32_0 = arith.constant 0 : i32
    %c0_i32_1 = arith.constant 0 : i32
    return %c0_i32, %c0_i32_0 : i32, i32
  }
  func.func @transform_4(%arg0: i32, %arg1: i32) -> (i32, i32) {
    %c0_i32 = arith.constant 0 : i32
    %c0_i32_0 = arith.constant 0 : i32
    %c0_i32_1 = arith.constant 0 : i32
    return %c0_i32, %c0_i32_0 : i32, i32
  }
  func.func @transform_5(%arg0: i32, %arg1: i32) -> (i32, i32, i32, i32) {
    %c0_i32 = arith.constant 0 : i32
    %c0_i32_0 = arith.constant 0 : i32
    %c0_i32_1 = arith.constant 0 : i32
    return %arg0, %arg1, %c0_i32, %c0_i32_0 : i32, i32, i32, i32
  }
}

</mosaic_0001>

<bundles_post_ra>
// kernel: flow_head_pallas.1
= control target key start
LH: loop header
LB: loop body
LE: loop exit
PB: predicated region body
PF: predicated region fallthrough
CT: control target
= control target key end

     0   :  { %s4611_s18 = smov 0   ;;  %s4613_s19 = smov 0   ;;  %s7442_s0 = inlined_call_operand.vmem [shape: bf16[2,2,220,8], index: 0, kind: input, shape index: {}]   ;;  %s7443_s1 = inlined_call_operand.vmem [shape: bf16[9,8,16], index: 1, kind: input, shape index: {}]   ;;  %s7444_s2 = inlined_call_operand.vmem [shape: f32[1,16], index: 2, kind: input, shape index: {}]   ;;  %s7445_s3 = inlined_call_operand.vmem [shape: bf16[16,72], index: 3, kind: input, shape index: {}]   ;;  %s7446_s4 = inlined_call_operand.vmem [shape: f32[1,8], index: 4, kind: input, shape index: {}]   ;;  %s7447_s5 = inlined_call_operand.vmem [shape: f32[2,2,8,144], index: 5, kind: output, shape index: {}]  }
   0x1   :  { %s4615_s20 = smov 0   ;;  %s4617_s21 = smov 0  }
   0x2   :  { %s4619_s22 = smov 0  }
   0x3 LB: > { %s24_s23 = sadd.s32 1, %s4563_s20  ;;  %s27_s24 = sadd.s32 1, %s4567_s21  ;;  %s4571_s22 = sphi %s4619_s22, %s15_s22   ;;  %s4567_s21 = sphi %s4617_s21, %s8000_s21   ;;  %s4563_s20 = sphi %s4615_s20, %s7999_s20   ;;  %s4559_s19 = sphi %s4613_s19, %s7998_s19   ;;  %s4555_s18 = sphi %s4611_s18, %s7997_s18  }
   0x4   : > { %p25_p0 = scmp.ge.s32.totalorder %s24_s23, 2  ;;  %p3912_p1 = scmp.ge.s32.totalorder %s4571_s22, 1 }
   0x5   : > { %p207_p2 = scmp.lt.s32.totalorder %s4571_s22, 5 }
   0x6   : > { %s8002_s23 = smov (%p25_p0, %s24_s23), 0  ;;  %s8004_s24 = smov (!%p25_p0, %s27_s24), %s4567_s21 }
   0x7   : > { %p208_p3 = pnand %p3912_p1, %p207_p2  ;;  %p29_p4 = scmp.ge.s32.totalorder %s8004_s24, 2 }
   0x9   : > { %s8006_s24 = smov (%p29_p4, %s8004_s24), 0  ;;  %211 = sbr.rel (%p208_p3) target bundleno = 1177 (0x499), region = 40 }
   0xe   : > { %v3917_v0 = vld [vmem:[%s7443_s1 + $0x4] sm:$0xf]  ;;  %vm7448_vm0 = vcmask 1043456   ;;  %v290_v1 = vld [vmem:[%s7443_s1] sm:$0xf]  ;;  %p243_p5 = scmp.lt.s32.totalorder %s4559_s19, 1 }
   0xf   : > { %4456 = vmatprep.subr.msk.bf16.mxu0 %vm7448_vm0, %v3917_v0  ;;  %v486_v2 = vsel %vm7448_vm0, %v3917_v0, 0  ;;  %4457 = vmatprep.subr.msk.bf16.mxu1 %vm7448_vm0, %v290_v1  ;;  %v641_v3 = vsel %vm7448_vm0, %v290_v1, 0  ;;  %p245_p6 = scmp.lt.s32.totalorder %s4555_s18, 1  ;;  %v3954_v4 = vld [vmem:[%s7443_s1 + $0x8] sm:$0xf]  ;;  %vm447_vm1 = vcmask 64512  }
  0x10   : > { %4197 = vmatpush3.bf16.msra.mxu0 %v486_v2  ;;  %4223 = vmatpush3.bf16.msra.mxu1 %v641_v3  ;;  %s8008_s19 = smov (!%p243_p5, %s4559_s19), 1  ;;  %v3967_v5 = vld [vmem:[%s7443_s1 + $0xc] sm:$0xf]  ;;  %v4683_v8 = vld [vmem:[%s7443_s1 + $0x14] sm:$0xf]  ;;  %v834_v26 = vsel %vm7448_vm0, %v3954_v4, 0 }
  0x11   : > { %s4663_s8 = scalar_select %p245_p6, %s4555_s18, 1  ;;  %4458 = vmatprep.subr.msk.bf16.mxu0 %vm7448_vm0, %v3954_v4  ;;  %4459 = vmatprep.subr.msk.bf16.mxu1 %vm7448_vm0, %v3967_v5  ;;  %v1009_v10 = vsel %vm7448_vm0, %v3967_v5, 0  ;;  %vm351_vm2 = vsmask.f32 7424  ;;  %v4744_v35 = vld [vmem:[%s7443_s1 + $0x10] sm:$0xf] }
  0x12   : > { %s4466_s9 = smul.u32 56, %s8008_s19  ;;  %vm1167_vm3 = vsmask.f32 6400  ;;  %vm7451_vm4 = vcmask 1045504   ;;  %vm7450_vm5 = vcmask 1046528   ;;  %vm7449_vm7 = vcmask 1044480  }
  0x13   : > { %s4465_s10 = smul.u32 28, %s4663_s8  ;;  %vm1802_vm6 = vsmask.f32 5376  ;;  %s4573_s13 = smov 112  }
  0x14   : > { %s4574_s14 = smov 120   ;;  %s4576_s16 = smov 96  }
  0x15   : > { %s249_s11 = sadd.s32 %s4466_s9, %s4465_s10  ;;  %s4577_s17 = smov 88  }
  0x16   : > { %s3913_s12 = sshll.u32 %s249_s11, 2  ;;  %s2338_s11 = smul.u32 144, %s4555_s18 }
  0x17   : > { %s4672_s15 = scalar_lea.vmem %s7442_s0, %s3913_s12  ;;  %s4578_s25 = smov 64  }
  0x18   : > { %v4675_v6 = vld [vmem:[%s4672_s15] sm:$0xff]   ;;  %v4678_v7 = vld [vmem:[%s4672_s15 + $0x8] sm:$0xff]   ;;  %v4686_v9 = vld [vmem:[%s4672_s15 + $0x10] sm:$0xff]   ;;  %s4579_s26 = smov 80   ;;  %s4580_s27 = smov 72  }
  0x19   : > { %v353_v11 = vshrl.u32 %v4675_v6, 16  ;;  %v355_v12 = vshll.u32 %v4675_v6, 16  ;;  %v360_v13 = vshll.u32 %v4678_v7, 16  ;;  %v364_v14 = vshrl.u32 %v4678_v7, 16  ;;  %4224 = vmatprep.mubr.msk.bf16.mxu1 %vm447_vm1, %v4675_v6  ;;  %v4701_v16 = vld [vmem:[%s4672_s15 + $0x18] sm:$0xff]   ;;  %v4707_v18 = vld [vmem:[%s4672_s15 + $0x20] sm:$0xff]  }
  0x1a   : > { %v4696_v15 = vshll.u32 %v4686_v9, 16  ;;  %4225 = vmatmul.mubr.msk.bf16.vlgmr.msra.gmra.mxu1 %vm447_vm1, %v4678_v7  ;;  %v4704_v17 = vshrl.u32 %v4686_v9, 16  ;;  %v4714_v21 = vld [vmem:[%s4672_s15 + $0x28] sm:$0xff]   ;;  %v4718_v23 = vshll.u32 %v4701_v16, 16  ;;  %v4726_v27 = vshll.u32 %v4707_v18, 16  ;;  %v4751_v38 = vld [vmem:[%s4672_s15 + $0x30] sm:$0xff]  }
  0x1b   : > { %v357_v19 = vrot.slane %v355_v12, 1  ;;  %v362_v20 = vrot.slane %v360_v13, 1  ;;  %4228 = vmatprep.mubr.msk.bf16.mxu1 %vm447_vm1, %v4686_v9  ;;  %4275 = vmatpush3.bf16.msra.mxu1 %v1009_v10  ;;  %v4731_v30 = vshrl.u32 %v4701_v16, 16  ;;  %v4736_v33 = vshrl.u32 %v4707_v18, 16  ;;  %v4760_v42 = vld [vmem:[%s4672_s15 + $0x38] sm:$0xff]   ;;  %v4781_v49 = vld [vmem:[%s4672_s15 + $0x40] sm:$0xff]  }
  0x1c   : > { %v370_v22 = vrot.slane %v4696_v15, 1  ;;  %4461 = vmatprep.subr.msk.bf16.mxu1 %vm7448_vm0, %v4683_v8  ;;  %v378_v29 = vrot.slane %v4718_v23, 1  ;;  %v4739_v34 = vshll.u32 %v4714_v21, 16  ;;  %v386_v37 = vrot.slane %v4726_v27, 1  ;;  %v4784_v50 = vld [vmem:[%s4672_s15 + $0x48] sm:$0xff]   ;;  %v4806_v58 = vld [vmem:[%s4672_s15 + $0x50] sm:$0xff]  }
  0x1d   : > { %v358_v24 = vor.u32 %v357_v19, %v353_v11  ;;  %v366_v25 = vor.u32 %v364_v14, %v362_v20  ;;  %v4767_v43 = vshll.u32 %v4751_v38, 16  ;;  %v4771_v45 = vshrl.u32 %v4714_v21, 16  ;;  %v4812_v60 = vld [vmem:[%s4672_s15 + $0x58] sm:$0xf]  ;;  %s3914_s30 = sshll.u32 %s4663_s8, 1  ;;  %s3915_s6 = sshll.u32 %s8008_s19, 2 }
  0x1e   : > { %v374_v28 = vor.u32 %v4704_v17, %v370_v22  ;;  %v382_v39 = vor.u32 %v4731_v30, %v378_v29  ;;  %v390_v40 = vor.u32 %v4736_v33, %v386_v37  ;;  %v394_v41 = vrot.slane %v4739_v34, 1  ;;  %s258_s7 = sadd.s32 %s3915_s6, %s3914_s30 }
  0x1f   : > { %v363_v31 = vsel %vm351_vm2, %v358_v24, %v362_v20  ;;  %v371_v32 = vsel %vm351_vm2, %v366_v25, %v370_v22  ;;  %v4774_v46 = vshrl.u32 %v4751_v38, 16  ;;  %v4778_v48 = vshll.u32 %v4760_v42, 16  ;;  %s3916_s9 = sshll.u32 %s258_s7, 3 }
  0x20   : > { %4198 = vmatprep.mubr.msk.bf16.mxu0 %vm447_vm1, %v363_v31  ;;  %v379_v36 = vsel %vm351_vm2, %v374_v28, %v378_v29  ;;  %v387_v44 = vsel %vm351_vm2, %v382_v39, %v386_v37  ;;  %v395_v47 = vsel %vm351_vm2, %v390_v40, %v394_v41  ;;  %v402_v51 = vrot.slane %v4767_v43, 1  ;;  %s260_s18 = scalar_lea.vmem %s7447_s5, %s3916_s9 }
  0x21   : > { %4199 = vmatmul.mubr.msk.bf16.vlgmr.msra.gmra.mxu0 %vm447_vm1, %v371_v32  ;;  %v398_v52 = vor.u32 %v4771_v45, %v394_v41  ;;  %v410_v54 = vrot.slane %v4778_v48, 1  ;;  %v4795_v55 = vshrl.u32 %v4760_v42, 16  ;;  %v4798_v56 = vshll.u32 %v4781_v49, 16 }
  0x22   : > { %4249 = vmatpush3.bf16.msra.mxu0 %v834_v26  ;;  %4202 = vmatprep.mubr.msk.bf16.mxu0 %vm447_vm1, %v379_v36  ;;  %v406_v53 = vor.u32 %v4774_v46, %v402_v51  ;;  %v4803_v57 = vshll.u32 %v4784_v50, 16  ;;  %v4809_v59 = vshrl.u32 %v4781_v49, 16  ;;  %v1169_v61 = vrot.slane %v360_v13, 2 }
  0x23   : > { %4229 = vmatmul.mubr.msk.bf16.gmra.mxu1 %vm447_vm1, %v4701_v16  ;;  %4460 = vmatprep.subr.msk.bf16.mxu0 %vm7448_vm0, %v4744_v35  ;;  %v403_v62 = vsel %vm351_vm2, %v398_v52, %v402_v51  ;;  %v414_v0 = vor.u32 %v4795_v55, %v410_v54  ;;  %v418_v1 = vrot.slane %v4798_v56, 1  ;;  %v4821_v2 = vshrl.u32 %v4784_v50, 16 }
  0x24   : > { %4232 = vmatprep.mubr.msk.bf16.mxu1 %vm447_vm1, %v4707_v18  ;;  %v411_v63 = vsel %vm351_vm2, %v406_v53, %v410_v54  ;;  %v426_v3 = vrot.slane %v4803_v57, 1  ;;  %v4825_v4 = vshll.u32 %v4806_v58, 16  ;;  %v4829_v5 = vcombine.low %v4812_v60, %v4812_v60 }
  0x25   : > { %v4832_v10 = vshrl.u32 %v4806_v58, 16  ;;  %v422_v11 = vor.u32 %v4809_v59, %v418_v1  ;;  %v1168_v12 = vrot.slane %v364_v14, 1  ;;  %v1171_v13 = vrot.slane %v4704_v17, 1 }
  0x26   : > { %v1172_v19 = vrot.slane %v4696_v15, 2  ;;  %v1175_v20 = vrot.slane %v4731_v30, 1  ;;  %v1176_v22 = vrot.slane %v4718_v23, 2  ;;  %v1418_v24 = vrot.slane %v4678_v7, 2 }
  0x27   : > { %v1419_v25 = vrot.slane %v4686_v9, 2  ;;  %v419_v26 = vsel %vm351_vm2, %v414_v0, %v418_v1  ;;  %v1170_v14 = vor.u32 %v1169_v61, %v1168_v12  ;;  %v1421_v29 = vrot.slane %v4701_v16, 2 }
  0x28   : > { %v1173_v28 = vor.u32 %v1172_v19, %v1171_v13  ;;  %v1177_v31 = vor.u32 %v1176_v22, %v1175_v20  ;;  %v1179_v36 = vrot.slane %v4736_v33, 1  ;;  %v1180_v37 = vrot.slane %v4726_v27, 2 }
  0x29   : > { %4203 = vmatmul.mubr.msk.bf16.gmra.mxu0 %vm447_vm1, %v387_v44  ;;  %v4852_v32 = vsel %vm7451_vm4, %v1418_v24, %v1419_v25  ;;  %v4862_v40 = vsel %vm7451_vm4, %v1419_v25, %v1421_v29  ;;  %v1183_v41 = vrot.slane %v4771_v45, 1  ;;  %v1184_v44 = vrot.slane %v4739_v34, 2 }
  0x2a   : > { %4206 = vmatprep.mubr.msk.bf16.mxu0 %vm447_vm1, %v395_v47  ;;  %v4857_v39 = vsel %vm1167_vm3, %v1170_v14, %v1173_v28  ;;  %v427_v47 = vsel %vm351_vm2, %v422_v11, %v426_v3  ;;  %v440_v51 = vshll.u32 %v4829_v5, 16  ;;  %v4869_v52 = vsel %vm1167_vm3, %v1173_v28, %v1177_v31 }
  0x2b   : > { %4233 = vmatmul.mubr.msk.bf16.gmra.mxu1 %vm447_vm1, %v4714_v21  ;;  %v1181_v53 = vor.u32 %v1180_v37, %v1179_v36  ;;  %v1185_v54 = vor.u32 %v1184_v44, %v1183_v41  ;;  %v1187_v61 = vrot.slane %v4774_v46, 1  ;;  %v1192_v1 = vrot.slane %v4778_v48, 2 }
  0x2c   : > { %4236 = vmatprep.mubr.msk.bf16.mxu1 %vm447_vm1, %v4751_v38  ;;  %v430_v11 = vor.u32 %v4821_v2, %v426_v3  ;;  %v434_v12 = vrot.slane %v4825_v4, 1  ;;  %v1195_v22 = vrot.slane %v4809_v59, 1  ;;  %v1196_v24 = vrot.slane %v4798_v56, 2 }
  0x2d   : > { %v4875_v0 = vsel %vm1167_vm3, %v1177_v31, %v1181_v53  ;;  %v4882_v13 = vsel %vm1167_vm3, %v1181_v53, %v1185_v54  ;;  %v1199_v25 = vrot.slane %v4821_v2, 1  ;;  %v1200_v28 = vrot.slane %v4803_v57, 2 }
  0x2e   : > { %v438_v3 = vor.u32 %v4832_v10, %v434_v12  ;;  %v775_v31 = vrot.slane %v4678_v7, 1  ;;  %v1197_v37 = vor.u32 %v1196_v24, %v1195_v22  ;;  %v777_v41 = vrot.slane %v4686_v9, 1 }
  0x2f   : > { %v1201_v44 = vor.u32 %v1200_v28, %v1199_v25  ;;  %v435_v53 = vsel %vm351_vm2, %v430_v11, %v434_v12  ;;  %v781_v22 = vrot.slane %v4707_v18, 1  ;;  %v1478_v24 = vsel %vm7448_vm0, %v4683_v8, 0 }
  0x30   : > { %v1803_v25 = vrot.slane %v4704_v17, 2  ;;  %v1815_v17 = vrot.slane %v4739_v34, 3 }
  0x31   : > { %4207 = vmatmul.mubr.msk.bf16.gmra.mxu0 %vm447_vm1, %v403_v62  ;;  %v1188_v62 = vrot.slane %v4767_v43, 2 }
  0x32   : > { %4210 = vmatprep.mubr.msk.bf16.mxu0 %vm447_vm1, %v411_v63  ;;  %v1191_v63 = vrot.slane %v4795_v55, 1 }
  0x33   : > { %4237 = vmatmul.mubr.msk.bf16.gmra.mxu1 %vm447_vm1, %v4760_v42  ;;  %v1189_v19 = vor.u32 %v1188_v62, %v1187_v61  ;;  %v779_v62 = vrot.slane %v4701_v16, 1 }
  0x34   : > { %4240 = vmatprep.mubr.msk.bf16.mxu1 %vm447_vm1, %v4781_v49  ;;  %v1193_v20 = vor.u32 %v1192_v1, %v1191_v63  ;;  %v4912_v63 = vsel %vm1167_vm3, %v1197_v37, %v1201_v44 }
  0x35   : > { %v4892_v14 = vsel %vm1167_vm3, %v1185_v54, %v1189_v19  ;;  %v774_v54 = vrot.slane %v4675_v6, 1  ;;  %v778_v6 = vsel %vm7450_vm5, %v775_v31, %v777_v41  ;;  %v782_v28 = vsel %vm7450_vm5, %v779_v62, %v781_v22 }
  0x36   : > { %v4899_v36 = vsel %vm1167_vm3, %v1189_v19, %v1193_v20  ;;  %v4907_v61 = vsel %vm1167_vm3, %v1193_v20, %v1197_v37  ;;  %v444_v19 = vshrl.u32 %v4829_v5, 16  ;;  %v780_v20 = vsel %vm7450_vm5, %v777_v41, %v779_v62 }
  0x37   : > { %v776_v12 = vsel %vm7450_vm5, %v774_v54, %v775_v31  ;;  %v1804_v37 = vrot.slane %v4696_v15, 3  ;;  %v1810_v31 = vrot.slane %v4736_v33, 2  ;;  %v1811_v41 = vrot.slane %v4726_v27, 3 }
  0x38   : > { %v1819_v15 = vrot.slane %v4767_v43, 3  ;;  %v1826_v33 = vrot.slane %v4809_v59, 2  ;;  %v1827_v27 = vrot.slane %v4798_v56, 3  ;;  %v1830_v43 = vrot.slane %v4821_v2, 2 }
  0x39   : > { %4211 = vmatmul.mubr.msk.bf16.gmra.mxu0 %vm447_vm1, %v419_v26  ;;  %v442_v26 = vrot.slane %v440_v51, 1  ;;  %v1204_v51 = vrot.slane %v4825_v4, 2  ;;  %v1805_v8 = vor.u32 %v1804_v37, %v1803_v25  ;;  %v1812_v54 = vor.u32 %v1811_v41, %v1810_v31  ;;  %v4009_v41 = vld [vmem:[%s7443_s1 + $0x18] sm:$0xf] }
  0x3a   : > { %4214 = vmatprep.mubr.msk.bf16.mxu0 %vm447_vm1, %v427_v47  ;;  %v1203_v47 = vrot.slane %v4832_v10, 1  ;;  %v1828_v59 = vor.u32 %v1827_v27, %v1826_v33  ;;  %v1831_v62 = vrot.slane %v4803_v57, 3  ;;  %v1834_v2 = vrot.slane %v4832_v10, 2 }
  0x3b   : > { %4241 = vmatmul.mubr.msk.bf16.gmra.mxu1 %vm447_vm1, %v4784_v50  ;;  %v443_v7 = vsel %vm351_vm2, %v438_v3, %v442_v26  ;;  %v446_v3 = vor.u32 %v444_v19, %v442_v26  ;;  %v1818_v26 = vrot.slane %v4774_v46, 2  ;;  %v783_v25 = vrot.slane %v4714_v21, 1 }
  0x3c   : > { %4244 = vmatprep.mubr.msk.bf16.mxu1 %vm447_vm1, %v4806_v58  ;;  %v4914_v1 = vor.u32 %v1204_v51, %v1203_v47  ;;  %v1807_v47 = vrot.slane %v4718_v23, 3  ;;  %v1814_v51 = vrot.slane %v4771_v45, 2  ;;  %v1823_v23 = vrot.slane %v4778_v48, 3  ;;  %v4959_v48 = vld [vmem:[%s7443_s1 + $0x1c] sm:$0xf] }
  0x3d   : > { %v1820_v46 = vor.u32 %v1819_v15, %v1818_v26  ;;  %v1832_v57 = vor.u32 %v1831_v62, %v1830_v43  ;;  %v784_v31 = vsel %vm7450_vm5, %v781_v22, %v783_v25  ;;  %v789_v22 = vrot.slane %v4781_v49, 1  ;;  %v286_v15 = vld [vmem:[%s4672_s15 + $0x60] sm:$0xf] }
  0x3e   : > { %v4922_v11 = vsel %vm1167_vm3, %v1201_v44, %v4914_v1  ;;  %v1806_v44 = vrot.slane %v4731_v30, 2  ;;  %v1822_v30 = vrot.slane %v4795_v55, 2  ;;  %v795_v43 = vrot.slane %v4829_v5, 1 }
  0x3f   : > { %v1892_v62 = vsel %vm7448_vm0, %v4959_v48, 0 }
  0x40   : > { %v1824_v56 = vor.u32 %v1823_v23, %v1822_v30  ;;  %v3969_v23 = vcombine.low %v286_v15, %v286_v15 }
  0x41   : > { %4215 = vmatmul.mubr.msk.bf16.gmra.mxu0 %vm447_vm1, %v435_v53  ;;  %v1808_v53 = vor.u32 %v1807_v47, %v1806_v44  ;;  %v785_v44 = vrot.slane %v4751_v38, 1 }
  0x42   : > { %4218 = vmatprep.mubr.msk.bf16.mxu0 %vm447_vm1, %v443_v7  ;;  %v1816_v7 = vor.u32 %v1815_v17, %v1814_v51  ;;  %v4977_v37 = vsel %vm1802_vm6, %v1824_v56, %v1828_v59  ;;  %v2049_v17 = vrot.slane %v4701_v16, 3  ;;  %v997_v27 = vrot.slane %v3969_v23, 1 }
  0x43   : > { %4245 = vmatmul.mubr.msk.bf16.gmra.mxu1 %vm447_vm1, %v4829_v5  ;;  %v4949_v45 = vsel %vm1802_vm6, %v1805_v8, %v1808_v53  ;;  %v4952_v34 = vsel %vm1802_vm6, %v1808_v53, %v1812_v54  ;;  %v786_v51 = vsel %vm7450_vm5, %v783_v25, %v785_v44  ;;  %v285_v53 = vld [vmem:[%s4672_s15 + $0x5c] sm:$0xf]  ;;  %v2057_v16 = vrot.slane %v4760_v42, 3 }
  0x44   : > { %4276 = vmatprep.mubr.msk.bf16.mxu1 %vm447_vm1, %v778_v6  ;;  %v4962_v55 = vsel %vm1802_vm6, %v1812_v54, %v1816_v7  ;;  %v4967_v19 = vsel %vm1802_vm6, %v1816_v7, %v1820_v46  ;;  %v793_v54 = vrot.slane %v4806_v58, 1 }
  0x49   : > { %4219 = vmatmul.mubr.msk.bf16.gmra.mxu0 %vm447_vm1, %v446_v3  ;;  %v4974_v3 = vsel %vm1802_vm6, %v1820_v46, %v1824_v56  ;;  %v796_v56 = vsel %vm7450_vm5, %v793_v54, %v795_v43 }
  0x4a   : > { %4250 = vmatprep.mubr.msk.bf16.mxu0 %vm447_vm1, %v776_v12  ;;  %v1835_v12 = vrot.slane %v4825_v4, 3  ;;  %v4985_v4 = vsel %vm1802_vm6, %v1828_v59, %v1832_v57  ;;  %v1423_v59 = vrot.slane %v4707_v18, 2 }
  0x4b   : > { %4277 = vmatmul.mubr.msk.bf16.vlgmr.msra.gmra.mxu1 %vm447_vm1, %v780_v20 }
  0x4c   : > { %4280 = vmatprep.mubr.msk.bf16.mxu1 %vm447_vm1, %v782_v28  ;;  %4327 = vmatpush3.bf16.msra.mxu1 %v1478_v24  ;;  %v4982_v10 = vor.u32 %v1835_v12, %v1834_v2  ;;  %v1262_v24 = vsel %vm7448_vm0, %v4744_v35, 0  ;;  %v787_v35 = vrot.slane %v4760_v42, 1  ;;  %v5050_v5 = vsel %vm7451_vm4, %v1421_v29, %v1423_v59  ;;  %v287_v12 = vld [vmem:[%s4672_s15 + $0x64] sm:$0xf] }
  0x4d   : > { %4463 = vmatprep.subr.msk.bf16.mxu1 %vm7448_vm0, %v4959_v48  ;;  %v1427_v2 = vrot.slane %v4751_v38, 2  ;;  %v1647_v29 = vsel %vm7448_vm0, %v4009_v41, 0 }
  0x4e   : > { %v4991_v47 = vsel %vm1802_vm6, %v1832_v57, %v4982_v10  ;;  %v788_v8 = vsel %vm7450_vm5, %v785_v44, %v787_v35  ;;  %v5073_v57 = vcombine.low %v286_v15, %v287_v12  ;;  %v5078_v44 = vld [vmem:[%s4672_s15 + $0x68] sm:$0x3f]   ;;  %s4575_s15 = smov 104  }
  0x51   : > { %4251 = vmatmul.mubr.msk.bf16.vlgmr.msra.gmra.mxu0 %vm447_vm1, %v778_v6  ;;  %v790_v6 = vsel %vm7450_vm5, %v787_v35, %v789_v22 }
  0x52   : > { %4301 = vmatpush3.bf16.msra.mxu0 %v1262_v24  ;;  %4254 = vmatprep.mubr.msk.bf16.mxu0 %vm447_vm1, %v780_v20  ;;  %v2048_v20 = vrot.slane %v4686_v9, 3  ;;  %v5023_v9 = vcombine.low %v4812_v60, %v285_v53  ;;  %v1429_v24 = vrot.slane %v4760_v42, 2  ;;  %v1220_v53 = vshll.u32 %v5073_v57, 16 }
  0x53   : > { %4281 = vmatmul.mubr.msk.bf16.gmra.mxu1 %vm447_vm1, %v784_v31  ;;  %4462 = vmatprep.subr.msk.bf16.mxu0 %vm7448_vm0, %v4009_v41  ;;  %v2069_v41 = vrot.slane %v5078_v44, 3  ;;  %v2059_v42 = vrot.slane %v4781_v49, 3 }
  0x54   : > { %4284 = vmatprep.mubr.msk.bf16.mxu1 %vm447_vm1, %v786_v51  ;;  %v5015_v26 = vsel %vm7449_vm7, %v2048_v20, %v2049_v17  ;;  %v995_v33 = vrot.slane %v5023_v9, 1  ;;  %v1211_v20 = vshll.u32 %v5023_v9, 16 }
  0x56   : > { %v996_v46 = vsel %vm7450_vm5, %v793_v54, %v995_v33  ;;  %v998_v60 = vsel %vm7450_vm5, %v995_v33, %v997_v27 }
  0x59   : > { %4255 = vmatmul.mubr.msk.bf16.gmra.mxu0 %vm447_vm1, %v782_v28  ;;  %v791_v28 = vrot.slane %v4784_v50, 1 }
  0x5a   : > { %4258 = vmatprep.mubr.msk.bf16.mxu0 %vm447_vm1, %v784_v31  ;;  %v2067_v31 = vrot.slane %v5073_v57, 3 }
  0x5b   : > { %4285 = vmatmul.mubr.msk.bf16.gmra.mxu1 %vm447_vm1, %v788_v8  ;;  %v792_v30 = vsel %vm7450_vm5, %v789_v22, %v791_v28  ;;  %v794_v7 = vsel %vm7450_vm5, %v791_v28, %v793_v54  ;;  %v1433_v22 = vrot.slane %v4784_v50, 2  ;;  %v1217_v28 = vshrl.u32 %v5073_v57, 16 }
  0x5c   : > { %4288 = vmatprep.mubr.msk.bf16.mxu1 %vm447_vm1, %v790_v6  ;;  %v1437_v54 = vrot.slane %v5023_v9, 2 }
  0x61   : > { %4259 = vmatmul.mubr.msk.bf16.gmra.mxu0 %vm447_vm1, %v786_v51  ;;  %v1430_v51 = vsel %vm7451_vm4, %v1427_v2, %v1429_v24 }
  0x62   : > { %4262 = vmatprep.mubr.msk.bf16.mxu0 %vm447_vm1, %v788_v8  ;;  %v1435_v8 = vrot.slane %v4806_v58, 2 }
  0x63   : > { %4289 = vmatmul.mubr.msk.bf16.gmra.mxu1 %vm447_vm1, %v792_v30 }
  0x64   : > { %4292 = vmatprep.mubr.msk.bf16.mxu1 %vm447_vm1, %v794_v7  ;;  %v1438_v23 = vsel %vm7451_vm4, %v1435_v8, %v1437_v54 }
  0x69   : > { %4263 = vmatmul.mubr.msk.bf16.gmra.mxu0 %vm447_vm1, %v790_v6 }
  0x6a   : > { %4266 = vmatprep.mubr.msk.bf16.mxu0 %vm447_vm1, %v792_v30  ;;  %v1213_v30 = vrot.slane %v1211_v20, 2 }
  0x6b   : > { %4293 = vmatmul.mubr.msk.bf16.gmra.mxu1 %vm447_vm1, %v996_v46 }
  0x6c   : > { %4296 = vmatprep.mubr.msk.bf16.mxu1 %vm447_vm1, %v998_v60 }
  0x71   : > { %4267 = vmatmul.mubr.msk.bf16.gmra.mxu0 %vm447_vm1, %v794_v7  ;;  %v1219_v7 = vrot.slane %v1217_v28, 1 }
  0x72   : > { %4270 = vmatprep.mubr.msk.bf16.mxu0 %vm447_vm1, %v796_v56 }
  0x73   : > { %4297 = vmatmul.mubr.msk.bf16.gmra.mxu1 %vm447_vm1, %v997_v27 }
  0x74   : > { %4328 = vmatprep.mubr.msk.bf16.mxu1 %vm447_vm1, %v4852_v32  ;;  %v1425_v32 = vrot.slane %v4714_v21, 2 }
  0x76   : > { %v1426_v48 = vsel %vm7451_vm4, %v1423_v59, %v1425_v32  ;;  %v1428_v25 = vsel %vm7451_vm4, %v1425_v32, %v1427_v2  ;;  %v2051_v2 = vrot.slane %v4707_v18, 3  ;;  %v2055_v18 = vrot.slane %v4751_v38, 3 }
  0x79   : > { %4271 = vmatmul.mubr.msk.bf16.gmra.mxu0 %vm447_vm1, %v795_v43 }
  0x7a   : > { %4302 = vmatprep.mubr.msk.bf16.mxu0 %vm447_vm1, %v4857_v39  ;;  %v4036_v39 = vld [vmem:[%s7443_s1 + $0x20] sm:$0xf] }
  0x7b   : > { %4329 = vmatmul.mubr.msk.bf16.vlgmr.msra.gmra.mxu1 %vm447_vm1, %v4862_v40 }
  0x7c   : > { %4332 = vmatprep.mubr.msk.bf16.mxu1 %vm447_vm1, %v5050_v5  ;;  %4379 = vmatpush3.bf16.msra.mxu1 %v1892_v62 }
  0x81   : > { %4303 = vmatmul.mubr.msk.bf16.vlgmr.msra.gmra.mxu0 %vm447_vm1, %v4869_v52  ;;  %v1431_v52 = vrot.slane %v4781_v49, 2 }
  0x82   : > { %4353 = vmatpush3.bf16.msra.mxu0 %v1647_v29  ;;  %4306 = vmatprep.mubr.msk.bf16.mxu0 %vm447_vm1, %v4875_v0  ;;  %v5090_v0 = vsel %vm7449_vm7, %v2067_v31, %v2069_v41  ;;  %v2053_v29 = vrot.slane %v4714_v21, 3 }
  0x83   : > { %4333 = vmatmul.mubr.msk.bf16.gmra.mxu1 %vm447_vm1, %v1426_v48  ;;  %4464 = vmatprep.subr.msk.bf16.mxu0 %vm7448_vm0, %v4036_v39  ;;  %v1432_v35 = vsel %vm7451_vm4, %v1429_v24, %v1431_v52  ;;  %v1434_v6 = vsel %vm7451_vm4, %v1431_v52, %v1433_v22 }
  0x84   : > { %4336 = vmatprep.mubr.msk.bf16.mxu1 %vm447_vm1, %v1428_v25 }
  0x89   : > { %4307 = vmatmul.mubr.msk.bf16.gmra.mxu0 %vm447_vm1, %v4882_v13  ;;  %v1436_v13 = vsel %vm7451_vm4, %v1433_v22, %v1435_v8 }
  0x8a   : > { %4310 = vmatprep.mubr.msk.bf16.mxu0 %vm447_vm1, %v4892_v14  ;;  %v1208_v14 = vshrl.u32 %v5023_v9, 16 }
  0x8b   : > { %4337 = vmatmul.mubr.msk.bf16.gmra.mxu1 %vm447_vm1, %v1430_v51 }
  0x8c   : > { %4340 = vmatprep.mubr.msk.bf16.mxu1 %vm447_vm1, %v1432_v35  ;;  %v1210_v15 = vrot.slane %v1208_v14, 1 }
  0x8e   : > { %v1214_v27 = vor.u32 %v1213_v30, %v1210_v15  ;;  %v2061_v15 = vrot.slane %v4784_v50, 3  ;;  %v2063_v50 = vrot.slane %v4806_v58, 3 }
  0x90   : > { %v1215_v60 = vsel %vm1167_vm3, %v4914_v1, %v1214_v27  ;;  %v1839_v1 = vrot.slane %v1211_v20, 3  ;;  %v2058_v20 = vsel %vm7449_vm7, %v2055_v18, %v2057_v16 }
  0x91   : > { %4311 = vmatmul.mubr.msk.bf16.gmra.mxu0 %vm447_vm1, %v4899_v36  ;;  %v1439_v36 = vrot.slane %v5073_v57, 2 }
  0x92   : > { %4314 = vmatprep.mubr.msk.bf16.mxu0 %vm447_vm1, %v4907_v61  ;;  %v1222_v61 = vrot.slane %v1220_v53, 2 }
  0x93   : > { %4341 = vmatmul.mubr.msk.bf16.gmra.mxu1 %vm447_vm1, %v1434_v6  ;;  %v1440_v33 = vsel %vm7451_vm4, %v1437_v54, %v1439_v36 }
  0x94   : > { %4344 = vmatprep.mubr.msk.bf16.mxu1 %vm447_vm1, %v1436_v13  ;;  %v1223_v46 = vor.u32 %v1222_v61, %v1219_v7 }
  0x96   : > { %v1224_v43 = vsel %vm1167_vm3, %v1214_v27, %v1223_v46 }
  0x99   : > { %4315 = vmatmul.mubr.msk.bf16.gmra.mxu0 %vm447_vm1, %v4912_v63  ;;  %v2108_v63 = vsel %vm7448_vm0, %v4036_v39, 0 }
  0x9a   : > { %4318 = vmatprep.mubr.msk.bf16.mxu0 %vm447_vm1, %v4922_v11 }
  0x9b   : > { %4345 = vmatmul.mubr.msk.bf16.gmra.mxu1 %vm447_vm1, %v1438_v23 }
  0x9c   : > { %4348 = vmatprep.mubr.msk.bf16.mxu1 %vm447_vm1, %v1440_v33 }
  0xa1   : > { %4319 = vmatmul.mubr.msk.bf16.gmra.mxu0 %vm447_vm1, %v1215_v60  ;;  %v2062_v60 = vsel %vm7449_vm7, %v2059_v42, %v2061_v15 }
  0xa2   : > { %4322 = vmatprep.mubr.msk.bf16.mxu0 %vm447_vm1, %v1224_v43 }
  0xa3   : > { %4349 = vmatmul.mubr.msk.bf16.gmra.mxu1 %vm447_vm1, %v1439_v36 }
  0xa4   : > { %4380 = vmatprep.mubr.msk.bf16.mxu1 %vm447_vm1, %v4949_v45  ;;  %v1847_v45 = vshrl.u32 %v5078_v44, 16 }
  0xa6   : > { %v1849_v56 = vrot.slane %v1847_v45, 2 }
  0xa9   : > { %4323 = vmatmul.mubr.msk.bf16.gmra.mxu0 %vm447_vm1, %v1223_v46 }
  0xaa   : > { %4354 = vmatprep.mubr.msk.bf16.mxu0 %vm447_vm1, %v4862_v40  ;;  %v1838_v40 = vrot.slane %v1208_v14, 2 }
  0xab   : > { %4381 = vmatmul.mubr.msk.bf16.vlgmr.msra.gmra.mxu1 %vm447_vm1, %v4952_v34  ;;  %v1850_v34 = vshll.u32 %v5078_v44, 16 }
  0xac   : > { %4384 = vmatprep.mubr.msk.bf16.mxu1 %vm447_vm1, %v4962_v55  ;;  %v1840_v11 = vor.u32 %v1839_v1, %v1838_v40  ;;  %v1842_v55 = vrot.slane %v1217_v28, 2 }
  0xad   : > { %v1852_v59 = vrot.slane %v1850_v34, 3 }
  0xb1   : > { %4355 = vmatmul.mubr.msk.bf16.vlgmr.msra.gmra.mxu0 %vm447_vm1, %v5050_v5 }
  0xb2   : > { %4405 = vmatpush3.bf16.msra.mxu0 %v2108_v63  ;;  %4358 = vmatprep.mubr.msk.bf16.mxu0 %vm447_vm1, %v1426_v48  ;;  %v2052_v48 = vsel %vm7449_vm7, %v2049_v17, %v2051_v2 }
  0xb3   : > { %4385 = vmatmul.mubr.msk.bf16.gmra.mxu1 %vm447_vm1, %v4967_v19  ;;  %v1843_v19 = vrot.slane %v1220_v53, 3 }
  0xb4   : > { %4388 = vmatprep.mubr.msk.bf16.mxu1 %vm447_vm1, %v4974_v3  ;;  %v1841_v3 = vsel %vm1802_vm6, %v4982_v10, %v1840_v11  ;;  %v1638_v10 = vrot.slane %v5078_v44, 2 }
  0xb9   : > { %4359 = vmatmul.mubr.msk.bf16.gmra.mxu0 %vm447_vm1, %v1428_v25  ;;  %v2054_v25 = vsel %vm7449_vm7, %v2051_v2, %v2053_v29 }
  0xba   : > { %4362 = vmatprep.mubr.msk.bf16.mxu0 %vm447_vm1, %v1430_v51 }
  0xbb   : > { %4389 = vmatmul.mubr.msk.bf16.gmra.mxu1 %vm447_vm1, %v4977_v37  ;;  %v1844_v37 = vor.u32 %v1843_v19, %v1842_v55 }
  0xbc   : > { %4392 = vmatprep.mubr.msk.bf16.mxu1 %vm447_vm1, %v4985_v4  ;;  %v1853_v4 = vor.u32 %v1852_v59, %v1849_v56 }
  0xbd   : > { %v1845_v5 = vsel %vm1802_vm6, %v1840_v11, %v1844_v37  ;;  %v2065_v11 = vrot.slane %v5023_v9, 3 }
  0xbe   : > { %v1854_v62 = vsel %vm1802_vm6, %v1844_v37, %v1853_v4 }
  0xbf   : > { %v2066_v37 = vsel %vm7449_vm7, %v2063_v50, %v2065_v11 }
  0xc1   : > { %4363 = vmatmul.mubr.msk.bf16.gmra.mxu0 %vm447_vm1, %v1432_v35 }
  0xc2   : > { %4366 = vmatprep.mubr.msk.bf16.mxu0 %vm447_vm1, %v1434_v6  ;;  %v2056_v6 = vsel %vm7449_vm7, %v2053_v29, %v2055_v18 }
  0xc3   : > { %4393 = vmatmul.mubr.msk.bf16.gmra.mxu1 %vm447_vm1, %v4991_v47  ;;  %v1639_v47 = vsel %vm7451_vm4, %v1439_v36, %v1638_v10 }
  0xc4   : > { %4396 = vmatprep.mubr.msk.bf16.mxu1 %vm447_vm1, %v1841_v3  ;;  %v2064_v3 = vsel %vm7449_vm7, %v2061_v15, %v2063_v50 }
  0xc9   : > { %4367 = vmatmul.mubr.msk.bf16.gmra.mxu0 %vm447_vm1, %v1436_v13 }
  0xca   : > { %4370 = vmatprep.mubr.msk.bf16.mxu0 %vm447_vm1, %v1438_v23 }
  0xcb   : > { %4397 = vmatmul.mubr.msk.bf16.gmra.mxu1 %vm447_vm1, %v1845_v5 }
  0xcc   : > { %4400 = vmatprep.mubr.msk.bf16.mxu1 %vm447_vm1, %v1854_v62 }
  0xd1   : > { %4371 = vmatmul.mubr.msk.bf16.gmra.mxu0 %vm447_vm1, %v1440_v33  ;;  %v2060_v33 = vsel %vm7449_vm7, %v2057_v16, %v2059_v42 }
  0xd2   : > { %4374 = vmatprep.mubr.msk.bf16.mxu0 %vm447_vm1, %v1639_v47 }
  0xd3   : > { %4401 = vmatmul.mubr.msk.bf16.gmra.mxu1 %vm447_vm1, %v1853_v4 }
  0xd9   : > { %4375 = vmatmul.mubr.msk.bf16.gmra.mxu0 %vm447_vm1, %v1638_v10 }
  0xda   : > { %4406 = vmatprep.mubr.msk.bf16.mxu0 %vm447_vm1, %v5015_v26  ;;  %v4226_v32 = vpop.f32.mrf.mxu1 }
  0xdc   : > { %v677_v12 = vpop.f32.mrf.mxu1 }
  0xde   : > { %v4227_v39 = vpop.f32.mrf.mxu1 }
  0xe0   : > { %v5182_v24 = vpop.f32.mrf.mxu1 }
  0xe1   : > { %v4200_v52 = vpop.f32.mrf.mxu0  ;;  %4407 = vmatmul.mubr.msk.bf16.vlgmr.msra.gmra.mxu0 %vm447_vm1, %v2052_v48 }
  0xe2   : > { %v5185_v51 = vadd.f32 %v4226_v32, %v4200_v52  ;;  %4410 = vmatprep.mubr.msk.bf16.mxu0 %vm447_vm1, %v2054_v25 }
  0xe3   : > { %v522_v21 = vpop.f32.mrf.mxu0  ;;  %v4230_v26 = vpop.f32.mrf.mxu1 }
  0xe4   : > { %v5190_v35 = vadd.f32 %v677_v12, %v522_v21  ;;  %v2068_v12 = vsel %vm7449_vm7, %v2065_v11, %v2067_v31 }
  0xe5   : > { %v4201_v17 = vpop.f32.mrf.mxu0  ;;  %v693_v22 = vpop.f32.mrf.mxu1 }
  0xe6   : > { %v5192_v8 = vadd.f32 %v4227_v39, %v4201_v17 }
  0xe7   : > { %v5195_v13 = vpop.f32.mrf.mxu0  ;;  %v4231_v14 = vpop.f32.mrf.mxu1 }
  0xe9   : > { %v4204_v28 = vpop.f32.mrf.mxu0  ;;  %4411 = vmatmul.mubr.msk.bf16.gmra.mxu0 %vm447_vm1, %v2056_v6  ;;  %v5199_v38 = vpop.f32.mrf.mxu1 }
  0xea   : > { %v5201_v53 = vadd.f32 %v4230_v26, %v4204_v28  ;;  %4414 = vmatprep.mubr.msk.bf16.mxu0 %vm447_vm1, %v2058_v20  ;;  %v4532_v26 = vld [vmem:[%s7445_s3] sm:$0xff]  }
  0xeb   : > { %v538_v54 = vpop.f32.mrf.mxu0  ;;  %v4234_v36 = vpop.f32.mrf.mxu1  ;;  %4430 = vmatprep.subr.bf16.mxu1 %v4532_v26 }
  0xec   : > { %v5206_v30 = vadd.f32 %v693_v22, %v538_v54  ;;  %4431 = vmatpush3.bf16.msra.mxu1 %v4532_v26 }
  0xed   : > { %v4205_v7 = vpop.f32.mrf.mxu0  ;;  %v709_v61 = vpop.f32.mrf.mxu1 }
  0xee   : > { %v5208_v23 = vadd.f32 %v4231_v14, %v4205_v7 }
  0xef   : > { %v5211_v27 = vpop.f32.mrf.mxu0  ;;  %v4235_v46 = vpop.f32.mrf.mxu1 }
  0xf1   : > { %v4208_v43 = vpop.f32.mrf.mxu0  ;;  %4415 = vmatmul.mubr.msk.bf16.gmra.mxu0 %vm447_vm1, %v2060_v33  ;;  %v712_v49 = vpop.f32.mrf.mxu1 }
  0xf2   : > { %v5215_v63 = vadd.f32 %v4234_v36, %v4208_v43  ;;  %4418 = vmatprep.mubr.msk.bf16.mxu0 %vm447_vm1, %v2062_v60 }
  0xf3   : > { %v554_v40 = vpop.f32.mrf.mxu0  ;;  %v4238_v1 = vpop.f32.mrf.mxu1 }
  0xf4   : > { %v5220_v45 = vadd.f32 %v709_v61, %v554_v40 }
  0xf5   : > { %v4209_v34 = vpop.f32.mrf.mxu0  ;;  %v725_v55 = vpop.f32.mrf.mxu1 }
  0xf6   : > { %v5222_v19 = vadd.f32 %v4235_v46, %v4209_v34 }
  0xf7   : > { %v557_v56 = vpop.f32.mrf.mxu0  ;;  %v4239_v59 = vpop.f32.mrf.mxu1 }
  0xf8   : > { %v5226_v4 = vadd.f32 %v712_v49, %v557_v56 }
  0xf9   : > { %v4212_v5 = vpop.f32.mrf.mxu0  ;;  %4419 = vmatmul.mubr.msk.bf16.gmra.mxu0 %vm447_vm1, %v2064_v3  ;;  %v728_v58 = vpop.f32.mrf.mxu1  ;;  %v681_v3 = vadd.f32 %v5182_v24, %v5195_v13 }
  0xfa   : > { %v5229_v62 = vadd.f32 %v4238_v1, %v4212_v5  ;;  %4422 = vmatprep.mubr.msk.bf16.mxu0 %vm447_vm1, %v2066_v37 }
  0xfb   : > { %v570_v9 = vpop.f32.mrf.mxu0  ;;  %v4242_v10 = vpop.f32.mrf.mxu1 }
  0xfc   : > { %v5232_v47 = vadd.f32 %v725_v55, %v570_v9 }
  0xfd   : > { %v4213_v32 = vpop.f32.mrf.mxu0  ;;  %v741_v2 = vpop.f32.mrf.mxu1 }
  0xfe   : > { %v5234_v29 = vadd.f32 %v4239_v59, %v4213_v32 }
  0xff   : > { %v573_v48 = vpop.f32.mrf.mxu0  ;;  %v4243_v39 = vpop.f32.mrf.mxu1 }
 0x100   : > { %v5239_v25 = vadd.f32 %v728_v58, %v573_v48 }
 0x101   : > { %v4216_v52 = vpop.f32.mrf.mxu0  ;;  %4423 = vmatmul.mubr.msk.bf16.gmra.mxu0 %vm447_vm1, %v2068_v12  ;;  %v744_v18 = vpop.f32.mrf.mxu1 }
 0x102   : > { %v5242_v21 = vadd.f32 %v4242_v10, %v4216_v52  ;;  %4426 = vmatprep.mubr.msk.bf16.mxu0 %vm447_vm1, %v5090_v0 }
 0x103   : > { %v586_v57 = vpop.f32.mrf.mxu0  ;;  %v4246_v16 = vpop.f32.mrf.mxu1 }
 0x104   : > { %v5249_v31 = vadd.f32 %v741_v2, %v586_v57 }
 0x105   : > { %v4217_v17 = vpop.f32.mrf.mxu0  ;;  %v757_v22 = vpop.f32.mrf.mxu1 }
 0x106   : > { %v5251_v6 = vadd.f32 %v4243_v39, %v4217_v17  ;;  %v697_v39 = vadd.f32 %v5199_v38, %v5211_v27 }
 0x107   : > { %v589_v14 = vpop.f32.mrf.mxu0  ;;  %v4247_v20 = vpop.f32.mrf.mxu1 }
 0x108   : > { %v5253_v28 = vadd.f32 %v744_v18, %v589_v14 }
 0x109   : > { %v4220_v42 = vpop.f32.mrf.mxu0  ;;  %4427 = vmatmul.mubr.msk.bf16.gmra.mxu0 %vm447_vm1, %v2069_v41  ;;  %v760_v0 = vpop.f32.mrf.mxu1 }
 0x10a   : > { %v5258_v54 = vadd.f32 %v4246_v16, %v4220_v42 }
 0x10b   : > { %v602_v36 = vpop.f32.mrf.mxu0  ;;  %v4278_v15 = vpop.f32.mrf.mxu1 }
 0x10c   : > { %v5260_v7 = vadd.f32 %v757_v22, %v602_v36 }
 0x10d   : > { %v4221_v61 = vpop.f32.mrf.mxu0  ;;  %v1045_v33 = vpop.f32.mrf.mxu1 }
 0x10f   : > { %v605_v46 = vpop.f32.mrf.mxu0  ;;  %v4279_v60 = vpop.f32.mrf.mxu1 }
 0x110   : > { %v5262_v43 = vadd.f32 %v760_v0, %v605_v46 }
 0x111   : > { %v4252_v49 = vpop.f32.mrf.mxu0  ;;  %v1048_v50 = vpop.f32.mrf.mxu1 }
 0x112   : > { %v966_v40 = vadd.f32 %v4252_v49, %v5185_v51 }
 0x113   : > { %v870_v44 = vpop.f32.mrf.mxu0  ;;  %v4282_v1 = vpop.f32.mrf.mxu1 }
 0x114   : > { %v964_v41 = vadd.f32 %v870_v44, %v5190_v35  ;;  %v5266_v11 = vadd.f32 %v4278_v15, %v966_v40 }
 0x115   : > { %v4253_v34 = vpop.f32.mrf.mxu0  ;;  %v1061_v55 = vpop.f32.mrf.mxu1 }
 0x116   : > { %v967_v56 = vadd.f32 %v4253_v34, %v5192_v8  ;;  %v5271_v59 = vadd.f32 %v1045_v33, %v964_v41 }
 0x117   : > { %v873_v37 = vpop.f32.mrf.mxu0  ;;  %v4283_v5 = vpop.f32.mrf.mxu1 }
 0x118   : > { %v965_v58 = vadd.f32 %v873_v37, %v681_v3  ;;  %v5273_v9 = vadd.f32 %v4279_v60, %v967_v56 }
 0x119   : > { %v4256_v51 = vpop.f32.mrf.mxu0  ;;  %v1064_v10 = vpop.f32.mrf.mxu1 }
 0x11a   : > { %v970_v35 = vadd.f32 %v4256_v51, %v5201_v53  ;;  %v5276_v32 = vadd.f32 %v1048_v50, %v965_v58 }
 0x11b   : > { %v886_v2 = vpop.f32.mrf.mxu0  ;;  %v4286_v12 = vpop.f32.mrf.mxu1 }
 0x11c   : > { %v968_v48 = vadd.f32 %v886_v2, %v5206_v30  ;;  %v5279_v24 = vadd.f32 %v4282_v1, %v970_v35 }
 0x11d   : > { %v4257_v8 = vpop.f32.mrf.mxu0  ;;  %v1077_v13 = vpop.f32.mrf.mxu1 }
 0x11e   : > { %v971_v52 = vadd.f32 %v4257_v8, %v5208_v23  ;;  %v5284_v18 = vadd.f32 %v1061_v55, %v968_v48 }
 0x11f   : > { %v889_v26 = vpop.f32.mrf.mxu0  ;;  %v4287_v57 = vpop.f32.mrf.mxu1 }
 0x120   : > { %v969_v53 = vadd.f32 %v889_v26, %v697_v39  ;;  %v5286_v16 = vadd.f32 %v4283_v5, %v971_v52 }
 0x121   : > { %v4260_v17 = vpop.f32.mrf.mxu0  ;;  %v1080_v22 = vpop.f32.mrf.mxu1 }
 0x122   : > { %v974_v30 = vadd.f32 %v4260_v17, %v5215_v63  ;;  %v5289_v14 = vadd.f32 %v1064_v10, %v969_v53 }
 0x123   : > { %v902_v20 = vpop.f32.mrf.mxu0  ;;  %v4290_v42 = vpop.f32.mrf.mxu1 }
 0x124   : > { %v972_v0 = vadd.f32 %v902_v20, %v5220_v45  ;;  %v5292_v38 = vadd.f32 %v4286_v12, %v974_v30 }
 0x125   : > { %v4261_v23 = vpop.f32.mrf.mxu0  ;;  %v1093_v27 = vpop.f32.mrf.mxu1 }
 0x126   : > { %v975_v36 = vadd.f32 %v4261_v23, %v5222_v19  ;;  %v5295_v15 = vadd.f32 %v1077_v13, %v972_v0 }
 0x127   : > { %v905_v61 = vpop.f32.mrf.mxu0  ;;  %v4291_v33 = vpop.f32.mrf.mxu1 }
 0x128   : > { %v973_v46 = vadd.f32 %v905_v61, %v5226_v4  ;;  %v5298_v60 = vadd.f32 %v4287_v57, %v975_v36 }
 0x129   : > { %v4264_v63 = vpop.f32.mrf.mxu0  ;;  %v1096_v49 = vpop.f32.mrf.mxu1 }
 0x12a   : > { %v978_v50 = vadd.f32 %v4264_v63, %v5229_v62  ;;  %v5301_v40 = vadd.f32 %v1080_v22, %v973_v46 }
 0x12b   : > { %v918_v45 = vpop.f32.mrf.mxu0  ;;  %v4294_v44 = vpop.f32.mrf.mxu1 }
 0x12c   : > { %v976_v1 = vadd.f32 %v918_v45, %v5232_v47  ;;  %v5304_v41 = vadd.f32 %v4290_v42, %v978_v50 }
 0x12d   : > { %v4265_v19 = vpop.f32.mrf.mxu0  ;;  %v1109_v34 = vpop.f32.mrf.mxu1 }
 0x12e   : > { %v979_v55 = vadd.f32 %v4265_v19, %v5234_v29  ;;  %v5307_v3 = vadd.f32 %v1093_v27, %v976_v1 }
 0x12f   : > { %v921_v4 = vpop.f32.mrf.mxu0  ;;  %v4295_v56 = vpop.f32.mrf.mxu1 }
 0x130   : > { %v977_v37 = vadd.f32 %v921_v4, %v5239_v25  ;;  %v5310_v5 = vadd.f32 %v4291_v33, %v979_v55 }
 0x131   : > { %v4268_v62 = vpop.f32.mrf.mxu0  ;;  %v1112_v58 = vpop.f32.mrf.mxu1 }
 0x132   : > { %v982_v51 = vadd.f32 %v4268_v62, %v5242_v21  ;;  %v5313_v10 = vadd.f32 %v1096_v49, %v977_v37 }
 0x133   : > { %v934_v47 = vpop.f32.mrf.mxu0  ;;  %v4298_v35 = vpop.f32.mrf.mxu1 }
 0x134   : > { %v980_v2 = vadd.f32 %v934_v47, %v5249_v31  ;;  %v5316_v12 = vadd.f32 %v4294_v44, %v982_v51 }
 0x135   : > { %v4269_v29 = vpop.f32.mrf.mxu0  ;;  %v1125_v48 = vpop.f32.mrf.mxu1 }
 0x136   : > { %v983_v8 = vadd.f32 %v4269_v29, %v5251_v6  ;;  %v5319_v13 = vadd.f32 %v1109_v34, %v980_v2 }
 0x137   : > { %v937_v25 = vpop.f32.mrf.mxu0  ;;  %v4299_v39 = vpop.f32.mrf.mxu1 }
 0x138   : > { %v981_v52 = vadd.f32 %v937_v25, %v5253_v28  ;;  %v5322_v26 = vadd.f32 %v4295_v56, %v983_v8 }
 0x139   : > { %v4272_v21 = vpop.f32.mrf.mxu0  ;;  %v1128_v57 = vpop.f32.mrf.mxu1 }
 0x13a   : > { %v986_v53 = vadd.f32 %v4272_v21, %v5258_v54  ;;  %v5325_v17 = vadd.f32 %v1112_v58, %v981_v52 }
 0x13b   : > { %v950_v31 = vpop.f32.mrf.mxu0  ;;  %v4330_v22 = vpop.f32.mrf.mxu1 }
 0x13c   : > { %v984_v30 = vadd.f32 %v950_v31, %v5260_v7  ;;  %v5328_v20 = vadd.f32 %v4298_v35, %v986_v53 }
 0x13d   : > { %v4273_v6 = vpop.f32.mrf.mxu0  ;;  %v1514_v42 = vpop.f32.mrf.mxu1 }
 0x13e   : > { %v5330_v0 = vadd.f32 %v1125_v48, %v984_v30 }
 0x13f   : > { %v953_v23 = vpop.f32.mrf.mxu0  ;;  %v4331_v28 = vpop.f32.mrf.mxu1 }
 0x140   : > { %v985_v27 = vadd.f32 %v953_v23, %v5262_v43 }
 0x141   : > { %v4304_v36 = vpop.f32.mrf.mxu0  ;;  %v1517_v61 = vpop.f32.mrf.mxu1 }
 0x142   : > { %v5333_v33 = vadd.f32 %v1128_v57, %v985_v27  ;;  %v1394_v54 = vadd.f32 %v4304_v36, %v5266_v11 }
 0x143   : > { %v1298_v46 = vpop.f32.mrf.mxu0  ;;  %v4334_v63 = vpop.f32.mrf.mxu1 }
 0x144   : > { %v1392_v7 = vadd.f32 %v1298_v46, %v5271_v59  ;;  %v5337_v49 = vadd.f32 %v4330_v22, %v1394_v54 }
 0x145   : > { %v4305_v50 = vpop.f32.mrf.mxu0  ;;  %v1530_v45 = vpop.f32.mrf.mxu1 }
 0x146   : > { %v1395_v44 = vadd.f32 %v4305_v50, %v5273_v9  ;;  %v5340_v1 = vadd.f32 %v1514_v42, %v1392_v7 }
 0x147   : > { %v1301_v19 = vpop.f32.mrf.mxu0  ;;  %v4335_v43 = vpop.f32.mrf.mxu1 }
 0x148   : > { %v1393_v34 = vadd.f32 %v1301_v19, %v5276_v32  ;;  %v5343_v55 = vadd.f32 %v4331_v28, %v1395_v44 }
 0x149   : > { %v4308_v4 = vpop.f32.mrf.mxu0  ;;  %v1533_v11 = vpop.f32.mrf.mxu1 }
 0x14a   : > { %v1398_v56 = vadd.f32 %v4308_v4, %v5279_v24  ;;  %v5346_v37 = vadd.f32 %v1517_v61, %v1393_v34 }
 0x14b   : > { %v1314_v59 = vpop.f32.mrf.mxu0  ;;  %v4338_v62 = vpop.f32.mrf.mxu1 }
 0x14c   : > { %v1396_v58 = vadd.f32 %v1314_v59, %v5284_v18  ;;  %v5349_v51 = vadd.f32 %v4334_v63, %v1398_v56 }
 0x14d   : > { %v4309_v9 = vpop.f32.mrf.mxu0  ;;  %v1546_v47 = vpop.f32.mrf.mxu1 }
 0x14e   : > { %v1399_v35 = vadd.f32 %v4309_v9, %v5286_v16  ;;  %v5352_v2 = vadd.f32 %v1530_v45, %v1396_v58 }
 0x14f   : > { %v1317_v32 = vpop.f32.mrf.mxu0  ;;  %v4339_v29 = vpop.f32.mrf.mxu1 }
 0x150   : > { %v1397_v48 = vadd.f32 %v1317_v32, %v5289_v14  ;;  %v5355_v8 = vadd.f32 %v4335_v43, %v1399_v35 }
 0x151   : > { %v4312_v24 = vpop.f32.mrf.mxu0  ;;  %v1549_v25 = vpop.f32.mrf.mxu1 }
 0x152   : > { %v1402_v39 = vadd.f32 %v4312_v24, %v5292_v38  ;;  %v5358_v52 = vadd.f32 %v1533_v11, %v1397_v48 }
 0x153   : > { %v1330_v18 = vpop.f32.mrf.mxu0  ;;  %v4342_v21 = vpop.f32.mrf.mxu1 }
 0x154   : > { %7508 = vst [vmem:[#allocation2_spill] sm:$0xff] %v5358_v52  ;;  %v1400_v57 = vadd.f32 %v1330_v18, %v5295_v15  ;;  %v5361_v53 = vadd.f32 %v4338_v62, %v1402_v39 }
 0x155   : > { %v4313_v16 = vpop.f32.mrf.mxu0  ;;  %v1562_v31 = vpop.f32.mrf.mxu1 }
 0x156   : > { %7509 = vst [vmem:[#allocation3_spill] sm:$0xff] %v5361_v53  ;;  %v1403_v22 = vadd.f32 %v4313_v16, %v5298_v60  ;;  %v5364_v30 = vadd.f32 %v1546_v47, %v1400_v57 }
 0x157   : > { %v1333_v14 = vpop.f32.mrf.mxu0  ;;  %v4343_v6 = vpop.f32.mrf.mxu1 }
 0x158   : > { %7510 = vst [vmem:[#allocation4_spill] sm:$0xff] %v5364_v30  ;;  %v1401_v42 = vadd.f32 %v1333_v14, %v5301_v40  ;;  %v5367_v23 = vadd.f32 %v4339_v29, %v1403_v22 }
 0x159   : > { %v4316_v38 = vpop.f32.mrf.mxu0  ;;  %v1565_v28 = vpop.f32.mrf.mxu1 }
 0x15a   : > { %7511 = vst [vmem:[#allocation5_spill] sm:$0xff] %v5367_v23  ;;  %v1406_v27 = vadd.f32 %v4316_v38, %v5304_v41  ;;  %v5370_v36 = vadd.f32 %v1549_v25, %v1401_v42 }
 0x15b   : > { %v1346_v15 = vpop.f32.mrf.mxu0  ;;  %v4346_v61 = vpop.f32.mrf.mxu1 }
 0x15c   : > { %7512 = vst [vmem:[#allocation6_spill] sm:$0xff] %v5370_v36  ;;  %v1404_v54 = vadd.f32 %v1346_v15, %v5307_v3  ;;  %v5373_v46 = vadd.f32 %v4342_v21, %v1406_v27 }
 0x15d   : > { %v4317_v60 = vpop.f32.mrf.mxu0  ;;  %v1578_v63 = vpop.f32.mrf.mxu1 }
 0x15e   : > { %7513 = vst [vmem:[#allocation7_spill] sm:$0xff] %v5373_v46  ;;  %v1407_v7 = vadd.f32 %v4317_v60, %v5310_v5  ;;  %v5376_v50 = vadd.f32 %v1562_v31, %v1404_v54 }
 0x15f   : > { %v1349_v40 = vpop.f32.mrf.mxu0  ;;  %v4347_v45 = vpop.f32.mrf.mxu1 }
 0x160   : > { %7514 = vst [vmem:[#allocation8_spill] sm:$0xff] %v5376_v50  ;;  %v1405_v44 = vadd.f32 %v1349_v40, %v5313_v10  ;;  %v5379_v19 = vadd.f32 %v4343_v6, %v1407_v7  ;;  %v2314_v6 = vlaneseq }
 0x161   : > { %v4320_v41 = vpop.f32.mrf.mxu0  ;;  %v1581_v43 = vpop.f32.mrf.mxu1 }
 0x162   : > { %7515 = vst [vmem:[#allocation9_spill] sm:$0xff] %v5379_v19  ;;  %v1410_v34 = vadd.f32 %v4320_v41, %v5316_v12  ;;  %v5382_v4 = vadd.f32 %v1565_v28, %v1405_v44  ;;  %v5422_v27 = vshrl.u32 %v2314_v6, 7  ;;  %v5474_v6 = vstv %s2338_s11 }
 0x163   : > { %v1362_v3 = vpop.f32.mrf.mxu0  ;;  %v4350_v11 = vpop.f32.mrf.mxu1 }
 0x164   : > { %7516 = vst [vmem:[#allocation10_spill] sm:$0xff] %v5382_v4  ;;  %v1408_v56 = vadd.f32 %v1362_v3, %v5319_v13  ;;  %v5385_v59 = vadd.f32 %v4346_v61, %v1410_v34  ;;  %v2317_v60 = vadd.s32 16, %v5422_v27  ;;  %v2318_v34 = vadd.s32 24, %v5422_v27 }
 0x165   : > { %v4321_v5 = vpop.f32.mrf.mxu0  ;;  %v1594_v62 = vpop.f32.mrf.mxu1  ;;  %v5499_v50 = vadd.s32 80, %v5422_v27  ;;  %v5556_v36 = vadd.s32 96, %v5422_v27  ;;  %v5579_v23 = vadd.s32 104, %v5422_v27  ;;  %v5614_v52 = vadd.s32 144, %v5422_v27 }
 0x166   : > { %7517 = vst [vmem:[#allocation11_spill] sm:$0xff] %v5385_v59  ;;  %v1411_v58 = vadd.f32 %v4321_v5, %v5322_v26  ;;  %v5388_v9 = vadd.f32 %v1578_v63, %v1408_v56  ;;  %v2434_v44 = vmul.u32 57, %v2317_v60  ;;  %v2432_v56 = vmul.u32 57, %v5422_v27 }
 0x167   : > { %v1365_v10 = vpop.f32.mrf.mxu0  ;;  %v4351_v47 = vpop.f32.mrf.mxu1  ;;  %v5452_v5 = vadd.s32 8, %v5422_v27  ;;  %v5489_v59 = vadd.s32 %v5474_v6, %v2317_v60  ;;  %v2442_v46 = vmul.u32 57, %v5499_v50 }
 0x168   : > { %7518 = vst [vmem:[#allocation12_spill] sm:$0xff] %v5388_v9  ;;  %v1409_v35 = vadd.f32 %v1365_v10, %v5325_v17  ;;  %v5391_v32 = vadd.f32 %v4347_v45, %v1411_v58  ;;  %v2435_v47 = vmul.u32 57, %v2318_v34 }
 0x169   : > { %v4324_v12 = vpop.f32.mrf.mxu0  ;;  %v1597_v29 = vpop.f32.mrf.mxu1  ;;  %vm2365_vm8 = vcmp.ge.s32.totalorder %v5489_v59, 18  ;;  %vm2388_vm9 = vcmp.lt.s32.totalorder %v5489_v59, 306  ;;  %v5652_v59 = vadd.s32 %v5474_v6, %v5499_v50 }
 0x16a   : > { %7519 = vst [vmem:[#allocation13_spill] sm:$0xff] %v5391_v32  ;;  %v1414_v48 = vadd.f32 %v4324_v12, %v5328_v20  ;;  %v5394_v24 = vadd.f32 %v1581_v43, %v1409_v35  ;;  %v5460_v35 = vadd.s32 48, %v5422_v27  ;;  %vm5631_vm5 = vmand %vm2365_vm8, %vm2388_vm9 }
 0x16b   : > { %v1378_v13 = vpop.f32.mrf.mxu0  ;;  %v5396_v25 = vpop.f32.mrf.mxu1  ;;  %7559 = vst [vmem:[#allocation49_spill] sm:$0xff] %v5652_v59 }
 0x16c   : > { %7520 = vst [vmem:[#allocation14_spill] sm:$0xff] %v5394_v24  ;;  %v1412_v39 = vadd.f32 %v1378_v13, %v5330_v0  ;;  %v5399_v26 = vadd.f32 %v4350_v11, %v1414_v48  ;;  %v2455_v48 = vshra.s32 %v2432_v56, 10  ;;  %v2433_v13 = vmul.u32 57, %v5452_v5 }
 0x16d   : > { %v4325_v18 = vpop.f32.mrf.mxu0  ;;  %v5401_v21 = vpop.f32.mrf.mxu1  ;;  %v5481_v56 = vadd.s32 40, %v5422_v27 }
 0x16e   : > { %7521 = vst [vmem:[#allocation15_spill] sm:$0xff] %v5399_v26  ;;  %v5403_v57 = vadd.f32 %v1594_v62, %v1412_v39  ;;  %v2457_v62 = vshra.s32 %v2434_v44, 10  ;;  %v5468_v39 = vadd.s32 32, %v5422_v27  ;;  %v2458_v44 = vshra.s32 %v2435_v47, 10 }
 0x16f   : > { %v1381_v17 = vpop.f32.mrf.mxu0  ;;  %v5405_v16 = vpop.f32.mrf.mxu1  ;;  %v2456_v32 = vshra.s32 %v2433_v13, 10  ;;  %v2437_v13 = vmul.u32 57, %v5481_v56 }
 0x170   : > { %7522 = vst [vmem:[#allocation16_spill] sm:$0xff] %v5403_v57  ;;  %v1413_v31 = vadd.f32 %v1381_v17, %v5333_v33  ;;  %v2480_v18 = vmul.u32 18, %v2457_v62  ;;  %v5478_v57 = vadd.s32 56, %v5422_v27  ;;  %v2478_v62 = vmul.u32 18, %v2455_v48 }
 0x171   : > { %v5408_v20 = vpop.f32.mrf.mxu0  ;;  %v5410_v22 = vpop.f32.mrf.mxu1  ;;  %v2436_v9 = vmul.u32 57, %v5468_v39  ;;  %v5503_v48 = vadd.s32 %v5474_v6, %v5422_v27 }
 0x172   : > { %v5412_v14 = vadd.f32 %v1597_v29, %v1413_v31  ;;  %v5491_v47 = vsub.s32 %v2317_v60, %v2480_v18  ;;  %v2439_v19 = vmul.u32 57, %v5478_v57  ;;  %v5507_v60 = vadd.s32 64, %v5422_v27 }
 0x173   : > { %v5414_v0 = vpop.f32.mrf.mxu0  ;;  %v5416_v42 = vpop.f32.mrf.mxu1  ;;  %vm2363_vm12 = vcmp.ge.s32.totalorder %v5503_v48, 18  ;;  %vm2386_vm13 = vcmp.lt.s32.totalorder %v5503_v48, 306  ;;  %v7563_v48 = vmov 0 }
 0x174   : > { %7523 = vst [vmem:[#allocation17_spill] sm:$0xff] %v5412_v14  ;;  %v2438_v14 = vmul.u32 57, %v5460_v35  ;;  %vm2526_vm10 = vcmp.ge.s32.totalorder %v5491_v47, 1  ;;  %vm2549_vm11 = vcmp.le.s32.totalorder %v5491_v47, 16  ;;  %v7646_v47 = vld [vmem:[#allocation5_spill] sm:$0xff] }
 0x175   : > { %v5418_v38 = vpop.f32.mrf.mxu0  ;;  %v5420_v28 = vpop.f32.mrf.mxu1  ;;  %vm5644_vm4 = vmand %vm2526_vm10, %vm2549_vm11 }
 0x176   : > { %7524 = vst [vmem:[#allocation18_spill] sm:$0xff] %v5420_v28  ;;  %vm5664_vm10 = vmand %vm2363_vm12, %vm2386_vm13 }
 0x177   : > { %v5424_v15 = vpop.f32.mrf.mxu0  ;;  %v5426_v33 = vpop.f32.mrf.mxu1 }
 0x178   : > { %7525 = vst [vmem:[#allocation19_spill] sm:$0xff] %v5426_v33 }
 0x179   : > { %v5428_v61 = vpop.f32.mrf.mxu0  ;;  %v5430_v54 = vpop.f32.mrf.mxu1 }
 0x17a   : > { %7526 = vst [vmem:[#allocation20_spill] sm:$0xff] %v5430_v54 }
 0x17b   : > { %v5433_v63 = vpop.f32.mrf.mxu0  ;;  %v5435_v7 = vpop.f32.mrf.mxu1 }
 0x17c   : > { %7527 = vst [vmem:[#allocation21_spill] sm:$0xff] %v5435_v7 }
 0x17d   : > { %v5437_v40 = vpop.f32.mrf.mxu0  ;;  %v5439_v45 = vpop.f32.mrf.mxu1 }
 0x17e   : > { %7528 = vst [vmem:[#allocation22_spill] sm:$0xff] %v5439_v45 }
 0x17f   : > { %v5441_v41 = vpop.f32.mrf.mxu0  ;;  %v5443_v43 = vpop.f32.mrf.mxu1 }
 0x180   : > { %7529 = vst [vmem:[#allocation23_spill] sm:$0xff] %v5441_v41  ;;  %7530 = vst [vmem:[#allocation24_spill] sm:$0xff] %v5443_v43  ;;  %v5540_v43 = vadd.s32 %v5474_v6, %v5452_v5  ;;  %v2445_v41 = vmul.u32 57, %v5579_v23 }
 0x181   : > { %v5446_v3 = vpop.f32.mrf.mxu0  ;;  %v5448_v11 = vpop.f32.mrf.mxu1 }
 0x182   : > { %7531 = vst [vmem:[#allocation25_spill] sm:$0xff] %v5446_v3  ;;  %7532 = vst [vmem:[#allocation26_spill] sm:$0xff] %v5448_v11  ;;  %v5522_v11 = vadd.s32 88, %v5422_v27 }
 0x183   : > { %v5454_v58 = vpop.f32.mrf.mxu0  ;;  %v5456_v10 = vpop.f32.mrf.mxu1 }
 0x184   : > { %7533 = vst [vmem:[#allocation27_spill] sm:$0xff] %v5454_v58  ;;  %7534 = vst [vmem:[#allocation28_spill] sm:$0xff] %v5456_v10  ;;  %v2461_v10 = vshra.s32 %v2438_v14, 10  ;;  %v5514_v14 = vsub.s32 %v5422_v27, %v2478_v62  ;;  %v2462_v62 = vshra.s32 %v2439_v19, 10 }
 0x185   : > { %v5462_v12 = vpop.f32.mrf.mxu0  ;;  %v5464_v29 = vpop.f32.mrf.mxu1 }
 0x186   : > { %7535 = vst [vmem:[#allocation29_spill] sm:$0xff] %v5462_v12  ;;  %7536 = vst [vmem:[#allocation30_spill] sm:$0xff] %v5464_v29  ;;  %v2481_v29 = vmul.u32 18, %v2458_v44  ;;  %v2479_v44 = vmul.u32 18, %v2456_v32  ;;  %vm2524_vm14 = vcmp.ge.s32.totalorder %v5514_v14, 1  ;;  %vm2547_vm15 = vcmp.le.s32.totalorder %v5514_v14, 16 }
 0x187   : > { %v5470_v17 = vpop.f32.mrf.mxu0  ;;  %v5472_v31 = vpop.f32.mrf.mxu1  ;;  %v2484_v32 = vmul.u32 18, %v2461_v10  ;;  %v2485_v7 = vmul.u32 18, %v2462_v62  ;;  %v2465_v12 = vshra.s32 %v2442_v46, 10  ;;  %v5596_v46 = vadd.s32 %v5474_v6, %v5478_v57  ;;  %vm5681_vm12 = vmand %vm2524_vm14, %vm2547_vm15 }
 0x188   : > { %7537 = vst [vmem:[#allocation31_spill] sm:$0xff] %v5470_v17  ;;  %7538 = vst [vmem:[#allocation32_spill] sm:$0xff] %v5472_v31  ;;  %v5544_v17 = vadd.s32 112, %v5422_v27  ;;  %v5553_v19 = vsub.s32 %v5452_v5, %v2479_v44  ;;  %v7564_v48 = vsel %vm5681_vm12, 4294967295, %v7563_v48 }
 0x189   : > { %v5483_v26 = vpop.f32.mrf.mxu0  ;;  %v5485_v24 = vpop.f32.mrf.mxu1  ;;  %v5576_v45 = vsub.s32 %v5460_v35, %v2484_v32  ;;  %v2444_v32 = vmul.u32 57, %v5556_v36  ;;  %v2488_v33 = vmul.u32 18, %v2465_v12 }
 0x18a   : > { %7539 = vst [vmem:[#allocation33_spill] sm:$0xff] %v5483_v26  ;;  %7540 = vst [vmem:[#allocation34_spill] sm:$0xff] %v5485_v24  ;;  %v5525_v26 = vadd.s32 72, %v5422_v27  ;;  %v2446_v30 = vmul.u32 57, %v5544_v17  ;;  %vm7576_vm15 = vcmp.ge.s32.totalorder %v5553_v19, 1 }
 0x18b   : > { %v5493_v31 = vpop.f32.mrf.mxu0  ;;  %v5495_v4 = vpop.f32.mrf.mxu1 }
 0x18c   : > { %7541 = vst [vmem:[#allocation35_spill] sm:$0xff] %v5493_v31  ;;  %7542 = vst [vmem:[#allocation36_spill] sm:$0xff] %v5495_v4  ;;  %v2459_v4 = vshra.s32 %v2436_v9, 10  ;;  %v5519_v31 = vadd.s32 %v5474_v6, %v2318_v34  ;;  %v5533_v9 = vsub.s32 %v2318_v34, %v2481_v29  ;;  %v2441_v5 = vmul.u32 57, %v5525_v26 }
 0x18d   : > { %v5509_v18 = vpop.f32.mrf.mxu0  ;;  %v5511_v24 = vpop.f32.mrf.mxu1 }
 0x18e   : > { %7543 = vst [vmem:[#allocation37_spill] sm:$0xff] %v5509_v18  ;;  %7544 = vst [vmem:[#allocation38_spill] sm:$0xff] %v5511_v24  ;;  %v2482_v29 = vmul.u32 18, %v2459_v4  ;;  %vm2366_vm1 = vcmp.ge.s32.totalorder %v5519_v31, 18  ;;  %vm2389_vm2 = vcmp.lt.s32.totalorder %v5519_v31, 306  ;;  %vm2527_vm3 = vcmp.ge.s32.totalorder %v5533_v9, 1 }
 0x18f   : > { %v5527_v18 = vpop.f32.mrf.mxu0  ;;  %v5529_v24 = vpop.f32.mrf.mxu1  ;;  %vm2550_vm6 = vcmp.le.s32.totalorder %v5533_v9, 16  ;;  %vm5698_vm14 = vmand %vm2366_vm1, %vm2389_vm2  ;;  %v1777_v31 = vadd.f32 %v5414_v0, %v5340_v1  ;;  %v5732_v1 = vadd.s32 %v5474_v6, %v5556_v36  ;;  %v7573_v9 = vmov 0 }
 0x190   : > { %7545 = vst [vmem:[#allocation39_spill] sm:$0xff] %v5527_v18  ;;  %7546 = vst [vmem:[#allocation40_spill] sm:$0xff] %v5529_v24  ;;  %v2460_v18 = vshra.s32 %v2437_v13, 10  ;;  %v2440_v24 = vmul.u32 57, %v5507_v60  ;;  %v5559_v13 = vadd.s32 120, %v5422_v27 }
 0x191   : > { %v5546_v34 = vpop.f32.mrf.mxu0  ;;  %v5548_v10 = vpop.f32.mrf.mxu1  ;;  %vm5717_vm1 = vmand %vm2527_vm3, %vm2550_vm6  ;;  %7569 = vst [vmem:[#allocation51_spill] sm:$0xff] %v5732_v1  ;;  %vm7571_vm3 = vcmp.lt.s32.totalorder %v5540_v43, 306  ;;  %vm7572_vm6 = vcmp.ge.s32.totalorder %v5540_v43, 18 }
 0x192   : > { %7547 = vst [vmem:[#allocation41_spill] sm:$0xff] %v5546_v34  ;;  %7548 = vst [vmem:[#allocation42_spill] sm:$0xff] %v5548_v10  ;;  %v5565_v10 = vadd.s32 %v5474_v6, %v5460_v35  ;;  %v2443_v34 = vmul.u32 57, %v5522_v11  ;;  %v2463_v58 = vshra.s32 %v2440_v24, 10  ;;  %v2447_v62 = vmul.u32 57, %v5559_v13 }
 0x193   : > { %v5569_v44 = vpop.f32.mrf.mxu0  ;;  %v5571_v4 = vpop.f32.mrf.mxu1  ;;  %v5603_v24 = vsub.s32 %v5468_v39, %v2482_v29  ;;  %v2469_v29 = vshra.s32 %v2446_v30, 10  ;;  %vm5740_vm2 = vmand %vm7572_vm6, %vm7571_vm3  ;;  %vm7575_vm6 = vcmp.le.s32.totalorder %v5553_v19, 16 }
 0x194   : > { %7549 = vst [vmem:[#allocation43_spill] sm:$0xff] %v5569_v44  ;;  %7550 = vst [vmem:[#allocation44_spill] sm:$0xff] %v5571_v4  ;;  %v5585_v44 = vadd.s32 %v5474_v6, %v5468_v39  ;;  %v2483_v4 = vmul.u32 18, %v2460_v18  ;;  %v5607_v18 = vadd.s32 %v5474_v6, %v5481_v56  ;;  %v5617_v39 = vadd.s32 128, %v5422_v27 }
 0x195   : > { %v5588_v54 = vpop.f32.mrf.mxu0  ;;  %v5590_v35 = vpop.f32.mrf.mxu1  ;;  %v7574_v9 = vsel %vm5740_vm2, 4294967295, %v7573_v9  ;;  %vm5762_vm13 = vmand %vm7576_vm15, %vm7575_vm6  ;;  %vm7579_vm6 = vcmp.lt.s32.totalorder %v5565_v10, 306  ;;  %vm7580_vm3 = vcmp.ge.s32.totalorder %v5565_v10, 18 }
 0x196   : > { %7551 = vst [vmem:[#allocation45_spill] sm:$0xff] %v5588_v54  ;;  %7552 = vst [vmem:[#allocation46_spill] sm:$0xff] %v5590_v35  ;;  %v2466_v35 = vshra.s32 %v2443_v34, 10  ;;  %v2464_v54 = vshra.s32 %v2441_v5, 10  ;;  %v5623_v34 = vsub.s32 %v5478_v57, %v2485_v7  ;;  %v2467_v57 = vshra.s32 %v2444_v32, 10 }
 0x197   : > { %v5609_v3 = vpop.f32.mrf.mxu0  ;;  %v4403_v53 = vpop.f32.mrf.mxu1  ;;  %v2470_v7 = vshra.s32 %v2447_v62, 10  ;;  %v5671_v62 = vsub.s32 %v5499_v50, %v2488_v33  ;;  %v5692_v33 = vadd.s32 %v5474_v6, %v5522_v11  ;;  %vm5786_vm11 = vmand %vm7580_vm3, %vm7579_vm6  ;;  %vm7583_vm3 = vcmp.le.s32.totalorder %v5576_v45, 16 }
 0x198   : > { %7553 = vst [vmem:[#allocation47_spill] sm:$0xff] %v5609_v3  ;;  %v2486_v53 = vmul.u32 18, %v2463_v58  ;;  %v5638_v3 = vsub.s32 %v5481_v56, %v2483_v4  ;;  %v5656_v58 = vadd.s32 %v5474_v6, %v5507_v60  ;;  %v2489_v56 = vmul.u32 18, %v2466_v35 }
 0x199   : > { %v5625_v12 = vpop.f32.mrf.mxu0  ;;  %v2487_v4 = vmul.u32 18, %v2464_v54  ;;  %v2450_v54 = vmul.u32 57, %v5614_v52  ;;  %vm7584_vm6 = vcmp.ge.s32.totalorder %v5576_v45, 1  ;;  %vm7588_vm9 = vcmp.ge.s32.totalorder %v5585_v44, 18 }
 0x19a   : > { %7554 = vst [vmem:[#allocation48_spill] sm:$0xff] %v5625_v12  ;;  %v2468_v12 = vshra.s32 %v2445_v41, 10  ;;  %v2448_v35 = vmul.u32 57, %v5617_v39  ;;  %v5688_v50 = vsub.s32 %v5507_v60, %v2486_v53  ;;  %v5706_v60 = vadd.s32 %v5474_v6, %v5525_v26  ;;  %vm5810_vm8 = vmand %vm7584_vm6, %vm7583_vm3  ;;  %v7630_v41 = vld [vmem:[#allocation20_spill] sm:$0xff] }
 0x19b   : > { %v5658_v32 = vpop.f32.mrf.mxu0  ;;  %v2490_v14 = vmul.u32 18, %v2467_v57  ;;  %v2493_v53 = vmul.u32 18, %v2470_v7  ;;  %v5724_v57 = vsub.s32 %v5522_v11, %v2489_v56  ;;  %v5728_v7 = vadd.s32 %v5474_v6, %v5544_v17 }
 0x19c   : > { %7560 = vst [vmem:[#allocation50_spill] sm:$0xff] %v5658_v32  ;;  %v1779_v32 = vadd.f32 %v5408_v20, %v5337_v49  ;;  %v2492_v49 = vmul.u32 18, %v2469_v29  ;;  %v5709_v29 = vadd.s32 152, %v5422_v27  ;;  %v5745_v11 = vsub.s32 %v5525_v26, %v2487_v4 }
 0x19d   : > { %v4377_v20 = vpop.f32.mrf.mxu0  ;;  %v2491_v56 = vmul.u32 18, %v2468_v12  ;;  %v5747_v59 = vshra.s32 %v2450_v54, 10  ;;  %v5749_v28 = vshra.s32 %v2448_v35, 10  ;;  %v7577_v26 = vmov 0 }
 0x19e   : > { %v7567_v20 = vmov 0  ;;  %v2024_v1 = vadd.f32 %v5396_v25, %v1779_v32  ;;  %v7578_v26 = vsel %vm5762_vm13, 4294967295, %v7577_v26  ;;  %v5767_v43 = vsub.s32 %v5544_v17, %v2492_v49 }
 0x19f   : > { %v7568_v20 = vsel %vm5717_vm1, 4294967295, %v7567_v20  ;;  %v5734_v0 = vpop.f32.mrf.mxu0  ;;  %v5771_v25 = vadd.s32 %v5474_v6, %v5559_v13  ;;  %v5793_v19 = vsub.s32 %v5556_v36, %v2490_v14  ;;  %v5796_v12 = vsub.s32 %v5559_v13, %v2493_v53 }
 0x1a0   : > { %7570 = vst [vmem:[#allocation52_spill] sm:$0xff] %v5734_v0  ;;  %v1780_v0 = vadd.f32 %v5418_v38, %v5343_v55  ;;  %v5776_v38 = vld [vmem:[%s7444_s2] ss:$0 sm:$0xff]  ;;  %v5800_v4 = vadd.s32 %v5474_v6, %v5579_v23  ;;  %v2451_v10 = vmul.u32 57, %v5709_v29  ;;  %v2022_v32 = vadd.f32 %v5401_v21, %v1777_v31 }
 0x1a1   : > { %v4408_v55 = vpop.f32.mrf.mxu0  ;;  %v1778_v54 = vadd.f32 %v5424_v15, %v5346_v37  ;;  %v5818_v13 = vadd.s32 %v5474_v6, %v5614_v52  ;;  %vm7587_vm6 = vcmp.lt.s32.totalorder %v5585_v44, 306  ;;  %v7589_v37 = vmov 0 }
 0x1a2   : > { %v2240_v35 = vadd.f32 %v4408_v55, %v2024_v1  ;;  %vm5832_vm15 = vmand %vm7588_vm9, %vm7587_vm6  ;;  %v5839_v15 = vsub.s32 %v5579_v23, %v2491_v56  ;;  %v2496_v45 = vmul.u32 18, %v5747_v59  ;;  %v5844_v49 = vadd.s32 %v5474_v6, %v5617_v39 }
 0x1a3   : > { %v2144_v21 = vpop.f32.mrf.mxu0  ;;  %v7590_v37 = vsel %vm5832_vm15, 4294967295, %v7589_v37  ;;  %v2494_v14 = vmul.u32 18, %v5749_v28  ;;  %v2025_v44 = vadd.f32 %v5405_v16, %v1780_v0  ;;  %v1783_v53 = vadd.f32 %v5428_v61, %v5349_v51 }
 0x1a4   : > { %v2270_v31 = vadd.f32 %v5776_v38, %v2240_v35  ;;  %v2238_v1 = vadd.f32 %v2144_v21, %v2022_v32  ;;  %vm7591_vm9 = vcmp.lt.s32.totalorder %v5596_v46, 306  ;;  %vm7592_vm6 = vcmp.ge.s32.totalorder %v5596_v46, 18  ;;  %v7612_v21 = vld [vmem:[#allocation2_spill] sm:$0xff] }
 0x1a5   : > { %vm5855_vm7 = vmand %vm7592_vm6, %vm7591_vm9  ;;  %v1781_v16 = vadd.f32 %v5433_v63, %v5352_v2  ;;  %v4409_v28 = vpop.f32.mrf.mxu0  ;;  %vm7595_vm0 = vcmp.lt.s32.totalorder %v5607_v18, 306  ;;  %vm7596_vm13 = vcmp.ge.s32.totalorder %v5607_v18, 18  ;;  %v7597_v51 = vmov 0 }
 0x1a6   : > { %vm5867_vm2 = vmand %vm7596_vm13, %vm7595_vm0  ;;  %v5875_v61 = vadd.s32 %v5474_v6, %v5709_v29  ;;  %v5877_v46 = vshra.s32 %v2451_v10, 10  ;;  %v5880_v2 = vadd.s32 136, %v5422_v27  ;;  %v2023_v63 = vadd.f32 %v5410_v22, %v1778_v54 }
 0x1a7   : > { %v7598_v51 = vsel %vm5867_vm2, 4294967295, %v7597_v51  ;;  %v2268_v18 = vadd.f32 %v5776_v38, %v2238_v1  ;;  %v2241_v59 = vadd.f32 %v4409_v28, %v2025_v44  ;;  %vm7599_vm0 = vcmp.le.s32.totalorder %v5603_v24, 16  ;;  %v2147_v10 = vpop.f32.mrf.mxu0 }
 0x1a8   : > { %vm7600_vm13 = vcmp.ge.s32.totalorder %v5603_v24, 1  ;;  %v7601_v0 = vmov 0  ;;  %v5895_v56 = vadd.s32 176, %v5422_v27  ;;  %v1784_v22 = vadd.f32 %v5437_v40, %v5355_v8 }
 0x1a9   : > { %vm5888_vm9 = vmand %vm7600_vm13, %vm7599_vm0  ;;  %v2293_v55 = vmax.f32 %v2270_v31, 0.0  ;;  %vm7603_vm12 = vcmp.le.s32.totalorder %v5623_v34, 16  ;;  %vm7604_vm0 = vcmp.ge.s32.totalorder %v5623_v34, 1  ;;  %v5910_v32 = vsub.s32 %v5614_v52, %v2496_v45  ;;  %v7613_v45 = vld [vmem:[#allocation23_spill] sm:$0xff]  ;;  %v4412_v44 = vpop.f32.mrf.mxu0 }
 0x1aa   : > { %v7602_v0 = vsel %vm5888_vm9, 4294967295, %v7601_v0  ;;  %vm5903_vm13 = vmand %vm7604_vm0, %vm7603_vm12  ;;  %v5913_v54 = vsub.s32 %v5617_v39, %v2494_v14  ;;  %v2028_v8 = vadd.f32 %v5416_v42, %v1783_v53  ;;  %v2271_v40 = vadd.f32 %v5776_v38, %v2241_v59  ;;  %v7611_v39 = vld [vmem:[#allocation18_spill] sm:$0xff]  ;;  %v7614_v53 = vld [vmem:[#allocation49_spill] sm:$0xff] }
 0x1ab   : > { %v2239_v35 = vadd.f32 %v2147_v10, %v2023_v63  ;;  %vm7607_vm0 = vcmp.le.s32.totalorder %v5638_v3, 16  ;;  %vm7608_vm1 = vcmp.ge.s32.totalorder %v5638_v3, 1  ;;  %v7609_v52 = vmov 0  ;;  %v7619_v10 = vld [vmem:[#allocation19_spill] sm:$0xff] }
 0x1ac   : > { %vm5925_vm3 = vmand %vm7608_vm1, %vm7607_vm0  ;;  %v5933_v42 = vadd.s32 %v5474_v6, %v5880_v2  ;;  %v2026_v34 = vadd.f32 %v7611_v39, %v1781_v16  ;;  %v1782_v14 = vadd.f32 %v7613_v45, %v7612_v21  ;;  %vm7615_vm12 = vcmp.lt.s32.totalorder %v7614_v53, 306  ;;  %v7620_v21 = vld [vmem:[#allocation3_spill] sm:$0xff] }
 0x1ad   : > { %v7610_v52 = vsel %vm5925_vm3, 4294967295, %v7609_v52  ;;  %vm7616_vm1 = vcmp.ge.s32.totalorder %v7614_v53, 18  ;;  %v7617_v3 = vmov 0  ;;  %v2497_v31 = vmul.u32 18, %v5877_v46  ;;  %v7621_v46 = vld [vmem:[#allocation25_spill] sm:$0xff]  ;;  %v7631_v53 = vld [vmem:[#allocation4_spill] sm:$0xff] }
 0x1ae   : > { %vm5942_vm0 = vmand %vm7616_vm1, %vm7615_vm12  ;;  %v2449_v1 = vmul.u32 57, %v5880_v2  ;;  %v2291_v28 = vmax.f32 %v2268_v18, 0.0  ;;  %v2294_v63 = vmax.f32 %v2271_v40, 0.0  ;;  %v2269_v16 = vadd.f32 %v5776_v38, %v2239_v35  ;;  %v7743_v35 = vld [vmem:[#allocation13_spill] sm:$0xff] }
 0x1af   : > { %v7618_v3 = vsel %vm5942_vm0, 4294967295, %v7617_v3  ;;  %v2244_v59 = vadd.f32 %v4412_v44, %v2028_v8  ;;  %v2029_v39 = vadd.f32 %v7619_v10, %v1784_v22  ;;  %v1787_v45 = vadd.f32 %v7621_v46, %v7620_v21  ;;  %vm7622_vm1 = vmand %vm5631_vm5, %vm5644_vm4  ;;  %v2160_v8 = vpop.f32.mrf.mxu0  ;;  %v7629_v44 = vld [vmem:[#allocation51_spill] sm:$0xff] }
 0x1b0   : > { %v2664_v18 = vsel %vm7622_vm1, %v2293_v55, 0.0  ;;  %v5973_v22 = vadd.s32 %v5474_v6, %v5895_v56  ;;  %vm7623_vm4 = vnez %v7568_v20  ;;  %v2292_v30 = vmax.f32 %v2269_v16, 0.0 }
 0x1b1   : > { %vm7624_vm5 = vmand %vm5698_vm14, %vm7623_vm4  ;;  %v2274_v55 = vadd.f32 %v5776_v38, %v2244_v59  ;;  %v2242_v40 = vadd.f32 %v2160_v8, %v2026_v34  ;;  %vm7625_vm1 = vcmp.lt.s32.totalorder %v5656_v58, 306  ;;  %vm7626_vm6 = vcmp.ge.s32.totalorder %v5656_v58, 18  ;;  %v4413_v59 = vpop.f32.mrf.mxu0 }
 0x1b2   : > { %v2665_v5 = vsel %vm7624_vm5, %v2294_v63, 0.0  ;;  %vm5985_vm12 = vmand %vm7626_vm6, %vm7625_vm1  ;;  %v2027_v20 = vadd.f32 %v7630_v41, %v1782_v14  ;;  %v7632_v63 = vld [vmem:[#allocation27_spill] sm:$0xff]  ;;  %vm7633_vm14 = vcmp.le.s32.totalorder %v5671_v62, 16  ;;  %vm7634_vm4 = vcmp.ge.s32.totalorder %v5671_v62, 1 }
 0x1b3   : > { %v1785_v16 = vadd.f32 %v7632_v63, %v7631_v53  ;;  %v2686_v10 = vpack.c.bf16 %v2665_v5, %v2664_v18  ;;  %vm5998_vm5 = vmand %vm7634_vm4, %vm7633_vm14  ;;  %v7635_v58 = vmov 0  ;;  %v2454_v34 = vmul.u32 57, %v5895_v56  ;;  %v2163_v8 = vpop.f32.mrf.mxu0  ;;  %v7652_v5 = vld [vmem:[#allocation21_spill] sm:$0xff]  ;;  %v7659_v53 = vld [vmem:[#allocation31_spill] sm:$0xff] }
 0x1b4   : > { %v7636_v58 = vsel %vm5998_vm5, 4294967295, %v7635_v58  ;;  %vm7637_vm3 = vnez %v7564_v48  ;;  %vm7639_vm9 = vnez %v7574_v9  ;;  %vm7640_vm15 = vnez %v7578_v26  ;;  %v7647_v48 = vld [vmem:[#allocation29_spill] sm:$0xff] }
 0x1b5   : > { %vm7638_vm2 = vmand %vm5664_vm10, %vm7637_vm3  ;;  %v2272_v21 = vadd.f32 %v5776_v38, %v2242_v40  ;;  %v2245_v46 = vadd.f32 %v4413_v59, %v2029_v39  ;;  %vm7642_vm4 = vcmp.lt.s32.totalorder %v5692_v33, 306  ;;  %vm7643_vm6 = vcmp.ge.s32.totalorder %v5692_v33, 18  ;;  %v4416_v59 = vpop.f32.mrf.mxu0  ;;  %v7744_v33 = vld [vmem:[#allocation45_spill] sm:$0xff] }
 0x1b6   : > { %v2662_v14 = vsel %vm7638_vm2, %v2291_v28, 0.0  ;;  %vm7641_vm14 = vmand %vm7639_vm9, %vm7640_vm15  ;;  %v1788_v9 = vadd.f32 %v7647_v48, %v7646_v47  ;;  %v2297_v28 = vmax.f32 %v2274_v55, 0.0  ;;  %vm7648_vm15 = vcmp.le.s32.totalorder %v5688_v50, 16  ;;  %v7670_v48 = vld [vmem:[#allocation7_spill] sm:$0xff] }
 0x1b7   : > { %v2663_v62 = vsel %vm7641_vm14, %v2292_v30, 0.0  ;;  %vm6020_vm1 = vmand %vm7643_vm6, %vm7642_vm4  ;;  %vm7649_vm3 = vcmp.ge.s32.totalorder %v5688_v50, 1  ;;  %v6038_v39 = vshra.s32 %v2449_v1, 10  ;;  %v2032_v30 = vadd.f32 %v7652_v5, %v1787_v45  ;;  %v7657_v45 = vld [vmem:[#allocation22_spill] sm:$0xff] }
 0x1b8   : > { %v2685_v26 = vpack.c.bf16 %v2663_v62, %v2662_v14  ;;  %vm6032_vm9 = vmand %vm7649_vm3, %vm7648_vm15  ;;  %v2275_v40 = vadd.f32 %v5776_v38, %v2245_v46  ;;  %v2243_v55 = vadd.f32 %v2163_v8, %v2027_v20  ;;  %vm7653_vm15 = vcmp.lt.s32.totalorder %v5706_v60, 306  ;;  %v7658_v20 = vld [vmem:[#allocation6_spill] sm:$0xff] }
 0x1b9   : > { %vm7654_vm3 = vcmp.ge.s32.totalorder %v5706_v60, 18  ;;  %v6057_v1 = vsub.s32 %v5709_v29, %v2497_v31  ;;  %v2030_v41 = vadd.f32 %v7657_v45, %v1785_v16  ;;  %v1786_v63 = vadd.f32 %v7659_v53, %v7658_v20  ;;  %vm7672_vm6 = vmand %vm5786_vm11, %vm5810_vm8  ;;  %v7678_v5 = vld [vmem:[#allocation26_spill] sm:$0xff]  ;;  %v7732_v60 = vld [vmem:[#allocation12_spill] sm:$0xff] }
 0x1ba   : > { %vm6050_vm10 = vmand %vm7654_vm3, %vm7653_vm15  ;;  %vm7660_vm4 = vcmask 130048   ;;  %vm7661_vm15 = vcmp.le.s32.totalorder %v5724_v57, 16  ;;  %vm7662_vm3 = vcmp.ge.s32.totalorder %v5724_v57, 1  ;;  %v6073_v29 = vshra.s32 %v2454_v34, 10  ;;  %v7669_v34 = vld [vmem:[#allocation24_spill] sm:$0xff] }
 0x1bb   : > { %4432 = vmatprep.mubr.msk.bf16.mxu1 %vm7660_vm4, %v2685_v26  ;;  %vm6067_vm2 = vmand %vm7662_vm3, %vm7661_vm15  ;;  %v6076_v31 = vadd.s32 160, %v5422_v27  ;;  %v2295_v16 = vmax.f32 %v2272_v21, 0.0  ;;  %v2298_v14 = vmax.f32 %v2275_v40, 0.0  ;;  %v2273_v62 = vadd.f32 %v5776_v38, %v2243_v55  ;;  %v7671_v26 = vld [vmem:[#allocation33_spill] sm:$0xff]  ;;  %v7679_v40 = vld [vmem:[#allocation8_spill] sm:$0xff] }
 0x1bc   : > { %v2248_v46 = vadd.f32 %v4416_v59, %v2032_v30  ;;  %4433 = vmatmul.mubr.msk.bf16.vlgmr.msra.gmra.mxu1 %vm7660_vm4, %v2686_v10  ;;  %vm7665_vm15 = vcmp.lt.s32.totalorder %v5728_v7, 306  ;;  %vm7666_vm3 = vcmp.ge.s32.totalorder %v5728_v7, 18  ;;  %v7667_v57 = vmov 0  ;;  %v2176_v10 = vpop.f32.mrf.mxu0  ;;  %vm7677_vm8 = vmand %vm5855_vm7, %vm5903_vm13  ;;  %v7680_v55 = vld [vmem:[#allocation35_spill] sm:$0xff] }
 0x1bd   : > { %vm6084_vm5 = vmand %vm7666_vm3, %vm7665_vm15  ;;  %v2033_v47 = vadd.f32 %v7669_v34, %v1788_v9  ;;  %v1791_v8 = vadd.f32 %v7671_v26, %v7670_v48  ;;  %v2668_v21 = vsel %vm7672_vm6, %v2297_v28, 0.0  ;;  %vm7673_vm15 = vcmp.le.s32.totalorder %v5745_v11, 16  ;;  %v7703_v26 = vld [vmem:[#allocation30_spill] sm:$0xff] }
 0x1be   : > { %v7668_v57 = vsel %vm6084_vm5, 4294967295, %v7667_v57  ;;  %vm7674_vm3 = vcmp.ge.s32.totalorder %v5745_v11, 1  ;;  %v7675_v7 = vmov 0  ;;  %v2495_v17 = vmul.u32 18, %v6038_v39  ;;  %v4417_v23 = vpop.f32.mrf.mxu0 }
 0x1bf   : > { %vm6104_vm14 = vmand %vm7674_vm3, %vm7673_vm15  ;;  %v2669_v36 = vsel %vm7677_vm8, %v2298_v14, 0.0  ;;  %v2296_v9 = vmax.f32 %v2273_v62, 0.0  ;;  %v2278_v28 = vadd.f32 %v5776_v38, %v2248_v46  ;;  %v2246_v11 = vadd.f32 %v2176_v10, %v2030_v41  ;;  %v7697_v62 = vld [vmem:[#allocation28_spill] sm:$0xff]  ;;  %v7705_v10 = vld [vmem:[#allocation39_spill] sm:$0xff] }
 0x1c0   : > { %v7676_v7 = vsel %vm6104_vm14, 4294967295, %v7675_v7  ;;  %v2031_v30 = vadd.f32 %v7678_v5, %v1786_v63  ;;  %v1789_v39 = vadd.f32 %v7680_v55, %v7679_v40  ;;  %v2688_v45 = vpack.c.bf16 %v2669_v36, %v2668_v21  ;;  %v7704_v21 = vld [vmem:[#allocation10_spill] sm:$0xff]  ;;  %v7716_v55 = vld [vmem:[#allocation32_spill] sm:$0xff] }
 0x1c1   : > { %vm7681_vm6 = vcmp.le.s32.totalorder %v5767_v43, 16  ;;  %vm7682_vm7 = vcmp.ge.s32.totalorder %v5767_v43, 1  ;;  %v7683_v24 = vmov 0  ;;  %v2500_v41 = vmul.u32 18, %v6073_v29 }
 0x1c2   : > { %vm6128_vm13 = vmand %vm7682_vm7, %vm7681_vm6  ;;  %vm7685_vm8 = vnez %v7590_v37  ;;  %vm7686_vm0 = vnez %v7602_v0  ;;  %vm7688_vm4 = vnez %v7598_v51  ;;  %vm7689_vm11 = vnez %v7610_v52  ;;  %v7691_v37 = vld [vmem:[#allocation9_spill] sm:$0xff]  ;;  %v2179_v52 = vpop.f32.mrf.mxu0 }
 0x1c3   : > { %v7684_v24 = vsel %vm6128_vm13, 4294967295, %v7683_v24  ;;  %vm7687_vm5 = vmand %vm7685_vm8, %vm7686_vm0  ;;  %v2276_v53 = vadd.f32 %v5776_v38, %v2246_v11  ;;  %v2249_v63 = vadd.f32 %v4417_v23, %v2033_v47  ;;  %v7692_v0 = vld [vmem:[#allocation37_spill] sm:$0xff]  ;;  %v2301_v29 = vmax.f32 %v2278_v28, 0.0 }
 0x1c4   : > { %v2666_v20 = vsel %vm7687_vm5, %v2295_v16, 0.0  ;;  %vm7690_vm6 = vmand %vm7688_vm4, %vm7689_vm11  ;;  %v1792_v59 = vadd.f32 %v7692_v0, %v7691_v37  ;;  %vm7693_vm0 = vcmp.lt.s32.totalorder %v7629_v44, 306  ;;  %vm7694_vm5 = vcmp.ge.s32.totalorder %v7629_v44, 18 }
 0x1c5   : > { %v2667_v43 = vsel %vm7690_vm6, %v2296_v9, 0.0  ;;  %vm6158_vm4 = vmand %vm7694_vm5, %vm7693_vm0  ;;  %v6166_v14 = vadd.s32 %v5474_v6, %v6076_v31  ;;  %v2036_v46 = vadd.f32 %v7697_v62, %v1791_v8  ;;  %v2279_v34 = vadd.f32 %v5776_v38, %v2249_v63  ;;  %v4420_v9 = vpop.f32.mrf.mxu0 }
 0x1c6   : > { %v2687_v51 = vpack.c.bf16 %v2667_v43, %v2666_v20  ;;  %v2247_v47 = vadd.f32 %v2179_v52, %v2031_v30  ;;  %vm7699_vm5 = vcmp.le.s32.totalorder %v5793_v19, 16  ;;  %vm7700_vm11 = vcmp.ge.s32.totalorder %v5793_v19, 1 }
 0x1c7   : > { %vm6178_vm15 = vmand %vm7700_vm11, %vm7699_vm5  ;;  %v6185_v48 = vadd.s32 168, %v5422_v27  ;;  %v2034_v8 = vadd.f32 %v7703_v26, %v1789_v39  ;;  %v1790_v36 = vadd.f32 %v7705_v10, %v7704_v21  ;;  %vm7706_vm0 = vcmask 130048   ;;  %v7718_v39 = vld [vmem:[#allocation41_spill] sm:$0xff] }
 0x1c8   : > { %4436 = vmatprep.mubr.msk.bf16.mxu1 %vm7706_vm0, %v2687_v51  ;;  %vm7707_vm11 = vcmp.lt.s32.totalorder %v5771_v25, 306  ;;  %vm7708_vm5 = vcmp.ge.s32.totalorder %v5771_v25, 18  ;;  %v6200_v28 = vsub.s32 %v5880_v2, %v2495_v17  ;;  %v2452_v27 = vmul.u32 57, %v6076_v31  ;;  %vm7711_vm8 = vmmov %vm7706_vm0  ;;  %v7717_v17 = vld [vmem:[#allocation11_spill] sm:$0xff] }
 0x1c9   : > { %vm6195_vm7 = vmand %vm7708_vm5, %vm7707_vm11  ;;  %v2299_v11 = vmax.f32 %v2276_v53, 0.0  ;;  %v2302_v5 = vmax.f32 %v2279_v34, 0.0  ;;  %v2277_v30 = vadd.f32 %v5776_v38, %v2247_v47  ;;  %v2252_v40 = vadd.f32 %v4420_v9, %v2036_v46  ;;  %4437 = vmatmul.mubr.msk.bf16.gmra.mxu1 %vm7711_vm8, %v2688_v45  ;;  %v2192_v45 = vpop.f32.mrf.mxu0  ;;  %v7750_v9 = vld [vmem:[#allocation38_spill] sm:$0xff] }
 0x1ca   : > { %vm7712_vm0 = vcmp.le.s32.totalorder %v5796_v12, 16  ;;  %vm7713_vm3 = vcmp.ge.s32.totalorder %v5796_v12, 1  ;;  %v2037_v2 = vadd.f32 %v7716_v55, %v1792_v59  ;;  %v1795_v23 = vadd.f32 %v7718_v39, %v7717_v17 }
 0x1cb   : > { %vm6209_vm11 = vmand %vm7713_vm3, %vm7712_vm0  ;;  %vm7719_vm5 = vnez %v7618_v3  ;;  %vm7720_vm13 = vnez %v7636_v58  ;;  %vm7722_vm8 = vcmp.lt.s32.totalorder %v5800_v4, 306  ;;  %vm7723_vm0 = vcmp.ge.s32.totalorder %v5800_v4, 18  ;;  %v4421_v59 = vpop.f32.mrf.mxu0 }
 0x1cc   : > { %vm7721_vm6 = vmand %vm7719_vm5, %vm7720_vm13  ;;  %v6236_v3 = vsub.s32 %v5895_v56, %v2500_v41  ;;  %v2300_v43 = vmax.f32 %v2277_v30, 0.0  ;;  %v2282_v4 = vadd.f32 %v5776_v38, %v2252_v40  ;;  %v2250_v53 = vadd.f32 %v2192_v45, %v2034_v8  ;;  %v7731_v56 = vld [vmem:[#allocation34_spill] sm:$0xff]  ;;  %v7733_v41 = vld [vmem:[#allocation43_spill] sm:$0xff] }
 0x1cd   : > { %v2672_v20 = vsel %vm7721_vm6, %v2301_v29, 0.0  ;;  %vm6229_vm14 = vmand %vm7723_vm0, %vm7722_vm8  ;;  %vm7727_vm6 = vcmp.le.s32.totalorder %v5839_v15, 16  ;;  %vm7728_vm5 = vcmp.ge.s32.totalorder %v5839_v15, 1  ;;  %v7729_v63 = vmov 0  ;;  %v2195_v26 = vpop.f32.mrf.mxu0  ;;  %v7752_v30 = vld [vmem:[#allocation47_spill] sm:$0xff] }
 0x1ce   : > { %vm7726_vm13 = vmand %vm6020_vm1, %vm6067_vm2  ;;  %v2035_v18 = vadd.f32 %v7731_v56, %v1790_v36  ;;  %v1793_v37 = vadd.f32 %v7733_v41, %v7732_v60  ;;  %v2453_v15 = vmul.u32 57, %v6185_v48  ;;  %v2280_v52 = vadd.f32 %v5776_v38, %v2250_v53  ;;  %v7774_v41 = vld [vmem:[#allocation42_spill] sm:$0xff] }
 0x1cf   : > { %v2673_v58 = vsel %vm7726_vm13, %v2302_v5, 0.0  ;;  %vm6248_vm8 = vmand %vm7728_vm5, %vm7727_vm6  ;;  %vm7737_vm5 = vnez %v7676_v7  ;;  %v2253_v62 = vadd.f32 %v4421_v59, %v2037_v2  ;;  %v1796_v34 = vadd.f32 %v7744_v33, %v7743_v35  ;;  %v7745_v7 = vld [vmem:[#allocation36_spill] sm:$0xff]  ;;  %v7751_v5 = vld [vmem:[#allocation14_spill] sm:$0xff]  ;;  %v4424_v40 = vpop.f32.mrf.mxu0 }
 0x1d0   : > { %v7730_v63 = vsel %vm6248_vm8, 4294967295, %v7729_v63  ;;  %v2690_v0 = vpack.c.bf16 %v2673_v58, %v2672_v20  ;;  %vm7734_vm2 = vmmov %vm6032_vm9  ;;  %vm7740_vm9 = vcmp.ge.s32.totalorder %v5818_v13, 18  ;;  %v2305_v50 = vmax.f32 %v2282_v4, 0.0  ;;  %v7763_v20 = vld [vmem:[#allocation40_spill] sm:$0xff]  ;;  %v7764_v58 = vld [vmem:[#allocation15_spill] sm:$0xff] }
 0x1d1   : > { %vm7735_vm13 = vmand %vm5985_vm12, %vm7734_vm2  ;;  %v2040_v8 = vadd.f32 %v7745_v7, %v1795_v23  ;;  %v2283_v21 = vadd.f32 %v5776_v38, %v2253_v62  ;;  %v2251_v10 = vadd.f32 %v2195_v26, %v2035_v18  ;;  %v2303_v2 = vmax.f32 %v2280_v52, 0.0  ;;  %v2208_v56 = vpop.f32.mrf.mxu0  ;;  %v7776_v59 = vld [vmem:[#allocation50_spill] sm:$0xff] }
 0x1d2   : > { %v2670_v51 = vsel %vm7735_vm13, %v2299_v11, 0.0  ;;  %vm7736_vm6 = vmmov %vm6050_vm10  ;;  %vm7739_vm10 = vcmp.lt.s32.totalorder %v5818_v13, 306  ;;  %v2475_v13 = vshra.s32 %v2452_v27, 10  ;;  %v2038_v11 = vadd.f32 %v7750_v9, %v1793_v37  ;;  %v7793_v7 = vld [vmem:[#allocation46_spill] sm:$0xff] }
 0x1d3   : > { %vm7738_vm0 = vmand %vm7736_vm6, %vm7737_vm5  ;;  %v1794_v27 = vadd.f32 %v7752_v30, %v7751_v5  ;;  %vm7753_vm5 = vcmp.le.s32.totalorder %v5910_v32, 16  ;;  %v2306_v17 = vmax.f32 %v2283_v21, 0.0  ;;  %v2281_v39 = vadd.f32 %v5776_v38, %v2251_v10  ;;  %v4425_v19 = vpop.f32.mrf.mxu0  ;;  %v7795_v21 = vld [vmem:[#allocation52_spill] sm:$0xff] }
 0x1d4   : > { %v2671_v29 = vsel %vm7738_vm0, %v2300_v43, 0.0  ;;  %vm6277_vm3 = vmand %vm7740_vm9, %vm7739_vm10  ;;  %vm7746_vm10 = vcmp.lt.s32.totalorder %v5844_v49, 306  ;;  %vm7747_vm9 = vcmp.ge.s32.totalorder %v5844_v49, 18  ;;  %vm7754_vm0 = vcmp.ge.s32.totalorder %v5910_v32, 1  ;;  %v7765_v43 = vld [vmem:[#allocation48_spill] sm:$0xff] }
 0x1d5   : > { %v2689_v47 = vpack.c.bf16 %v2671_v29, %v2670_v51  ;;  %vm6295_vm13 = vmand %vm7747_vm9, %vm7746_vm10  ;;  %vm7757_vm10 = vcmask 130048   ;;  %v2476_v49 = vshra.s32 %v2453_v15, 10  ;;  %v2256_v23 = vadd.f32 %v4424_v40, %v2040_v8  ;;  %v2211_v44 = vpop.f32.mrf.mxu0  ;;  %v2011_v40 = vpop.f32.mrf.mxu1 }
 0x1d6   : > { %vm6307_vm2 = vmand %vm7754_vm0, %vm7753_vm5  ;;  %vm7759_vm0 = vcmp.le.s32.totalorder %v5913_v54, 16  ;;  %vm7760_vm5 = vcmp.ge.s32.totalorder %v5913_v54, 1  ;;  %v7761_v32 = vmov 0  ;;  %v2041_v45 = vadd.f32 %v7763_v20, %v1796_v34  ;;  %v7788_v34 = vld [vmem:[#allocation44_spill] sm:$0xff] }
 0x1d7   : > { %4440 = vmatprep.mubr.msk.bf16.mxu1 %vm7757_vm10, %v2689_v47  ;;  %vm7758_vm1 = vmmov %vm7757_vm10  ;;  %v1799_v4 = vadd.f32 %v7765_v43, %v7764_v58  ;;  %vm7766_vm10 = vnez %v7668_v57  ;;  %vm7767_vm6 = vnez %v7684_v24  ;;  %vm7770_vm9 = vcmp.ge.s32.totalorder %v5875_v61, 18 }
 0x1d8   : > { %4441 = vmatmul.mubr.msk.bf16.gmra.mxu1 %vm7758_vm1, %v2690_v0  ;;  %vm6321_vm8 = vmand %vm7760_vm5, %vm7759_vm0  ;;  %vm7769_vm1 = vcmp.lt.s32.totalorder %v5875_v61, 306  ;;  %v2498_v18 = vmul.u32 18, %v2475_v13  ;;  %v2304_v60 = vmax.f32 %v2281_v39, 0.0  ;;  %v2286_v24 = vadd.f32 %v5776_v38, %v2256_v23  ;;  %v7775_v0 = vld [vmem:[#allocation16_spill] sm:$0xff] }
 0x1d9   : > { %v7762_v32 = vsel %vm6321_vm8, 4294967295, %v7761_v32  ;;  %vm7768_vm12 = vmand %vm7766_vm10, %vm7767_vm6  ;;  %v2254_v61 = vadd.f32 %v2208_v56, %v2038_v11  ;;  %v2039_v37 = vadd.f32 %v7774_v41, %v1794_v27  ;;  %v1797_v15 = vadd.f32 %v7776_v59, %v7775_v0 }
 0x1da   : > { %v2676_v53 = vsel %vm7768_vm12, %v2305_v50, 0.0  ;;  %vm6337_vm0 = vmand %vm7770_vm9, %vm7769_vm1  ;;  %v2499_v25 = vmul.u32 18, %v2476_v49  ;;  %vm7778_vm6 = vnez %v7730_v63  ;;  %v2257_v35 = vadd.f32 %v4425_v19, %v2041_v45 }
 0x1db   : > { %vm7773_vm5 = vmand %vm6195_vm7, %vm6209_vm11  ;;  %v2284_v62 = vadd.f32 %v5776_v38, %v2254_v61  ;;  %vm7780_vm10 = vcmp.le.s32.totalorder %v6057_v1, 16  ;;  %vm7781_vm1 = vcmp.ge.s32.totalorder %v6057_v1, 1  ;;  %v2521_v63 = vsub.s32 %v6076_v31, %v2498_v18  ;;  %v7794_v31 = vld [vmem:[#allocation17_spill] sm:$0xff] }
 0x1dc   : > { %v2677_v57 = vsel %vm7773_vm5, %v2306_v17, 0.0  ;;  %vm7777_vm11 = vmand %vm6158_vm4, %vm6178_vm15  ;;  %vm7784_vm15 = vcmp.lt.s32.totalorder %v5933_v42, 306  ;;  %vm7785_vm4 = vcmp.ge.s32.totalorder %v5933_v42, 18  ;;  %v2361_v1 = vadd.s32 %v5474_v6, %v6185_v48  ;;  %v4428_v6 = vpop.f32.mrf.mxu0 }
 0x1dd   : > { %v2692_v51 = vpack.c.bf16 %v2677_v57, %v2676_v53  ;;  %v2674_v29 = vsel %vm7777_vm11, %v2303_v2, 0.0  ;;  %vm7779_vm9 = vmand %vm6229_vm14, %vm7778_vm6  ;;  %v2044_v47 = vadd.f32 %v7788_v34, %v1799_v4  ;;  %v2309_v50 = vmax.f32 %v2286_v24, 0.0 }
 0x1de   : > { %v2675_v52 = vsel %vm7779_vm9, %v2304_v60, 0.0  ;;  %vm6373_vm5 = vmand %vm7781_vm1, %vm7780_vm10  ;;  %v2287_v26 = vadd.f32 %v5776_v38, %v2257_v35  ;;  %v2255_v13 = vadd.f32 %v2211_v44, %v2039_v37  ;;  %vm7789_vm6 = vcmp.le.s32.totalorder %v6200_v28, 16 }
 0x1df   : > { %v2691_v16 = vpack.c.bf16 %v2675_v52, %v2674_v29  ;;  %vm6381_vm11 = vmand %vm7785_vm4, %vm7784_vm15  ;;  %vm7790_vm9 = vcmp.ge.s32.totalorder %v6200_v28, 1  ;;  %v2042_v8 = vadd.f32 %v7793_v7, %v1797_v15  ;;  %v1798_v10 = vadd.f32 %v7795_v21, %v7794_v31 }
 0x1e0   : > { %vm6395_vm10 = vmand %vm7790_vm9, %vm7789_vm6  ;;  %vm7796_vm4 = vcmask 130048   ;;  %v2522_v28 = vsub.s32 %v6185_v48, %v2499_v25  ;;  %v2307_v9 = vmax.f32 %v2284_v62, 0.0  ;;  %v2310_v11 = vmax.f32 %v2287_v26, 0.0  ;;  %v2224_v48 = vpop.f32.mrf.mxu0 }
 0x1e1   : > { %4444 = vmatprep.mubr.msk.bf16.mxu1 %vm7796_vm4, %v2691_v16  ;;  %v2285_v5 = vadd.f32 %v5776_v38, %v2255_v13  ;;  %v2260_v30 = vadd.f32 %v4428_v6, %v2044_v47  ;;  %vm7797_vm6 = vcmp.lt.s32.totalorder %v5973_v22, 306  ;;  %vm7798_vm9 = vcmp.ge.s32.totalorder %v5973_v22, 18  ;;  %vm7801_vm14 = vmmov %vm7796_vm4 }
 0x1e2   : > { %vm6414_vm7 = vmand %vm7798_vm9, %vm7797_vm6  ;;  %4445 = vmatmul.mubr.msk.bf16.gmra.mxu1 %vm7801_vm14, %v2692_v51  ;;  %vm2384_vm12 = vcmp.ge.s32.totalorder %v2361_v1, 18  ;;  %vm2407_vm8 = vcmp.lt.s32.totalorder %v2361_v1, 306  ;;  %v2258_v17 = vadd.f32 %v2224_v48, %v2042_v8  ;;  %vm7804_vm9 = vcmp.lt.s32.totalorder %v6166_v14, 306  ;;  %v4429_v20 = vpop.f32.mrf.mxu0 }
 0x1e3   : > { %vm2610_vm4 = vmand %vm6381_vm11, %vm6395_vm10  ;;  %v2308_v2 = vmax.f32 %v2285_v5, 0.0  ;;  %vm7805_vm15 = vcmp.ge.s32.totalorder %v6166_v14, 18  ;;  %v7806_v39 = vmov 0  ;;  %v2290_v55 = vadd.f32 %v5776_v38, %v2260_v30 }
 0x1e4   : > { %vm7802_vm6 = vmand %vm6277_vm3, %vm6307_vm2  ;;  %vm7808_vm3 = vcmp.le.s32.totalorder %v6236_v3, 16  ;;  %vm7809_vm2 = vcmp.ge.s32.totalorder %v6236_v3, 1  ;;  %v2043_v45 = vadd.f32 %v2011_v40, %v1798_v10  ;;  %v2288_v58 = vadd.f32 %v5776_v38, %v2258_v17  ;;  %v2227_v36 = vpop.f32.mrf.mxu0 }
 0x1e5   : > { %v2680_v22 = vsel %vm7802_vm6, %v2309_v50, 0.0  ;;  %vm7803_vm14 = vmand %vm6337_vm0, %vm6373_vm5  ;;  %vm2545_vm0 = vcmp.ge.s32.totalorder %v2522_v28, 1  ;;  %vm2568_vm5 = vcmp.le.s32.totalorder %v2522_v28, 16  ;;  %v2679_v3 = vsel %vm2610_vm4, %v2308_v2, 0.0 }
 0x1e6   : > { %v2681_v49 = vsel %vm7803_vm14, %v2310_v11, 0.0  ;;  %vm6437_vm1 = vmand %vm7805_vm15, %vm7804_vm9  ;;  %vm7812_vm15 = vnez %v7762_v32  ;;  %v2259_v32 = vadd.f32 %v2227_v36, %v2043_v45  ;;  %v2313_v53 = vmax.f32 %v2290_v55, 0.0 }
 0x1e7   : > { %v7807_v39 = vsel %vm6437_vm1, 4294967295, %v7806_v39  ;;  %v2694_v46 = vpack.c.bf16 %v2681_v49, %v2680_v22  ;;  %vm6446_vm6 = vmand %vm7809_vm2, %vm7808_vm3  ;;  %vm7816_vm3 = vcmp.le.s32.totalorder %v2521_v63, 16  ;;  %vm7817_vm2 = vcmp.ge.s32.totalorder %v2521_v63, 1 }
 0x1e8   : > { %vm7813_vm14 = vmand %vm6295_vm13, %vm7812_vm15  ;;  %vm7818_vm10 = vcmask 130048   ;;  %v2311_v56 = vmax.f32 %v2288_v58, 0.0  ;;  %v2289_v54 = vadd.f32 %v5776_v38, %v2259_v32 }
 0x1e9   : > { %v2678_v14 = vsel %vm7813_vm14, %v2307_v9, 0.0  ;;  %vm6463_vm9 = vmand %vm2384_vm12, %vm2407_vm8  ;;  %vm7819_vm8 = vnez %v7807_v39  ;;  %vm7828_vm14 = vcmask 1044480  }
 0x1ea   : > { %v2693_v4 = vpack.c.bf16 %v2679_v3, %v2678_v14  ;;  %vm2590_vm1 = vmand %vm7817_vm2, %vm7816_vm3  ;;  %v2312_v18 = vmax.f32 %v2289_v54, 0.0  ;;  %vm7831_vm3 = vcmask 1043456  }
 0x1eb   : > { %vm2591_vm13 = vmand %vm2545_vm0, %vm2568_vm5  ;;  %vm7826_vm0 = vcmask 1046528  }
 0x1ec   : > { %vm2615_vm11 = vmand %vm6414_vm7, %vm6446_vm6  ;;  %4448 = vmatprep.mubr.msk.bf16.mxu1 %vm7818_vm10, %v2693_v4 }
 0x1ed   : > { %vm2613_vm12 = vmand %vm7819_vm8, %vm2590_vm1  ;;  %v2684_v57 = vsel %vm2615_vm11, %v2313_v53, 0.0  ;;  %vm7825_vm1 = vcmask 1045504   ;;  %vm3612_vm11 = vcmask 1041408  }
 0x1ee   : > { %vm7820_vm4 = vmmov %vm7818_vm10  ;;  %v2682_v60 = vsel %vm2613_vm12, %v2311_v56, 0.0  ;;  %v2696_v41 = vpack.c.bf16 %v2684_v57, %v2684_v57 }
 0x1ef   : > { %4449 = vmatmul.mubr.msk.bf16.gmra.mxu1 %vm7820_vm4, %v2694_v46  ;;  %vm2614_vm15 = vmand %vm6463_vm9, %vm2591_vm13 }
 0x1f0   : > { %v2683_v24 = vsel %vm2614_vm15, %v2312_v18, 0.0  ;;  %vm7821_vm7 = vmmov %vm7820_vm4 }
 0x1f1   : > { %v2695_v61 = vpack.c.bf16 %v2683_v24, %v2682_v60  ;;  %vm7822_vm6 = vmmov %vm7820_vm4 }
 0x1f2   : > { %vm7827_vm5 = vmmov %vm7825_vm1 }
 0x1f3   : > { %4452 = vmatprep.mubr.msk.bf16.mxu1 %vm7821_vm7, %v2695_v61  ;;  %vm7829_vm9 = vmmov %vm7826_vm0 }
 0x1f4   : > { %vm7832_vm2 = vmmov %vm7825_vm1 }
 0x1f5   : > { %vm7833_vm13 = vmmov %vm7826_vm0 }
 0x1f6   : > { %vm7835_vm10 = vmmov %vm7826_vm0 }
 0x1f7   : > { %4453 = vmatmul.mubr.msk.bf16.gmra.mxu1 %vm7822_vm6, %v2696_v41  ;;  %vm7836_vm8 = vmmov %vm7828_vm14 }
 0x1f8   : > { %vm7837_vm12 = vmmov %vm7825_vm1 }
 0x1f9   : > { %vm7838_vm4 = vmmov %vm7831_vm3 }
 0x1fa   : > { %vm7839_vm15 = vmmov %vm7826_vm0 }
 0x1fb   : > { %vm7840_vm7 = vmmov %vm7825_vm1 }
 0x1fc   : > { %vm7841_vm6 = vmmov %vm7826_vm0 }
 0x27c   : > { %v6482_v37 = vpop.f32.mrf.mxu1 }
 0x27d   : > { %7823 = vst [vmem:[#allocation18_spill] sm:$0xff] %v6482_v37  ;;  %v3021_v59 = vrot.slane %v6482_v37, 2  ;;  %v2911_v51 = vrot.slane %v6482_v37, 1  ;;  %v3206_v1 = vrot.slane %v6482_v37, 3  ;;  %v3315_v7 = vrot.slane %v6482_v37, 4 }
 0x27e   : > { %v6484_v0 = vpop.f32.mrf.mxu1 }
 0x27f   : > { %v2908_v28 = vrot.slane %v6484_v0, 1  ;;  %v3018_v46 = vrot.slane %v6484_v0, 2 }
 0x280   : > { %v6486_v38 = vpop.f32.mrf.mxu1 }
 0x281   : > { %7824 = vst [vmem:[#allocation2_spill] sm:$0xff] %v6486_v38  ;;  %v3023_v15 = vrot.slane %v6486_v38, 2  ;;  %v2913_v19 = vrot.slane %v6486_v38, 1  ;;  %v3207_v44 = vrot.slane %v6486_v38, 3  ;;  %v3316_v26 = vrot.slane %v6486_v38, 4 }
 0x282   : > { %v6492_v25 = vpop.f32.mrf.mxu1 }
 0x283   : > { %v3019_v29 = vrot.slane %v6492_v25, 2  ;;  %v3024_v52 = vsel %vm7825_vm1, %v3021_v59, %v3023_v15  ;;  %v2914_v62 = vsel %vm7826_vm0, %v2911_v51, %v2913_v19  ;;  %v3208_v47 = vsel %vm7828_vm14, %v3206_v1, %v3207_v44  ;;  %vm7842_vm0 = vmmov %vm7836_vm8 }
 0x284   : > { %3059 = vrot.lane.b32.xlu0 %v3024_v52, %s4573_s13  ;;  %2949 = vrot.lane.b32.xlu1 %v2914_v62, %s4574_s14  ;;  %v2909_v31 = vrot.slane %v6492_v25, 1  ;;  %v3317_v21 = vsel %vm7831_vm3, %v3315_v7, %v3316_v26  ;;  %vm7844_vm14 = vmmov %vm7842_vm0 }
 0x285   : > { %v3022_v16 = vsel %vm7827_vm5, %v3019_v29, %v3021_v59  ;;  %v3020_v23 = vsel %vm7837_vm12, %v3018_v46, %v3019_v29  ;;  %vm7843_vm5 = vmmov %vm7831_vm3  ;;  %vm3502_vm3 = vcmask 1042432  }
 0x286   : > { %v2910_v11 = vsel %vm7833_vm13, %v2908_v28, %v2909_v31  ;;  %v2912_v49 = vsel %vm7835_vm10, %v2909_v31, %v2911_v51  ;;  %vm7847_vm13 = vmmov %vm7838_vm4 }
 0x287   : > { %vm7848_vm10 = vmmov %vm7838_vm4 }
 0x288   : > { %3133 = vrot.lane.b32.xlu0 %v3024_v52, %s4575_s15  ;;  %3057 = vrot.lane.b32.xlu1 %v3022_v16, %s4573_s13  ;;  %vm7850_vm12 = vmmov %vm7842_vm0 }
 0x289   : > { %v6499_v35 = vpop.f32.mrf.mxu1 }
 0x28a   : > { %v3616_v3 = vrot.slane %v6499_v35, 6  ;;  %v2919_v58 = vrot.slane %v6499_v35, 1  ;;  %v3029_v54 = vrot.slane %v6499_v35, 2  ;;  %v3322_v16 = vrot.slane %v6499_v35, 4 }
 0x28b   : > { %v6501_v33 = vpop.f32.mrf.mxu1 }
 0x28c   : > { %v2915_v12 = vrot.slane %v6501_v33, 1  ;;  %v3025_v13 = vrot.slane %v6501_v33, 2  ;;  %3243 = vrot.lane.b32.xlu0 %v3208_v47, %s4576_s16  ;;  %v3209_v5 = vrot.slane %v6501_v33, 3  ;;  %v3318_v17 = vrot.slane %v6501_v33, 4 }
 0x28d   : > { %v6508_v63 = vpop.f32.mrf.mxu1 }
 0x28e   : > { %v2916_v50 = vsel %vm7829_vm9, %v2913_v19, %v2915_v12  ;;  %v3026_v10 = vsel %vm7832_vm2, %v3023_v15, %v3025_v13  ;;  %v3618_v30 = vrot.slane %v6508_v63, 6  ;;  %v3210_v2 = vsel %vm7836_vm8, %v3207_v44, %v3209_v5  ;;  %vm7845_vm9 = vmmov %vm7825_vm1 }
 0x28f   : > { %v6511_v34 = vpop.f32.mrf.mxu1  ;;  %2951 = vrot.lane.b32.xlu1 %v2916_v50, %s4574_s14  ;;  %v3319_v20 = vsel %vm7838_vm4, %v3316_v26, %v3318_v17  ;;  %v2921_v45 = vrot.slane %v6508_v63, 1  ;;  %v3031_v32 = vrot.slane %v6508_v63, 2  ;;  %v7479_v15 = vrot.slane %v6508_v63, 3  ;;  %vm7846_vm2 = vmmov %vm7842_vm0 }
 0x290   : > { %3352 = vrot.lane.b32.xlu0 %v3317_v21, %s4577_s17  ;;  %v3619_v4 = vsel %vm3612_vm11, %v3616_v3, %v3618_v30  ;;  %v2917_v53 = vrot.slane %v6511_v34, 1  ;;  %v3027_v24 = vrot.slane %v6511_v34, 2  ;;  %v3213_v19 = vrot.slane %v6499_v35, 3  ;;  %vm7849_vm8 = vmmov %vm7825_vm1 }
 0x291   : > { %v2922_v36 = vsel %vm7839_vm15, %v2919_v58, %v2921_v45  ;;  %v3032_v57 = vsel %vm7840_vm7, %v3029_v54, %v3031_v32  ;;  %v7477_v29 = vrot.slane %v6508_v63, 4  ;;  %v3211_v62 = vrot.slane %v6511_v34, 3  ;;  %vm7851_vm15 = vmmov %vm7841_vm6 }
 0x292   : > { %v2920_v60 = vsel %vm7841_vm6, %v2917_v53, %v2919_v58  ;;  %v3030_v59 = vsel %vm7825_vm1, %v3027_v24, %v3029_v54  ;;  %v3216_v52 = vsel %vm7842_vm0, %v3213_v19, %v7479_v15  ;;  %v3320_v50 = vrot.slane %v6511_v34, 4  ;;  %vm7852_vm7 = vmmov %vm7825_vm1 }
 0x293   : > { %3061 = vrot.lane.b32.xlu1 %v3026_v10, %s4573_s13  ;;  %v3325_v47 = vsel %vm7843_vm5, %v3322_v16, %v7477_v29  ;;  %v3214_v31 = vsel %vm7844_vm14, %v3211_v62, %v3213_v19  ;;  %v7478_v46 = vrot.slane %v6508_v63, 5  ;;  %v3506_v54 = vrot.slane %v6499_v35, 5  ;;  %vm7853_vm6 = vmmov %vm7842_vm0 }
 0x294   : > { %2945 = vrot.lane.b32.xlu0 %v2910_v11, %s4574_s14  ;;  %vm7854_vm1 = vmmov %vm7851_vm15 }
 0x295   : > { %v3509_v19 = vsel %vm3502_vm3, %v3506_v54, %v7478_v46  ;;  %vm7855_vm0 = vmmov %vm7838_vm4 }
 0x296   : > { %vm7856_vm5 = vmmov %vm7852_vm7 }
 0x297   : > { %3135 = vrot.lane.b32.xlu1 %v3026_v10, %s4575_s15  ;;  %vm7858_vm14 = vmmov %vm7846_vm2 }
 0x298   : > { %v6521_v42 = vpop.f32.mrf.mxu1  ;;  %2947 = vrot.lane.b32.xlu0 %v2912_v49, %s4574_s14 }
 0x299   : > { %7830 = vst [vmem:[#allocation23_spill] sm:$0xff] %v6521_v42 }
 0x29a   : > { %v6524_v8 = vpop.f32.mrf.mxu1 }
 0x29b   : > { %v7476_v27 = vrot.slane %v6524_v8, 6  ;;  %3245 = vrot.lane.b32.xlu1 %v3210_v2, %s4576_s16 }
 0x29c   : > { %v6533_v6 = vpop.f32.mrf.mxu1  ;;  %3055 = vrot.lane.b32.xlu0 %v3020_v23, %s4573_s13 }
 0x29d   : > { %v6549_v48 = vsel %vm3612_vm11, %v3618_v30, %v7476_v27 }
 0x29e   : > { %v6536_v9 = vpop.f32.mrf.mxu1 }
 0x29f   : > { %3354 = vrot.lane.b32.xlu1 %v3319_v20, %s4577_s17 }
 0x2a0   : > { %2957 = vrot.lane.b32.xlu0 %v2922_v36, %s4574_s14  ;;  %v3323_v36 = vsel %vm7848_vm10, %v3320_v50, %v3322_v16  ;;  %vm7864_vm10 = vmmov %vm7853_vm6 }
 0x2a2   : > { %v6544_v40 = vpop.f32.mrf.mxu1 }
 0x2a3   : > { %3654 = vrot.lane.b32.xlu1 %v3619_v4, %s4578_s25 }
 0x2a4   : > { %v6551_v22 = vpop.f32.mrf.mxu1  ;;  %3067 = vrot.lane.b32.xlu0 %v3032_v57, %s4573_s13 }
 0x2a5   : > { %7834 = vst [vmem:[#allocation49_spill] sm:$0xff] %v6551_v22 }
 0x2a6   : > { %v6560_v39 = vpop.f32.mrf.mxu1 }
 0x2a7   : > { %2955 = vrot.lane.b32.xlu1 %v2920_v60, %s4574_s14 }
 0x2a8   : > { %v6563_v55 = vpop.f32.mrf.mxu1  ;;  %3141 = vrot.lane.b32.xlu0 %v3032_v57, %s4575_s15 }
 0x2a9   : > { %v3336_v37 = vrot.slane %v6563_v55, 4 }
 0x2ab   : > { %3065 = vrot.lane.b32.xlu1 %v3030_v59, %s4573_s13 }
 0x2ac   : > { %3251 = vrot.lane.b32.xlu0 %v3216_v52, %s4576_s16  ;;  %v3504_v52 = vrot.slane %v6511_v34, 5 }
 0x2af   : > { %v6572_v14 = vpop.f32.mrf.mxu1  ;;  %3139 = vrot.lane.b32.xlu1 %v3030_v59, %s4575_s15 }
 0x2b0   : > { %v7475_v44 = vrot.slane %v6572_v14, 2  ;;  %v7474_v26 = vrot.slane %v6572_v14, 3  ;;  %v3530_v10 = vrot.slane %v6572_v14, 5  ;;  %3360 = vrot.lane.b32.xlu0 %v3325_v47, %s4577_s17  ;;  %v7473_v30 = vrot.slane %v6572_v14, 4 }
 0x2b1   : > { %v6576_v43 = vpop.f32.mrf.mxu1  ;;  %v3640_v20 = vrot.slane %v6572_v14, 6 }
 0x2b3   : > { %v6588_v56 = vpop.f32.mrf.mxu1  ;;  %3249 = vrot.lane.b32.xlu1 %v3214_v31, %s4576_s16 }
 0x2b4   : > { %v3129_v1 = vrot.slane %v6588_v56, 2  ;;  %v3239_v7 = vrot.slane %v6588_v56, 3  ;;  %v3532_v28 = vrot.slane %v6588_v56, 5  ;;  %v3348_v49 = vrot.slane %v6588_v56, 4  ;;  %3434 = vrot.lane.b32.xlu0 %v3325_v47, %s4579_s26 }
 0x2b5   : > { %v6591_v18 = vpop.f32.mrf.mxu1  ;;  %v3642_v58 = vrot.slane %v6588_v56, 6 }
 0x2b6   : > { %v6635_v21 = vsel %vm7845_vm9, %v7475_v44, %v3129_v1  ;;  %v6644_v11 = vsel %vm7846_vm2, %v7474_v26, %v3239_v7  ;;  %v6652_v23 = vsel %vm3502_vm3, %v3530_v10, %v3532_v28  ;;  %v6659_v4 = vsel %vm7847_vm13, %v7473_v30, %v3348_v49  ;;  %vm7861_vm9 = vmmov %vm7855_vm0 }
 0x2b7   : > { %v6602_v61 = vpop.f32.mrf.mxu1  ;;  %v6666_v57 = vsel %vm3612_vm11, %v3640_v20, %v3642_v58  ;;  %3358 = vrot.lane.b32.xlu1 %v3323_v36, %s4577_s17  ;;  %v7482_v56 = vrot.slane %v6591_v18, 5  ;;  %vm7862_vm2 = vmmov %vm7854_vm1 }
 0x2b8   : > { %v3538_v30 = vrot.slane %v6602_v61, 5  ;;  %v3648_v47 = vrot.slane %v6602_v61, 6  ;;  %3544 = vrot.lane.b32.xlu0 %v3509_v19, %s4580_s27  ;;  %vm7863_vm13 = vmmov %vm7856_vm5 }
 0x2b9   : > { %v6604_v41 = vpop.f32.mrf.mxu1  ;;  %v6685_v26 = vsel %vm3502_vm3, %v7482_v56, %v3530_v10 }
 0x2ba   : > { %v3131_v16 = vrot.slane %v6604_v41, 2  ;;  %v3241_v31 = vrot.slane %v6604_v41, 3  ;;  %v3534_v46 = vrot.slane %v6604_v41, 5  ;;  %v7480_v15 = vrot.slane %v6604_v41, 4 }
 0x2bb   : > { %v4455_v51 = vpop.f32.mrf.mxu1  ;;  %3432 = vrot.lane.b32.xlu1 %v3323_v36, %s4579_s26  ;;  %v3644_v10 = vrot.slane %v6604_v41, 6 }
 0x2bc   : > { %v7481_v51 = vrot.slane %v6591_v18, 6  ;;  %v6693_v27 = vsel %vm7849_vm8, %v3129_v1, %v3131_v16  ;;  %v6696_v29 = vsel %vm7850_vm12, %v3239_v7, %v3241_v31  ;;  %v3503_v7 = vrot.slane %v6501_v33, 5  ;;  %vm7865_vm8 = vmmov %vm7854_vm1 }
 0x2bd   : > { %v6648_v2 = vpop.f32.mrf.mxu1  ;;  %v6711_v16 = vsel %vm3502_vm3, %v3532_v28, %v3534_v46  ;;  %v6716_v31 = vsel %vm7838_vm4, %v3348_v49, %v7480_v15  ;;  %v6722_v19 = vsel %vm3612_vm11, %v3642_v58, %v3644_v10  ;;  %v2918_v28 = vsel %vm7851_vm15, %v2915_v12, %v2917_v53  ;;  %vm7866_vm12 = vmmov %vm7855_vm0 }
 0x2be   : > { %v3536_v60 = vrot.slane %v6648_v2, 5  ;;  %v3646_v59 = vrot.slane %v6648_v2, 6  ;;  %v6690_v44 = vsel %vm3612_vm11, %v7481_v51, %v3640_v20  ;;  %v3614_v49 = vrot.slane %v6511_v34, 6  ;;  %2953 = vrot.lane.b32.xlu0 %v2918_v28, %s4574_s14  ;;  %vm7867_vm4 = vmmov %vm7856_vm5 }
 0x2bf   : > { %v2923_v53 = vrot.slane %v6524_v8, 1  ;;  %v2929_v28 = vrot.slane %v6533_v6, 1  ;;  %vm7868_vm15 = vmmov %vm7853_vm6 }
 0x2c0   : > { %v6704_v20 = vsel %vm3502_vm3, %v3536_v60, %v3538_v30  ;;  %v6707_v1 = vsel %vm3612_vm11, %v3646_v59, %v3648_v47  ;;  %v6719_v36 = vsel %vm3502_vm3, %v3534_v46, %v3536_v60  ;;  %v6725_v30 = vsel %vm3612_vm11, %v3644_v10, %v3646_v59 }
 0x2c1   : > { %v3505_v47 = vsel %vm3502_vm3, %v3503_v7, %v3504_v52  ;;  %v3613_v46 = vrot.slane %v6501_v33, 6  ;;  %v3028_v60 = vsel %vm7852_vm7, %v3025_v13, %v3027_v24  ;;  %v3617_v12 = vsel %vm3612_vm11, %v3614_v49, %v3616_v3  ;;  %vm7871_vm7 = vmmov %vm7855_vm0 }
 0x2c2   : > { %3540 = vrot.lane.b32.xlu1 %v3505_v47, %s4580_s27  ;;  %3063 = vrot.lane.b32.xlu0 %v3028_v60, %s4573_s13  ;;  %v3212_v13 = vsel %vm7853_vm6, %v3209_v5, %v3211_v62  ;;  %v2924_v24 = vsel %vm7854_vm1, %v2921_v45, %v2923_v53  ;;  %v3033_v3 = vrot.slane %v6524_v8, 2  ;;  %v3321_v59 = vsel %vm7855_vm0, %v3318_v17, %v3320_v50  ;;  %vm7872_vm6 = vmmov %vm7854_vm1 }
 0x2c3   : > { %v3615_v58 = vsel %vm3612_vm11, %v3613_v46, %v3614_v49  ;;  %v3217_v45 = vrot.slane %v6524_v8, 3  ;;  %v3507_v62 = vsel %vm3502_vm3, %v3504_v52, %v3506_v54  ;;  %v7857_v17 = vrot.slane %v6508_v63, 3  ;;  %vm7875_vm1 = vmmov %vm7867_vm4 }
 0x2c4   : > { %v3034_v5 = vsel %vm7856_vm5, %v3031_v32, %v3033_v3  ;;  %v3510_v32 = vrot.slane %v6524_v8, 5  ;;  %v3326_v10 = vrot.slane %v6524_v8, 4  ;;  %v7859_v7 = vrot.slane %v6508_v63, 5  ;;  %vm7881_vm0 = vmmov %vm7864_vm10 }
 0x2c5   : > { %v3218_v50 = vsel %vm7858_vm14, %v7857_v17, %v3217_v45  ;;  %v7860_v52 = vrot.slane %v6508_v63, 4  ;;  %v2927_v49 = vrot.slane %v6521_v42, 1  ;;  %v3221_v17 = vrot.slane %v6521_v42, 3  ;;  %vm7883_vm5 = vmmov %vm7871_vm7 }
 0x2c6   : > { %3650 = vrot.lane.b32.xlu1 %v3615_v58, %s4578_s25  ;;  %3137 = vrot.lane.b32.xlu0 %v3028_v60, %s4575_s15  ;;  %v3511_v54 = vsel %vm3502_vm3, %v7859_v7, %v3510_v32  ;;  %v3039_v58 = vrot.slane %v6533_v6, 2  ;;  %v3037_v60 = vrot.slane %v6521_v42, 2  ;;  %v7484_v7 = vrot.slane %v6533_v6, 4  ;;  %vm7884_vm14 = vmmov %vm7862_vm2 }
 0x2c7   : > { %v3327_v47 = vsel %vm7861_vm9, %v7860_v52, %v3326_v10  ;;  %v2930_v46 = vsel %vm7862_vm2, %v2927_v49, %v2929_v28  ;;  %v3330_v52 = vrot.slane %v6521_v42, 4  ;;  %vm7886_vm9 = vmmov %vm7875_vm1 }
 0x2c8   : > { %vm7889_vm2 = vmmov %vm7881_vm0 }
 0x2ca   : > { %3652 = vrot.lane.b32.xlu1 %v3617_v12, %s4578_s25  ;;  %3247 = vrot.lane.b32.xlu0 %v3212_v13, %s4576_s16  ;;  %v3040_v12 = vsel %vm7863_vm13, %v3037_v60, %v3039_v58  ;;  %v7483_v13 = vrot.slane %v6533_v6, 6  ;;  %vm7892_vm13 = vmmov %vm7883_vm5 }
 0x2ce   : > { %2959 = vrot.lane.b32.xlu1 %v2924_v24, %s4574_s14  ;;  %3356 = vrot.lane.b32.xlu0 %v3321_v59, %s4577_s17  ;;  %v3624_v24 = vrot.slane %v6521_v42, 6 }
 0x2d2   : > { %3069 = vrot.lane.b32.xlu1 %v3034_v5, %s4573_s13  ;;  %3430 = vrot.lane.b32.xlu0 %v3321_v59, %s4579_s26  ;;  %v3627_v59 = vsel %vm3612_vm11, %v3624_v24, %v7483_v13 }
 0x2d6   : > { %3143 = vrot.lane.b32.xlu1 %v3034_v5, %s4575_s15  ;;  %3542 = vrot.lane.b32.xlu0 %v3507_v62, %s4580_s27  ;;  %v3223_v5 = vrot.slane %v6533_v6, 3  ;;  %v2925_v62 = vrot.slane %v6536_v9, 1 }
 0x2da   : > { %3253 = vrot.lane.b32.xlu1 %v3218_v50, %s4576_s16  ;;  %3546 = vrot.lane.b32.xlu0 %v3511_v54, %s4580_s27  ;;  %v2928_v50 = vsel %vm7865_vm8, %v2925_v62, %v2927_v49  ;;  %v3035_v54 = vrot.slane %v6536_v9, 2  ;;  %v7487_v49 = vrot.slane %v6533_v6, 5  ;;  %vm7896_vm8 = vmmov %vm7875_vm1 }
 0x2de   : > { %3362 = vrot.lane.b32.xlu1 %v3327_v47, %s4577_s17  ;;  %2965 = vrot.lane.b32.xlu0 %v2930_v46, %s4574_s14  ;;  %v3038_v46 = vsel %vm7867_vm4, %v3035_v54, %v3037_v60  ;;  %vm7901_vm4 = vmmov %vm7872_vm6 }
 0x2e2   : > { %3436 = vrot.lane.b32.xlu1 %v3327_v47, %s4579_s26  ;;  %3075 = vrot.lane.b32.xlu0 %v3040_v12, %s4573_s13  ;;  %v3333_v47 = vsel %vm7866_vm12, %v3330_v52, %v7484_v7  ;;  %v7486_v7 = vrot.slane %v6551_v22, 1  ;;  %vm7900_vm12 = vmmov %vm7881_vm0 }
 0x2e6   : > { %3656 = vrot.lane.b32.xlu1 %v6549_v48, %s4578_s25  ;;  %3149 = vrot.lane.b32.xlu0 %v3040_v12, %s4575_s15  ;;  %v3224_v48 = vsel %vm7864_vm10, %v3221_v17, %v3223_v5  ;;  %v3219_v12 = vrot.slane %v6536_v9, 3  ;;  %vm7893_vm10 = vmmov %vm7872_vm6 }
 0x2e8   : > { %v3222_v60 = vsel %vm7868_vm15, %v3219_v12, %v3221_v17  ;;  %vm7904_vm15 = vmmov %vm7883_vm5 }
 0x2ea   : > { %3662 = vrot.lane.b32.xlu1 %v3627_v59, %s4578_s25  ;;  %3259 = vrot.lane.b32.xlu0 %v3224_v48, %s4576_s16  ;;  %v3514_v59 = vrot.slane %v6521_v42, 5 }
 0x2ec   : > { %v3517_v48 = vsel %vm3502_vm3, %v3514_v59, %v7487_v49  ;;  %v7491_v49 = vrot.slane %v6551_v22, 4 }
 0x2ee   : > { %2963 = vrot.lane.b32.xlu1 %v2928_v50, %s4574_s14  ;;  %3368 = vrot.lane.b32.xlu0 %v3333_v47, %s4577_s17  ;;  %v3328_v50 = vrot.slane %v6536_v9, 4 }
 0x2f2   : > { %3073 = vrot.lane.b32.xlu1 %v3038_v46, %s4573_s13  ;;  %3442 = vrot.lane.b32.xlu0 %v3333_v47, %s4579_s26  ;;  %v3331_v47 = vsel %vm7871_vm7, %v3328_v50, %v3330_v52  ;;  %vm7905_vm7 = vmmov %vm7875_vm1 }
 0x2f6   : > { %3147 = vrot.lane.b32.xlu1 %v3038_v46, %s4575_s15  ;;  %3552 = vrot.lane.b32.xlu0 %v3517_v48, %s4580_s27  ;;  %v6853_v15 = vpop.permute.xlu0 %3059  ;;  %v6855_v51 = vpop.permute.xlu1 %2949  ;;  %v2926_v46 = vsel %vm7872_vm6, %v2923_v53, %v2925_v62  ;;  %v3036_v48 = vsel %vm7875_vm1, %v3033_v3, %v3035_v54  ;;  %v7878_v62 = vrot.slane %v6524_v8, 6  ;;  %vm7908_vm6 = vmmov %vm7881_vm0 }
 0x2f7   : > { %7869 = vst [vmem:[#allocation19_spill] sm:$0xff] %v6853_v15  ;;  %7870 = vst [vmem:[#allocation3_spill] sm:$0xff] %v6855_v51  ;;  %v7498_v15 = vrot.slane %v6560_v39, 4  ;;  %v7912_v51 = vrot.slane %v6551_v22, 1 }
 0x2f8   : > { %vm7911_vm1 = vmmov %vm7883_vm5 }
 0x2fa   : > { %3257 = vrot.lane.b32.xlu1 %v3222_v60, %s4576_s16  ;;  %2961 = vrot.lane.b32.xlu0 %v2926_v46, %s4574_s14  ;;  %v6863_v17 = vpop.permute.xlu0 %3133  ;;  %v6865_v56 = vpop.permute.xlu1 %3057  ;;  %v3622_v60 = vrot.slane %v6536_v9, 6 }
 0x2fb   : > { %7873 = vst [vmem:[#allocation25_spill] sm:$0xff] %v6863_v17  ;;  %7874 = vst [vmem:[#allocation51_spill] sm:$0xff] %v6865_v56 }
 0x2fc   : > { %v3623_v46 = vsel %vm3612_vm11, %v7878_v62, %v3622_v60  ;;  %v3625_v54 = vsel %vm3612_vm11, %v3622_v60, %v3624_v24  ;;  %v7485_v24 = vrot.slane %v6551_v22, 2 }
 0x2fe   : > { %3366 = vrot.lane.b32.xlu1 %v3331_v47, %s4577_s17  ;;  %3071 = vrot.lane.b32.xlu0 %v3036_v48, %s4573_s13  ;;  %v6873_v52 = vpop.permute.xlu0 %3243 }
 0x2ff   : > { %7876 = vst [vmem:[#allocation20_spill] sm:$0xff] %v6873_v52 }
 0x301   : > { %v6875_v53 = vpop.permute.xlu1 %2951 }
 0x302   : > { %3440 = vrot.lane.b32.xlu1 %v3331_v47, %s4579_s26  ;;  %7877 = vst [vmem:[#allocation4_spill] sm:$0xff] %v6875_v53  ;;  %3145 = vrot.lane.b32.xlu0 %v3036_v48, %s4575_s15  ;;  %v6882_v13 = vpop.permute.xlu0 %3352  ;;  %v3220_v47 = vsel %vm7881_vm0, %v3217_v45, %v3219_v12  ;;  %v3329_v48 = vsel %vm7883_vm5, %v3326_v10, %v3328_v50  ;;  %v3512_v50 = vrot.slane %v6536_v9, 5  ;;  %vm7913_vm0 = vmmov %vm7901_vm4 }
 0x303   : > { %7879 = vst [vmem:[#allocation27_spill] sm:$0xff] %v6882_v13  ;;  %v2932_v45 = vsel %vm7884_vm14, %v2929_v28, %v7486_v7  ;;  %v3042_v10 = vsel %vm7886_vm9, %v3039_v58, %v7485_v24  ;;  %vm7916_vm5 = vmmov %vm7905_vm7 }
 0x304   : > { %vm7921_vm14 = vmmov %vm7889_vm2 }
 0x305   : > { %v6884_v3 = vpop.permute.xlu1 %3061  ;;  %vm7924_vm9 = vmmov %vm7911_vm1 }
 0x306   : > { %3658 = vrot.lane.b32.xlu1 %v3623_v46, %s4578_s25  ;;  %7880 = vst [vmem:[#allocation5_spill] sm:$0xff] %v6884_v3  ;;  %3255 = vrot.lane.b32.xlu0 %v3220_v47, %s4576_s16  ;;  %v6893_v62 = vpop.permute.xlu0 %2945  ;;  %v3513_v47 = vsel %vm3502_vm3, %v3510_v32, %v3512_v50  ;;  %v7490_v32 = vrot.slane %v6551_v22, 5  ;;  %v7895_v3 = vrot.slane %v6533_v6, 6 }
 0x309   : > { %v6895_v46 = vpop.permute.xlu1 %3135 }
 0x30a   : > { %3660 = vrot.lane.b32.xlu1 %v3625_v54, %s4578_s25  ;;  %7882 = vst [vmem:[#allocation29_spill] sm:$0xff] %v6895_v46  ;;  %3364 = vrot.lane.b32.xlu0 %v3329_v48, %s4577_s17  ;;  %v6908_v12 = vpop.permute.xlu0 %2947  ;;  %v3043_v46 = vrot.slane %v6563_v55, 2 }
 0x30d   : > { %v6910_v60 = vpop.permute.xlu1 %3245 }
 0x30e   : > { %2967 = vrot.lane.b32.xlu1 %v2932_v45, %s4574_s14  ;;  %7885 = vst [vmem:[#allocation21_spill] sm:$0xff] %v6910_v60  ;;  %3438 = vrot.lane.b32.xlu0 %v3329_v48, %s4579_s26  ;;  %v6920_v28 = vpop.permute.xlu0 %3055  ;;  %v7488_v45 = vrot.slane %v6551_v22, 3  ;;  %v3515_v48 = vsel %vm3502_vm3, %v3512_v50, %v3514_v59  ;;  %v7890_v59 = vrot.slane %v6533_v6, 5 }
 0x310   : > { %v3226_v7 = vsel %vm7889_vm2, %v3223_v5, %v7488_v45  ;;  %v3519_v50 = vsel %vm3502_vm3, %v7890_v59, %v7490_v32  ;;  %v7891_v5 = vrot.slane %v6533_v6, 4  ;;  %v7494_v32 = vrot.slane %v6551_v22, 6  ;;  %vm7926_vm2 = vmmov %vm7913_vm0 }
 0x311   : > { %v6922_v54 = vpop.permute.xlu1 %3354 }
 0x312   : > { %3077 = vrot.lane.b32.xlu1 %v3042_v10, %s4573_s13  ;;  %7887 = vst [vmem:[#allocation22_spill] sm:$0xff] %v6922_v54  ;;  %3548 = vrot.lane.b32.xlu0 %v3513_v47, %s4580_s27  ;;  %v6932_v24 = vpop.permute.xlu0 %2957  ;;  %v3335_v45 = vsel %vm7892_vm13, %v7891_v5, %v7491_v49  ;;  %v7495_v5 = vrot.slane %v6560_v39, 2  ;;  %vm7929_vm13 = vmmov %vm7916_vm5 }
 0x315   : > { %v6930_v58 = vpop.permute.xlu1 %3654 }
 0x316   : > { %3151 = vrot.lane.b32.xlu1 %v3042_v10, %s4575_s15  ;;  %7888 = vst [vmem:[#allocation6_spill] sm:$0xff] %v6930_v58  ;;  %3550 = vrot.lane.b32.xlu0 %v3515_v48, %s4580_s27  ;;  %v6944_v10 = vpop.permute.xlu0 %3067  ;;  %v7492_v48 = vrot.slane %v6560_v39, 1 }
 0x319   : > { %v6946_v47 = vpop.permute.xlu1 %2955 }
 0x31a   : > { %3261 = vrot.lane.b32.xlu1 %v3226_v7, %s4576_s16  ;;  %3554 = vrot.lane.b32.xlu0 %v3519_v50, %s4580_s27  ;;  %v2935_v7 = vrot.slane %v6544_v40, 1  ;;  %v6962_v42 = vpop.permute.xlu0 %3141  ;;  %v3045_v50 = vrot.slane %v6544_v40, 2 }
 0x31c   : > { %v2938_v59 = vsel %vm7893_vm10, %v2935_v7, %v7492_v48  ;;  %v3629_v48 = vsel %vm3612_vm11, %v7895_v3, %v7494_v32  ;;  %v3048_v38 = vsel %vm7896_vm8, %v3045_v50, %v7495_v5  ;;  %v7497_v32 = vrot.slane %v6560_v39, 3  ;;  %vm7936_vm10 = vmmov %vm7908_vm6 }
 0x31d   : > { %v6964_v58 = vpop.permute.xlu1 %3065  ;;  %v2933_v5 = vrot.slane %v6563_v55, 1  ;;  %vm7939_vm8 = vmmov %vm7911_vm1 }
 0x31e   : > { %3370 = vrot.lane.b32.xlu1 %v3335_v45, %s4577_s17  ;;  %2973 = vrot.lane.b32.xlu0 %v2938_v59, %s4574_s14  ;;  %v6974_v49 = vpop.permute.xlu0 %3251  ;;  %v3632_v59 = vrot.slane %v6544_v40, 6 }
 0x31f   : > { %v2934_v56 = vsel %vm7913_vm0, %v7912_v51, %v2933_v5 }
 0x321   : > { %v6976_v54 = vpop.permute.xlu1 %3139 }
 0x322   : > { %3444 = vrot.lane.b32.xlu1 %v3335_v45, %s4579_s26  ;;  %7894 = vst [vmem:[#allocation31_spill] sm:$0xff] %v6976_v54  ;;  %v7496_v45 = vrot.slane %v6560_v39, 6  ;;  %3083 = vrot.lane.b32.xlu0 %v3048_v38, %s4573_s13  ;;  %v6990_v53 = vpop.permute.xlu0 %3360 }
 0x324   : > { %v3635_v3 = vsel %vm3612_vm11, %v3632_v59, %v7496_v45  ;;  %v2936_v45 = vsel %vm7901_vm4, %v2933_v5, %v2935_v7  ;;  %v3046_v7 = vsel %vm7905_vm7, %v3043_v46, %v3045_v50  ;;  %v7918_v5 = vrot.slane %v6551_v22, 6  ;;  %vm7943_vm4 = vmmov %vm7916_vm5 }
 0x325   : > { %v6992_v54 = vpop.permute.xlu1 %3249  ;;  %vm7947_vm7 = vmmov %vm7943_vm4 }
 0x326   : > { %3664 = vrot.lane.b32.xlu1 %v3629_v48, %s4578_s25  ;;  %7897 = vst [vmem:[#allocation24_spill] sm:$0xff] %v6992_v54  ;;  %3157 = vrot.lane.b32.xlu0 %v3048_v38, %s4575_s15  ;;  %v3229_v48 = vrot.slane %v6544_v40, 3  ;;  %v7002_v60 = vpop.permute.xlu0 %3434  ;;  %v3338_v38 = vrot.slane %v6544_v40, 4 }
 0x327   : > { %7898 = vst [vmem:[#allocation7_spill] sm:$0xff] %v7002_v60 }
 0x328   : > { %v3232_v54 = vsel %vm7900_vm12, %v3229_v48, %v7497_v32  ;;  %v3341_v32 = vsel %vm7904_vm15, %v3338_v38, %v7498_v15  ;;  %v3522_v15 = vrot.slane %v6544_v40, 5  ;;  %vm7941_vm12 = vmmov %vm7913_vm0 }
 0x329   : > { %v7004_v13 = vpop.permute.xlu1 %3358  ;;  %vm7945_vm15 = vmmov %vm7913_vm0 }
 0x32a   : > { %3670 = vrot.lane.b32.xlu1 %v3635_v3, %s4578_s25  ;;  %7899 = vst [vmem:[#allocation33_spill] sm:$0xff] %v7004_v13  ;;  %3267 = vrot.lane.b32.xlu0 %v3232_v54, %s4576_s16  ;;  %v7015_v3 = vpop.permute.xlu0 %3544  ;;  %vm7951_vm0 = vmmov %vm7908_vm6 }
 0x32b   : > { %7902 = vst [vmem:[#allocation26_spill] sm:$0xff] %v7015_v3  ;;  %v3227_v3 = vrot.slane %v6563_v55, 3 }
 0x32d   : > { %v7017_v60 = vpop.permute.xlu1 %3432  ;;  %v3230_v52 = vsel %vm7908_vm6, %v3227_v3, %v3229_v48 }
 0x32e   : > { %2971 = vrot.lane.b32.xlu1 %v2936_v45, %s4574_s14  ;;  %7903 = vst [vmem:[#allocation8_spill] sm:$0xff] %v7017_v60  ;;  %3376 = vrot.lane.b32.xlu0 %v3341_v32, %s4577_s17  ;;  %v7500_v45 = vrot.slane %v6560_v39, 5 }
 0x330   : > { %v7027_v54 = vpop.permute.xlu0 %2953 }
 0x332   : > { %3081 = vrot.lane.b32.xlu1 %v3046_v7, %s4573_s13  ;;  %3450 = vrot.lane.b32.xlu0 %v3341_v32, %s4579_s26 }
 0x334   : > { %v7025_v13 = vpop.permute.xlu1 %3540  ;;  %v7036_v50 = vpop.permute.xlu0 %3063 }
 0x335   : > { %7906 = vst [vmem:[#allocation35_spill] sm:$0xff] %v7025_v13  ;;  %v3525_v13 = vsel %vm3502_vm3, %v3522_v15, %v7500_v45 }
 0x336   : > { %3155 = vrot.lane.b32.xlu1 %v3046_v7, %s4575_s15  ;;  %3560 = vrot.lane.b32.xlu0 %v3525_v13, %s4580_s27  ;;  %v7915_v13 = vrot.slane %v6551_v22, 2 }
 0x338   : > { %v7034_v60 = vpop.permute.xlu1 %3650  ;;  %v7047_v7 = vpop.permute.xlu0 %3137 }
 0x339   : > { %7907 = vst [vmem:[#allocation9_spill] sm:$0xff] %v7034_v60  ;;  %7910 = vst [vmem:[#allocation28_spill] sm:$0xff] %v7047_v7  ;;  %v3339_v60 = vsel %vm7911_vm1, %v3336_v37, %v3338_v38 }
 0x33a   : > { %3265 = vrot.lane.b32.xlu1 %v3230_v52, %s4576_s16  ;;  %2969 = vrot.lane.b32.xlu0 %v2934_v56, %s4574_s14  ;;  %v3044_v52 = vsel %vm7916_vm5, %v7915_v13, %v3043_v46  ;;  %vm7953_vm5 = vmmov %vm7911_vm1 }
 0x33c   : > { %v7045_v32 = vpop.permute.xlu1 %3652  ;;  %v7055_v48 = vpop.permute.xlu0 %3247 }
 0x33d   : > { %7909 = vst [vmem:[#allocation37_spill] sm:$0xff] %v7045_v32  ;;  %7914 = vst [vmem:[#allocation30_spill] sm:$0xff] %v7055_v48  ;;  %v3630_v32 = vrot.slane %v6563_v55, 6 }
 0x33e   : > { %3374 = vrot.lane.b32.xlu1 %v3339_v60, %s4577_s17  ;;  %3079 = vrot.lane.b32.xlu0 %v3044_v52, %s4573_s13 }
 0x33f   : > { %v3631_v56 = vsel %vm3612_vm11, %v7918_v5, %v3630_v32  ;;  %v3633_v13 = vsel %vm3612_vm11, %v3630_v32, %v3632_v59  ;;  %v7925_v59 = vrot.slane %v6560_v39, 1  ;;  %v7502_v32 = vrot.slane %v6576_v43, 2 }
 0x340   : > { %v2960_v45 = vpop.permute.xlu1 %2959  ;;  %v7063_v38 = vpop.permute.xlu0 %3356 }
 0x341   : > { %7917 = vst [vmem:[#allocation10_spill] sm:$0xff] %v7063_v38  ;;  %v7501_v38 = vrot.slane %v6576_v43, 1 }
 0x342   : > { %3448 = vrot.lane.b32.xlu1 %v3339_v60, %s4579_s26  ;;  %3153 = vrot.lane.b32.xlu0 %v3044_v52, %s4575_s15  ;;  %v7920_v60 = vrot.slane %v6551_v22, 3  ;;  %v7923_v52 = vrot.slane %v6551_v22, 4 }
 0x344   : > { %v3070_v51 = vpop.permute.xlu1 %3069  ;;  %v7070_v48 = vpop.permute.xlu0 %3430  ;;  %v3228_v7 = vsel %vm7921_vm14, %v7920_v60, %v3227_v3  ;;  %v2940_v3 = vsel %vm7926_vm2, %v7925_v59, %v7501_v38  ;;  %vm7996_vm14 = vcmask 130048  }
 0x345   : > { %7919 = vst [vmem:[#allocation39_spill] sm:$0xff] %v7070_v48  ;;  %v3337_v48 = vsel %vm7924_vm9, %v7923_v52, %v3336_v37  ;;  %v7928_v37 = vrot.slane %v6560_v39, 2  ;;  %v3520_v52 = vrot.slane %v6563_v55, 5 }
 0x346   : > { %3666 = vrot.lane.b32.xlu1 %v3631_v56, %s4578_s25  ;;  %3263 = vrot.lane.b32.xlu0 %v3228_v7, %s4576_s16 }
 0x347   : > { %v3050_v60 = vsel %vm7929_vm13, %v7928_v37, %v7502_v32 }
 0x348   : > { %v7072_v46 = vpop.permute.xlu1 %3143  ;;  %v7081_v5 = vpop.permute.xlu0 %3542 }
 0x349   : > { %7922 = vst [vmem:[#allocation32_spill] sm:$0xff] %v7081_v5  ;;  %v7504_v5 = vrot.slane %v6576_v43, 3 }
 0x34a   : > { %3668 = vrot.lane.b32.xlu1 %v3633_v13, %s4578_s25  ;;  %3372 = vrot.lane.b32.xlu0 %v3337_v48, %s4577_s17 }
 0x34c   : > { %v7083_v56 = vpop.permute.xlu1 %3253  ;;  %v7096_v7 = vpop.permute.xlu0 %3546 }
 0x34d   : > { %7927 = vst [vmem:[#allocation11_spill] sm:$0xff] %v7096_v7 }
 0x34e   : > { %2975 = vrot.lane.b32.xlu1 %v2940_v3, %s4574_s14  ;;  %3446 = vrot.lane.b32.xlu0 %v3337_v48, %s4579_s26  ;;  %v7932_v3 = vrot.slane %v6551_v22, 5  ;;  %v3523_v48 = vsel %vm3502_vm3, %v3520_v52, %v3522_v15  ;;  %v7506_v22 = vrot.slane %v6576_v43, 4  ;;  %v7937_v15 = vrot.slane %v6560_v39, 5 }
 0x350   : > { %v7098_v13 = vpop.permute.xlu1 %3362  ;;  %v7110_v38 = vpop.permute.xlu0 %2965  ;;  %v3521_v7 = vsel %vm3502_vm3, %v7932_v3, %v3520_v52  ;;  %v7505_v3 = vrot.slane %v6576_v43, 5 }
 0x351   : > { %7931 = vst [vmem:[#allocation34_spill] sm:$0xff] %v7110_v38  ;;  %v7935_v38 = vrot.slane %v6560_v39, 3 }
 0x352   : > { %3085 = vrot.lane.b32.xlu1 %v3050_v60, %s4573_s13  ;;  %3556 = vrot.lane.b32.xlu0 %v3521_v7, %s4580_s27  ;;  %v3527_v52 = vsel %vm3502_vm3, %v7937_v15, %v7505_v3 }
 0x354   : > { %v7108_v59 = vpop.permute.xlu1 %3436  ;;  %v7120_v32 = vpop.permute.xlu0 %3075 }
 0x355   : > { %7930 = vst [vmem:[#allocation41_spill] sm:$0xff] %v7108_v59  ;;  %7934 = vst [vmem:[#allocation43_spill] sm:$0xff] %v7120_v32  ;;  %v3234_v59 = vsel %vm7936_vm10, %v7935_v38, %v7504_v5  ;;  %v7938_v38 = vrot.slane %v6560_v39, 4  ;;  %v7507_v32 = vrot.slane %v6576_v43, 6 }
 0x356   : > { %3159 = vrot.lane.b32.xlu1 %v3050_v60, %s4575_s15  ;;  %3558 = vrot.lane.b32.xlu0 %v3523_v48, %s4580_s27 }
 0x357   : > { %v3343_v5 = vsel %vm7939_vm8, %v7938_v38, %v7506_v22 }
 0x358   : > { %v7118_v37 = vpop.permute.xlu1 %3656  ;;  %v3150_v60 = vpop.permute.xlu0 %3149 }
 0x359   : > { %7933 = vst [vmem:[#allocation12_spill] sm:$0xff] %v7118_v37 }
 0x35a   : > { %3269 = vrot.lane.b32.xlu1 %v3234_v59, %s4576_s16  ;;  %3562 = vrot.lane.b32.xlu0 %v3527_v52, %s4580_s27  ;;  %v7940_v52 = vrot.slane %v6560_v39, 6 }
 0x35c   : > { %v7132_v7 = vpop.permute.xlu1 %3662  ;;  %v3260_v59 = vpop.permute.xlu0 %3259  ;;  %v3637_v38 = vsel %vm3612_vm11, %v7940_v52, %v7507_v32 }
 0x35e   : > { %3378 = vrot.lane.b32.xlu1 %v3343_v5, %s4577_s17  ;;  %3165 = vrot.lane.b32.xlu0 %v6635_v21, %s4575_s15 }
 0x360   : > { %v2964_v48 = vpop.permute.xlu1 %2963  ;;  %v3369_v3 = vpop.permute.xlu0 %3368 }
 0x361   : > { %v3008_v15 = vadd.f32 %v2964_v48, %v6536_v9  ;;  %v2941_v48 = vrot.slane %v6591_v18, 1 }
 0x362   : > { %3452 = vrot.lane.b32.xlu1 %v3343_v5, %s4579_s26  ;;  %3275 = vrot.lane.b32.xlu0 %v6644_v11, %s4576_s16  ;;  %v3006_v5 = vadd.f32 %v6508_v63, %v2960_v45  ;;  %v3051_v63 = vrot.slane %v6591_v18, 2 }
 0x364   : > { %v3074_v37 = vpop.permute.xlu1 %3073  ;;  %v3443_v21 = vpop.permute.xlu0 %3442  ;;  %v3116_v9 = vadd.f32 %v3070_v51, %v3006_v5 }
 0x365   : > { %v7151_v17 = vadd.f32 %v3074_v37, %v3008_v15  ;;  %v2943_v15 = vrot.slane %v6572_v14, 1 }
 0x366   : > { %3672 = vrot.lane.b32.xlu1 %v3637_v38, %s4578_s25  ;;  %3384 = vrot.lane.b32.xlu0 %v6659_v4, %s4577_s17 }
 0x367   : > { %v2944_v11 = vsel %vm7941_vm12, %v2941_v48, %v2943_v15 }
 0x368   : > { %v3148_v22 = vpop.permute.xlu1 %3147  ;;  %v3553_v52 = vpop.permute.xlu0 %3552 }
 0x369   : > { %v3194_v37 = vadd.f32 %v3148_v22, %v3116_v9  ;;  %v7942_v22 = vrot.slane %v6572_v14, 2 }
 0x36a   : > { %3568 = vrot.lane.b32.xlu1 %v6652_v23, %s4580_s27  ;;  %3458 = vrot.lane.b32.xlu0 %v6659_v4, %s4579_s26 }
 0x36b   : > { %v3054_v5 = vsel %vm7943_vm4, %v3051_v63, %v7942_v22 }
 0x36c   : > { %v3258_v38 = vpop.permute.xlu1 %3257  ;;  %v2962_v23 = vpop.permute.xlu0 %2961 }
 0x36d   : > { %v3304_v32 = vadd.f32 %v3258_v38, %v3194_v37  ;;  %v3007_v9 = vadd.f32 %v2962_v23, %v6524_v8  ;;  %v7944_v38 = vrot.slane %v6576_v43, 1 }
 0x36e   : > { %2979 = vrot.lane.b32.xlu1 %v2944_v11, %s4574_s14  ;;  %3678 = vrot.lane.b32.xlu0 %v6666_v57, %s4578_s25  ;;  %v3005_v57 = vadd.f32 %v6499_v35, %v6932_v24 }
 0x36f   : > { %v2942_v11 = vsel %vm7945_vm15, %v7944_v38, %v2941_v48  ;;  %v3344_v48 = vrot.slane %v6591_v18, 4 }
 0x370   : > { %v3367_v45 = vpop.permute.xlu1 %3366  ;;  %v3072_v15 = vpop.permute.xlu0 %3071  ;;  %v3115_v38 = vadd.f32 %v6944_v10, %v3005_v57  ;;  %v7949_v10 = vrot.slane %v6572_v14, 4 }
 0x371   : > { %v7173_v51 = vadd.f32 %v3367_v45, %v3304_v32  ;;  %v3117_v4 = vadd.f32 %v3072_v15, %v3007_v9  ;;  %v3235_v32 = vrot.slane %v6591_v18, 3  ;;  %v3003_v45 = vadd.f32 %v7027_v54, %v6501_v33 }
 0x372   : > { %3089 = vrot.lane.b32.xlu1 %v3054_v5, %s4573_s13  ;;  %2977 = vrot.lane.b32.xlu0 %v2942_v11, %s4574_s14  ;;  %v7946_v9 = vrot.slane %v6576_v43, 2  ;;  %v7948_v11 = vrot.slane %v6572_v14, 3 }
 0x373   : > { %v3195_v8 = vadd.f32 %v3150_v60, %v3117_v4 }
 0x374   : > { %v3441_v37 = vpop.permute.xlu1 %3440  ;;  %v3146_v22 = vpop.permute.xlu0 %3145  ;;  %v3052_v15 = vsel %vm7947_vm7, %v7946_v9, %v3051_v63  ;;  %v3238_v35 = vsel %vm7908_vm6, %v3235_v32, %v7948_v11 }
 0x375   : > { %v3305_v24 = vadd.f32 %v3260_v59, %v3195_v8  ;;  %v3193_v33 = vadd.f32 %v3146_v22, %v3115_v38  ;;  %v7950_v8 = vrot.slane %v6576_v43, 3 }
 0x376   : > { %3163 = vrot.lane.b32.xlu1 %v3054_v5, %s4575_s15  ;;  %v3113_v5 = vadd.f32 %v7036_v50, %v3003_v45  ;;  %3087 = vrot.lane.b32.xlu0 %v3052_v15, %s4573_s13  ;;  %v3347_v50 = vsel %vm7911_vm1, %v3344_v48, %v7949_v10  ;;  %v3004_v45 = vadd.f32 %v6946_v47, %v6511_v34  ;;  %v7952_v34 = vrot.slane %v6576_v43, 4 }
 0x377   : > { %v7203_v54 = vadd.f32 %v3369_v3, %v3305_v24  ;;  %v3236_v22 = vsel %vm7951_vm0, %v7950_v8, %v3235_v32  ;;  %v7954_v10 = vrot.slane %v6591_v18, 5 }
 0x378   : > { %v3659_v23 = vpop.permute.xlu1 %3658  ;;  %v3256_v63 = vpop.permute.xlu0 %3255  ;;  %v3191_v4 = vadd.f32 %v6962_v42, %v3113_v5  ;;  %v3114_v14 = vadd.f32 %v6964_v58, %v3004_v45  ;;  %v3345_v47 = vsel %vm7953_vm5, %v7952_v34, %v3344_v48 }
 0x379   : > { %v3303_v9 = vadd.f32 %v3256_v63, %v3193_v33 }
 0x37a   : > { %3273 = vrot.lane.b32.xlu1 %v3238_v35, %s4576_s16  ;;  %3161 = vrot.lane.b32.xlu0 %v3052_v15, %s4575_s15  ;;  %v3301_v42 = vadd.f32 %v6974_v49, %v3191_v4  ;;  %v3192_v35 = vadd.f32 %v7072_v46, %v3114_v14 }
 0x37c   : > { %v3661_v60 = vpop.permute.xlu1 %3660  ;;  %v3365_v59 = vpop.permute.xlu0 %3364  ;;  %v3410_v49 = vadd.f32 %v6990_v53, %v3301_v42 }
 0x37d   : > { %v3412_v3 = vadd.f32 %v3365_v59, %v3303_v9  ;;  %v7956_v59 = vrot.slane %v6591_v18, 6 }
 0x37e   : > { %3382 = vrot.lane.b32.xlu1 %v3347_v50, %s4577_s17  ;;  %3271 = vrot.lane.b32.xlu0 %v3236_v22, %s4576_s16 }
 0x37f   : > { %v3490_v38 = vadd.f32 %v3443_v21, %v3412_v3 }
 0x380   : > { %v2968_v57 = vpop.permute.xlu1 %2967  ;;  %v3439_v5 = vpop.permute.xlu0 %3438 }
 0x381   : > { %v3010_v15 = vadd.f32 %v6533_v6, %v2968_v57  ;;  %v3600_v32 = vadd.f32 %v3553_v52, %v3490_v38  ;;  %v3302_v6 = vadd.f32 %v7083_v56, %v3192_v35  ;;  %v3488_v58 = vadd.f32 %v3439_v5, %v3410_v49  ;;  %v7961_v49 = vld [vmem:[#allocation25_spill] sm:$0xff] }
 0x382   : > { %3456 = vrot.lane.b32.xlu1 %v3347_v50, %s4579_s26  ;;  %3380 = vrot.lane.b32.xlu0 %v3345_v47, %s4577_s17  ;;  %v7955_v50 = vrot.slane %v6576_v43, 5  ;;  %v7957_v57 = vrot.slane %v6576_v43, 6  ;;  %v3426_v38 = vrot.slane %v6648_v2, 4  ;;  %v3428_v2 = vrot.slane %v6602_v61, 4 }
 0x383   : > { %v7233_v21 = vadd.f32 %v7132_v7, %v3600_v32  ;;  %v3411_v46 = vadd.f32 %v7098_v13, %v3302_v6 }
 0x384   : > { %v3078_v11 = vpop.permute.xlu1 %3077  ;;  %v3549_v33 = vpop.permute.xlu0 %3548  ;;  %v3529_v13 = vsel %vm3502_vm3, %v7955_v50, %v7954_v10  ;;  %v3639_v45 = vsel %vm3612_vm11, %v7957_v57, %v7956_v59  ;;  %vm7959_vm11 = vmmov %vm7911_vm1  ;;  %v7971_v57 = vld [vmem:[#allocation28_spill] sm:$0xff] }
 0x385   : > { %v7226_v24 = vadd.f32 %v3078_v11, %v3010_v15  ;;  %v3598_v52 = vadd.f32 %v3549_v33, %v3488_v58  ;;  %vm7960_vm3 = vmmov %vm7911_vm1  ;;  %v7963_v33 = vld [vmem:[#allocation3_spill] sm:$0xff] }
 0x386   : > { %3566 = vrot.lane.b32.xlu1 %v6685_v26, %s4580_s27  ;;  %3454 = vrot.lane.b32.xlu0 %v3345_v47, %s4579_s26  ;;  %v3489_v26 = vadd.f32 %v3441_v37, %v3411_v46  ;;  %v7965_v46 = vld [vmem:[#allocation20_spill] sm:$0xff] }
 0x387   : > { %v7240_v63 = vadd.f32 %v3659_v23, %v3598_v52 }
 0x388   : > { %v3152_v48 = vpop.permute.xlu1 %3151  ;;  %v3551_v56 = vpop.permute.xlu0 %3550 }
 0x389   : > { %v3196_v53 = vadd.f32 %v3152_v48, %v7151_v17  ;;  %v3599_v9 = vadd.f32 %v3551_v56, %v3489_v26  ;;  %v7964_v48 = vld [vmem:[#allocation18_spill] sm:$0xff]  ;;  %v7966_v26 = vld [vmem:[#allocation29_spill] sm:$0xff] }
 0x38a   : > { %3676 = vrot.lane.b32.xlu1 %v6690_v44, %s4578_s25  ;;  %3564 = vrot.lane.b32.xlu0 %v3529_v13, %s4580_s27 }
 0x38b   : > { %v7250_v44 = vadd.f32 %v3661_v60, %v3599_v9 }
 0x38c   : > { %v3262_v4 = vpop.permute.xlu1 %3261  ;;  %v3555_v17 = vpop.permute.xlu0 %3554 }
 0x38d   : > { %v3306_v7 = vadd.f32 %v3262_v4, %v3196_v53  ;;  %v7967_v4 = vld [vmem:[#allocation49_spill] sm:$0xff] }
 0x38e   : > { %3167 = vrot.lane.b32.xlu1 %v6693_v27, %s4575_s15  ;;  %3674 = vrot.lane.b32.xlu0 %v3639_v45, %s4578_s25 }
 0x390   : > { %v3371_v37 = vpop.permute.xlu1 %3370  ;;  %v2974_v8 = vpop.permute.xlu0 %2973 }
 0x391   : > { %v7252_v23 = vadd.f32 %v3371_v37, %v3306_v7  ;;  %v3013_v60 = vadd.f32 %v6544_v40, %v2974_v8  ;;  %v7958_v40 = vrot.slane %v6604_v41, 4  ;;  %v7969_v7 = vld [vmem:[#allocation27_spill] sm:$0xff]  ;;  %v7970_v37 = vld [vmem:[#allocation21_spill] sm:$0xff] }
 0x392   : > { %3277 = vrot.lane.b32.xlu1 %v6696_v29, %s4576_s16  ;;  %3570 = vrot.lane.b32.xlu0 %v6711_v16, %s4580_s27 }
 0x393   : > { %v3427_v5 = vsel %vm7959_vm11, %v7958_v40, %v3426_v38 }
 0x394   : > { %v3445_v3 = vpop.permute.xlu1 %3444  ;;  %v3084_v14 = vpop.permute.xlu0 %3083 }
 0x395   : > { %v3491_v27 = vadd.f32 %v3445_v3, %v7173_v51  ;;  %v7271_v29 = vadd.f32 %v3084_v14, %v3013_v60  ;;  %v7972_v3 = vld [vmem:[#allocation39_spill] sm:$0xff]  ;;  %v7973_v60 = vld [vmem:[#allocation4_spill] sm:$0xff]  ;;  %v7975_v14 = vld [vmem:[#allocation30_spill] sm:$0xff] }
 0x396   : > { %3386 = vrot.lane.b32.xlu1 %v6716_v31, %s4577_s17  ;;  %3680 = vrot.lane.b32.xlu0 %v6722_v19, %s4578_s25  ;;  %v3429_v19 = vsel %vm7960_vm3, %v3426_v38, %v3428_v2 }
 0x397   : > { %v3601_v22 = vadd.f32 %v3555_v17, %v3491_v27 }
 0x398   : > { %v3665_v42 = vpop.permute.xlu1 %3664  ;;  %v3158_v51 = vpop.permute.xlu0 %3157 }
 0x399   : > { %v7269_v15 = vadd.f32 %v3665_v42, %v3601_v22  ;;  %v7974_v22 = vld [vmem:[#allocation2_spill] sm:$0xff] }
 0x39a   : > { %3460 = vrot.lane.b32.xlu1 %v6716_v31, %s4579_s26  ;;  %3462 = vrot.lane.b32.xlu0 %v3427_v5, %s4579_s26  ;;  %v3002_v42 = vadd.f32 %v7974_v22, %v7973_v60 }
 0x39c   : > { %v7277_v16 = vpop.permute.xlu1 %3670  ;;  %v3268_v11 = vpop.permute.xlu0 %3267 }
 0x39e   : > { %3574 = vrot.lane.b32.xlu1 %v6704_v20, %s4580_s27  ;;  %3464 = vrot.lane.b32.xlu0 %v3429_v19, %s4579_s26  ;;  %v2999_v20 = vadd.f32 %v6893_v62, %v6484_v0  ;;  %v7962_v62 = vld [vmem:[#allocation51_spill] sm:$0xff] }
 0x3a0   : > { %v2972_v34 = vpop.permute.xlu1 %2971  ;;  %v3377_v31 = vpop.permute.xlu0 %3376  ;;  %v3109_v61 = vadd.f32 %v6920_v28, %v2999_v20  ;;  %v7978_v20 = vld [vmem:[#allocation10_spill] sm:$0xff] }
 0x3a1   : > { %v3012_v41 = vadd.f32 %v2972_v34, %v6563_v55  ;;  %v3000_v55 = vadd.f32 %v6908_v12, %v6492_v25  ;;  %v7968_v12 = vld [vmem:[#allocation19_spill] sm:$0xff]  ;;  %v7976_v34 = vld [vmem:[#allocation5_spill] sm:$0xff] }
 0x3a2   : > { %3682 = vrot.lane.b32.xlu1 %v6725_v30, %s4578_s25  ;;  %3572 = vrot.lane.b32.xlu0 %v6719_v36, %s4580_s27  ;;  %v3187_v6 = vadd.f32 %v7961_v49, %v3109_v61  ;;  %v3001_v36 = vadd.f32 %v7964_v48, %v7963_v33  ;;  %v3112_v19 = vadd.f32 %v7976_v34, %v3002_v42  ;;  %v7990_v42 = vld [vmem:[#allocation11_spill] sm:$0xff] }
 0x3a4   : > { %v3082_v47 = vpop.permute.xlu1 %3081  ;;  %v7300_v30 = vpop.permute.xlu0 %3450  ;;  %v3297_v28 = vadd.f32 %v7965_v46, %v3187_v6  ;;  %v3111_v9 = vadd.f32 %v7968_v12, %v3001_v36  ;;  %v7982_v46 = vld [vmem:[#allocation24_spill] sm:$0xff]  ;;  %v7986_v12 = vld [vmem:[#allocation33_spill] sm:$0xff] }
 0x3a5   : > { %v7291_v35 = vadd.f32 %v3082_v47, %v3012_v41  ;;  %v7977_v41 = vld [vmem:[#allocation22_spill] sm:$0xff] }
 0x3a6   : > { %3684 = vrot.lane.b32.xlu1 %v6707_v1, %s4578_s25  ;;  %v3110_v1 = vadd.f32 %v7962_v62, %v3000_v55  ;;  %v3406_v10 = vadd.f32 %v7969_v7, %v3297_v28  ;;  %v3189_v45 = vadd.f32 %v7971_v57, %v3111_v9  ;;  %v7979_v55 = vld [vmem:[#allocation35_spill] sm:$0xff]  ;;  %v7989_v57 = vld [vmem:[#allocation41_spill] sm:$0xff] }
 0x3a8   : > { %v7302_v32 = vpop.permute.xlu1 %3155  ;;  %v7307_v58 = vpop.permute.xlu0 %3560  ;;  %v3188_v56 = vadd.f32 %v7966_v26, %v3110_v1  ;;  %v3484_v8 = vadd.f32 %v7972_v3, %v3406_v10  ;;  %v3299_v38 = vadd.f32 %v7975_v14, %v3189_v45  ;;  %v7981_v1 = vld [vmem:[#allocation8_spill] sm:$0xff]  ;;  %v7984_v26 = vld [vmem:[#allocation9_spill] sm:$0xff]  ;;  %v7349_v10 = vld [vmem:[%s7446_s4] ss:$0 sm:$0xff] }
 0x3aa   : > { %v3298_v59 = vadd.f32 %v7970_v37, %v3188_v56  ;;  %v3408_v61 = vadd.f32 %v7978_v20, %v3299_v38  ;;  %v3594_v49 = vadd.f32 %v7979_v55, %v3484_v8  ;;  %v7988_v37 = vld [vmem:[#allocation37_spill] sm:$0xff] }
 0x3ac   : > { %v7309_v0 = vpop.permute.xlu1 %3265  ;;  %v2970_v53 = vpop.permute.xlu0 %2969  ;;  %v3407_v47 = vadd.f32 %v7977_v41, %v3298_v59  ;;  %v3704_v56 = vadd.f32 %v7984_v26, %v3594_v49 }
 0x3ad   : > { %v3011_v25 = vadd.f32 %v2970_v53, %v7967_v4  ;;  %v7985_v4 = vld [vmem:[#allocation32_spill] sm:$0xff] }
 0x3ae   : > { %v3485_v33 = vadd.f32 %v7981_v1, %v3407_v47  ;;  %v3729_v3 = vadd.f32 %v7349_v10, %v3704_v56  ;;  %v7992_v47 = vld [vmem:[#allocation12_spill] sm:$0xff]  ;;  %v7993_v1 = vld [vmem:[#allocation34_spill] sm:$0xff] }
 0x3b0   : > { %v7315_v52 = vpop.permute.xlu1 %3374  ;;  %v3080_v13 = vpop.permute.xlu0 %3079 }
 0x3b1   : > { %v3121_v17 = vadd.f32 %v3080_v13, %v3011_v25  ;;  %v3595_v25 = vadd.f32 %v7985_v4, %v3485_v33  ;;  %v7987_v13 = vld [vmem:[#allocation26_spill] sm:$0xff]  ;;  %v7994_v33 = vld [vmem:[#allocation23_spill] sm:$0xff] }
 0x3b3   : > { %v3199_v27 = vadd.f32 %v3158_v51, %v3121_v17  ;;  %v7980_v51 = vld [vmem:[#allocation31_spill] sm:$0xff]  ;;  %v3705_v59 = vadd.f32 %v7988_v37, %v3595_v25  ;;  %v3734_v25 = vadd.f32 %v7349_v10, %v7250_v44 }
 0x3b4   : > { %v7321_v50 = vpop.permute.xlu1 %3448  ;;  %v3154_v5 = vpop.permute.xlu0 %3153  ;;  %v3190_v62 = vadd.f32 %v7980_v51, %v3112_v19 }
 0x3b5   : > { %v3309_v2 = vadd.f32 %v3268_v11, %v3199_v27  ;;  %v7983_v11 = vld [vmem:[#allocation7_spill] sm:$0xff]  ;;  %v3730_v38 = vadd.f32 %v7349_v10, %v3705_v59  ;;  %v3198_v59 = vadd.f32 %v7302_v32, %v7226_v24 }
 0x3b6   : > { %v3300_v28 = vadd.f32 %v7982_v46, %v3190_v62  ;;  %v3486_v53 = vadd.f32 %v7983_v11, %v3408_v61  ;;  %v3009_v46 = vadd.f32 %v7994_v33, %v7993_v1  ;;  %v7995_v11 = vld [vmem:[#allocation43_spill] sm:$0xff] }
 0x3b7   : > { %v7335_v6 = vadd.f32 %v3377_v31, %v3309_v2  ;;  %v7991_v2 = vld [vmem:[#allocation6_spill] sm:$0xff] }
 0x3b8   : > { %v7329_v40 = vpop.permute.xlu1 %3666  ;;  %v3264_v36 = vpop.permute.xlu0 %3263  ;;  %v3409_v9 = vadd.f32 %v7986_v12, %v3300_v28  ;;  %v3596_v17 = vadd.f32 %v7987_v13, %v3486_v53  ;;  %v3733_v28 = vadd.f32 %v7349_v10, %v7240_v63  ;;  %v3119_v53 = vadd.f32 %v7995_v11, %v3009_v46 }
 0x3b9   : > { %v3735_v63 = vadd.f32 %v7349_v10, %v7233_v21 }
 0x3ba   : > { %v3487_v45 = vadd.f32 %v7989_v57, %v3409_v9  ;;  %v3706_v34 = vadd.f32 %v7991_v2, %v3596_v17  ;;  %v3197_v4 = vadd.f32 %v3154_v5, %v3119_v53  ;;  %v3493_v5 = vadd.f32 %v7321_v50, %v7252_v23 }
 0x3bc   : > { %v7339_v48 = vpop.permute.xlu1 %3668  ;;  %v3373_v7 = vpop.permute.xlu0 %3372  ;;  %v3597_v14 = vadd.f32 %v7990_v42, %v3487_v45  ;;  %v3731_v61 = vadd.f32 %v7349_v10, %v3706_v34  ;;  %v3307_v12 = vadd.f32 %v3264_v36, %v3197_v4  ;;  %v3308_v36 = vadd.f32 %v7309_v0, %v3198_v59 }
 0x3be   : > { %v3707_v20 = vadd.f32 %v7992_v47, %v3597_v14  ;;  %v3416_v17 = vadd.f32 %v3373_v7, %v3307_v12 }
 0x3c0   : > { %v2976_v31 = vpop.permute.xlu1 %2975  ;;  %v3447_v27 = vpop.permute.xlu0 %3446  ;;  %3747 = vxpose.xlu0.b32.start [1/16] (narrow) %v3729_v3, 8  ;;  %v3732_v49 = vadd.f32 %v7349_v10, %v3707_v20  ;;  %v3494_v7 = vadd.f32 %v7300_v30, %v3416_v17  ;;  %v3417_v3 = vadd.f32 %v7315_v52, %v3308_v36 }
 0x3c1   : > { %v3014_v8 = vadd.f32 %v6560_v39, %v2976_v31  ;;  %v3492_v9 = vadd.f32 %v3447_v27, %v7203_v54  ;;  %v3736_v54 = vadd.f32 %v7349_v10, %v7269_v15 }
 0x3c2   : > { %v3604_v23 = vadd.f32 %v7307_v58, %v3494_v7 }
 0x3c4   : > { %v3086_v60 = vpop.permute.xlu1 %3085  ;;  %v3557_v19 = vpop.permute.xlu0 %3556  ;;  %3748 = vxpose.xlu0.b32.cont [2/16] (narrow) %v3730_v38, 8 }
 0x3c5   : > { %v7356_v22 = vadd.f32 %v3086_v60, %v3014_v8  ;;  %v3602_v37 = vadd.f32 %v3557_v19, %v3492_v9 }
 0x3c7   : > { %v3712_v45 = vadd.f32 %v7329_v40, %v3602_v37  ;;  %v3714_v40 = vadd.f32 %v7277_v16, %v3604_v23 }
 0x3c8   : > { %v7361_v41 = vpop.permute.xlu1 %3159  ;;  %v3559_v39 = vpop.permute.xlu0 %3558  ;;  %3749 = vxpose.xlu0.b32.cont [3/16] (narrow) %v3731_v61, 8 }
 0x3c9   : > { %v3603_v21 = vadd.f32 %v3559_v39, %v3493_v5  ;;  %v3737_v27 = vadd.f32 %v7349_v10, %v3712_v45  ;;  %v3739_v38 = vadd.f32 %v7349_v10, %v3714_v40  ;;  %v3200_v1 = vadd.f32 %v7361_v41, %v7291_v35 }
 0x3cb   : > { %v3713_v50 = vadd.f32 %v7339_v48, %v3603_v21 }
 0x3cc   : > { %v7365_v55 = vpop.permute.xlu1 %3269  ;;  %v3563_v51 = vpop.permute.xlu0 %3562  ;;  %3750 = vxpose.xlu0.b32.cont [4/16] (narrow) %v3732_v49, 8 }
 0x3cd   : > { %v3738_v30 = vadd.f32 %v7349_v10, %v3713_v50  ;;  %v3310_v46 = vadd.f32 %v7365_v55, %v3200_v1 }
 0x3d0   : > { %v7368_v62 = vpop.permute.xlu1 %3378  ;;  %v7375_v56 = vpop.permute.xlu0 %3165  ;;  %3751 = vxpose.xlu0.b32.cont [5/16] (narrow) %v3733_v28, 8 }
 0x3d4   : > { %v3453_v26 = vpop.permute.xlu1 %3452  ;;  %v7380_v13 = vpop.permute.xlu0 %3275  ;;  %3752 = vxpose.xlu0.b32.cont [6/16] (narrow) %v3734_v25, 8 }
 0x3d5   : > { %v3495_v8 = vadd.f32 %v3453_v26, %v3417_v3  ;;  %v3419_v26 = vadd.f32 %v7368_v62, %v3310_v46 }
 0x3d7   : > { %v3605_v0 = vadd.f32 %v3563_v51, %v3495_v8 }
 0x3d8   : > { %v3673_v31 = vpop.permute.xlu1 %3672  ;;  %v7388_v44 = vpop.permute.xlu0 %3384  ;;  %3753 = vxpose.xlu0.b32.cont [7/16] (narrow) %v3735_v63, 8 }
 0x3d9   : > { %v3715_v14 = vadd.f32 %v3673_v31, %v3605_v0 }
 0x3db   : > { %v3740_v48 = vadd.f32 %v7349_v10, %v3715_v14 }
 0x3dc   : > { %v3569_v57 = vpop.permute.xlu1 %3568  ;;  %v3459_v24 = vpop.permute.xlu0 %3458  ;;  %3754 = vxpose.xlu0.b32.cont [8/16] (narrow) %v3736_v54, 8 }
 0x3e0   : > { %v2980_v32 = vpop.permute.xlu1 %2979  ;;  %v3679_v15 = vpop.permute.xlu0 %3678  ;;  %3755 = vxpose.xlu0.b32.cont [9/16] (narrow) %v3737_v27, 8 }
 0x3e4   : > { %v3090_v60 = vpop.permute.xlu1 %3089  ;;  %v2978_v52 = vpop.permute.xlu0 %2977  ;;  %3756 = vxpose.xlu0.b32.cont [10/16] (narrow) %v3738_v30, 8 }
 0x3e5   : > { %v3015_v35 = vadd.f32 %v2978_v52, %v6576_v43 }
 0x3e8   : > { %v3164_v42 = vpop.permute.xlu1 %3163  ;;  %v3088_v2 = vpop.permute.xlu0 %3087  ;;  %3757 = vxpose.xlu0.b32.cont [11/16] (narrow) %v3739_v38, 8 }
 0x3e9   : > { %v3202_v63 = vadd.f32 %v3164_v42, %v7356_v22  ;;  %v3125_v36 = vadd.f32 %v3088_v2, %v3015_v35 }
 0x3eb   : > { %v3203_v43 = vadd.f32 %v7375_v56, %v3125_v36 }
 0x3ec   : > { %v3274_v58 = vpop.permute.xlu1 %3273  ;;  %v3162_v19 = vpop.permute.xlu0 %3161  ;;  %3758 = vxpose.xlu0.b32.cont [12/16] (narrow) %v3740_v48, 8 }
 0x3ed   : > { %v3201_v16 = vadd.f32 %v3162_v19, %v7271_v29  ;;  %v3312_v62 = vadd.f32 %v3274_v58, %v3202_v63 }
 0x3f0   : > { %v3383_v34 = vpop.permute.xlu1 %3382  ;;  %v3272_v20 = vpop.permute.xlu0 %3271 }
 0x3f1   : > { %v3311_v33 = vadd.f32 %v3272_v20, %v3201_v16  ;;  %v3421_v7 = vadd.f32 %v3383_v34, %v3312_v62 }
 0x3f4   : > { %v3457_v47 = vpop.permute.xlu1 %3456  ;;  %v3381_v39 = vpop.permute.xlu0 %3380 }
 0x3f5   : > { %v3420_v28 = vadd.f32 %v3381_v39, %v3311_v33  ;;  %v3497_v25 = vadd.f32 %v3457_v47, %v3419_v26 }
 0x3f7   : > { %v3498_v12 = vadd.f32 %v3459_v24, %v3420_v28 }
 0x3f8   : > { %v3567_v61 = vpop.permute.xlu1 %3566  ;;  %v3455_v51 = vpop.permute.xlu0 %3454 }
 0x3f9   : > { %v3496_v4 = vadd.f32 %v3455_v51, %v7335_v6  ;;  %v3607_v17 = vadd.f32 %v3567_v61, %v3497_v25  ;;  %v3608_v41 = vadd.f32 %v3569_v57, %v3498_v12  ;;  %v3016_v6 = vadd.f32 %v2980_v32, %v6591_v18 }
 0x3fa   : > { %v3313_v18 = vadd.f32 %v7380_v13, %v3203_v43 }
 0x3fb   : > { %v3718_v21 = vadd.f32 %v3679_v15, %v3608_v41  ;;  %v3126_v22 = vadd.f32 %v3090_v60, %v3016_v6 }
 0x3fc   : > { %v3677_v49 = vpop.permute.xlu1 %3676  ;;  %v3565_v11 = vpop.permute.xlu0 %3564  ;;  %v3422_v56 = vadd.f32 %v7388_v44, %v3313_v18 }
 0x3fd   : > { %v3606_v9 = vadd.f32 %v3565_v11, %v3496_v4  ;;  %v3717_v55 = vadd.f32 %v3677_v49, %v3607_v17  ;;  %v3743_v8 = vadd.f32 %v7349_v10, %v3718_v21 }
 0x3ff   : > { %v3742_v45 = vadd.f32 %v7349_v10, %v3717_v55 }
 0x400   : > { %v3168_v53 = vpop.permute.xlu1 %3167  ;;  %v3675_v31 = vpop.permute.xlu0 %3674 }
 0x401   : > { %v3716_v37 = vadd.f32 %v3675_v31, %v3606_v9  ;;  %v3204_v23 = vadd.f32 %v3168_v53, %v3126_v22 }
 0x403   : > { %v3741_v59 = vadd.f32 %v7349_v10, %v3716_v37 }
 0x404   : > { %v3278_v29 = vpop.permute.xlu1 %3277  ;;  %v3571_v5 = vpop.permute.xlu0 %3570 }
 0x405   : > { %3759 = vxpose.xlu0.b32.cont [13/16] (narrow) %v3741_v59, 8  ;;  %v3314_v30 = vadd.f32 %v3278_v29, %v3204_v23 }
 0x408   : > { %v3387_v54 = vpop.permute.xlu1 %3386  ;;  %v3681_v3 = vpop.permute.xlu0 %3680 }
 0x409   : > { %3760 = vxpose.xlu0.b32.cont [14/16] (narrow) %v3742_v45, 8  ;;  %v3423_v32 = vadd.f32 %v3387_v54, %v3314_v30 }
 0x40c   : > { %v3461_v24 = vpop.permute.xlu1 %3460  ;;  %v3463_v0 = vpop.permute.xlu0 %3462 }
 0x40d   : > { %v3499_v57 = vadd.f32 %v3461_v24, %v3421_v7  ;;  %3761 = vxpose.xlu0.b32.cont [15/16] (narrow) %v3743_v8, 8  ;;  %v3500_v14 = vadd.f32 %v3463_v0, %v3422_v56 }
 0x40f   : > { %v3609_v50 = vadd.f32 %v3571_v5, %v3499_v57 }
 0x410   : > { %v3575_v27 = vpop.permute.xlu1 %3574  ;;  %v3465_v60 = vpop.permute.xlu0 %3464 }
 0x411   : > { %v3719_v40 = vadd.f32 %v3681_v3, %v3609_v50  ;;  %v3501_v52 = vadd.f32 %v3465_v60, %v3423_v32 }
 0x413   : > { %v3744_v15 = vadd.f32 %v7349_v10, %v3719_v40  ;;  %v3611_v58 = vadd.f32 %v3575_v27, %v3501_v52 }
 0x414   : > { %v3683_v42 = vpop.permute.xlu1 %3682  ;;  %v3573_v38 = vpop.permute.xlu0 %3572 }
 0x415   : > { %3762 = vxpose.xlu0.b32.end [16/16] (narrow) %v3744_v15, 8  ;;  %v3610_v2 = vadd.f32 %v3573_v38, %v3500_v14 }
 0x417   : > { %v3720_v34 = vadd.f32 %v3683_v42, %v3610_v2 }
 0x418   : > { %v3685_v48 = vpop.permute.xlu1 %3684 }
 0x419   : > { %v3721_v19 = vadd.f32 %v3685_v48, %v3611_v58  ;;  %v3745_v13 = vadd.f32 %v7349_v10, %v3720_v34 }
 0x41b   : > { %3779 = vxpose.xlu1.b32.start [1/2] (short) (narrow) %v3745_v13, 8  ;;  %v3746_v47 = vadd.f32 %v7349_v10, %v3721_v19 }
 0x41f   : > { %3780 = vxpose.xlu1.b32.end [2/2] (short) (narrow) %v3746_v47, 8 }
 0x455   : > { %v3763_v44 = vpop.trf.xlu0 }
 0x456   : > { %3811 = vst [vmem:[%s260_s18] sm:$0xff] %v3763_v44 }
 0x497   : > { %v3795_v20 = vpop.trf.xlu1 }
 0x498   : > { %3812 = vst.msk [vmem:[%s260_s18 + $0x8] sm:$0xff] %vm7996_vm14, %v3795_v20 }
 0x499 PF: > { %s15_s22 = sadd.s32 1, %s4571_s22   ;;  %s7997_s18 = smov %s4563_s20 }
 0x49a   : > { %p12_p7 = scmp.ge.s32.totalorder %s15_s22, 6   ;;  %s7998_s19 = smov %s4567_s21 }
 0x49b   : > { %s7999_s20 = smov %s8002_s23  ;;  %s8000_s21 = smov %s8006_s24 }
 0x49c   :  { %14 = sbr.rel (!%p12_p7) target bundleno = 3 (0x3), region = 78 }

</bundles_post_ra>
